<compile_context>
chip_gen: v6e
topology: v6e:2x2x1
jax: 0.10.0
libtpu: 0.0.40
codegen_flags: <defaults>
</compile_context>

<pallas_src>
import functools

import jax
import jax.numpy as jnp
import numpy as np
from jax import lax
from jax.experimental import pallas as pl
from jax.experimental.pallas import tpu as pltpu

LN_EPS = 1e-5  # torch.nn.LayerNorm default


def _ln(z, g, b):
    mu = jnp.mean(z, axis=-1, keepdims=True)
    var = jnp.mean(jnp.square(z - mu), axis=-1, keepdims=True)
    return (z - mu) * lax.rsqrt(var + LN_EPS) * g + b


# vec_slab row layout (each row zero-padded to the slab width):
#  0 g_in   1 b_in   2 g_s   3 b_s   4 g_ff   5 b_ff
#  6 b_kv (2D)   7 b_q*scale (D)   8 b_ih (3D)   9 b_hh (3D)
# 10 b1 (H)     11 b2 (D)
def _slot_attention_kernel(
    x_ref, s0_ref, m_ref,          # batched tensors (blocked over batch)
    vec_ref, wproj_ref, gru_w_ref, w2_ref,   # packed parameter slabs
    out_ref,
    *, iters, eps, matmul_dtype,
):
    bb, n, d = x_ref.shape
    s = s0_ref.shape[1]
    hdim = w2_ref.shape[0]
    md = matmul_dtype
    f32 = jnp.float32

    # ---------------- packed params: one load per slab, static slices --------
    vec = vec_ref[...]
    g_in, b_in = vec[0:1, :d], vec[1:2, :d]
    g_s, b_s = vec[2:3, :d], vec[3:4, :d]
    g_ff, b_ff = vec[4:5, :d], vec[5:6, :d]
    b_kv = vec[6:7, :2 * d]
    b_q = vec[7:8, :d]                     # 1/sqrt(D) scale folded in (wrapper)
    b_ih = vec[8:9, :3 * d]
    b_hh = vec[9:10, :3 * d]
    b1 = vec[10:11, :hdim]
    b2 = vec[11:12, :d]

    wproj = wproj_ref[...]
    w_kv = wproj[:, :2 * d].astype(md)     # fused k|v projection
    w_q = wproj[:, 2 * d:3 * d].astype(md)  # scale folded in (wrapper)
    w1 = wproj[:, 3 * d:].astype(md)
    w_ih = gru_w_ref[0]                    # (D, 3D) f32 — GRU kept f32 (accuracy)
    w_hh = gru_w_ref[1]
    w2 = w2_ref[...].astype(md)

    # ---------------- hoisted, loop-invariant batched prep -------------------
    neg = -1e30                            # large finite (avoids -inf propagation)
    mask_full = jnp.broadcast_to(m_ref[...] > 0.5, (bb, s, n))   # (bb,S,N) bool, once

    x = x_ref[...].reshape(bb * n, d)      # batch-flattened LHS for shared matmuls
    xn = _ln(x, g_in, b_in)
    kv = jnp.dot(xn.astype(md), w_kv, preferred_element_type=f32) + b_kv  # (bb*n, 2D)
    # k transposed ONCE (hoisted out of the iteration loop); v stays f32 for attn@v.
    kT3 = jnp.swapaxes(kv[:, :d].reshape(bb, n, d), 1, 2).astype(md)      # (bb, D, N)
    v3 = kv[:, d:].reshape(bb, n, d)                                      # (bb, N, D)

    slots0 = s0_ref[...].reshape(bb * s, d)

    def body(_, slots):
        slots_prev = slots

        sn = _ln(slots, g_s, b_s)
        q3 = (jnp.dot(sn.astype(md), w_q, preferred_element_type=f32)
              + b_q).reshape(bb, s, d)

        dots = jnp.einsum("bsd,bdn->bsn", q3.astype(md), kT3,
                          preferred_element_type=f32)              # (bb, S, N)
        dots = jnp.where(mask_full, neg, dots)                     # masked_fill semantics

        # softmax over the SLOT axis (torch: softmax(dim=1) on (B,S,N)); exact division
        e = jnp.exp(dots - jnp.max(dots, axis=1, keepdims=True))
        attn = e / jnp.sum(e, axis=1, keepdims=True) + eps
        attn = attn / jnp.sum(attn, axis=-1, keepdims=True)

        upd = jnp.einsum("bsn,bnd->bsd", attn, v3,
                         preferred_element_type=f32).reshape(bb * s, d)   # f32

        # GRUCell(updates, slots_prev): 2 fused (M,3D) matmuls (was 6), f32
        gi = jnp.dot(upd, w_ih, preferred_element_type=f32) + b_ih
        gh = jnp.dot(slots_prev, w_hh, preferred_element_type=f32) + b_hh
        r = jax.nn.sigmoid(gi[:, :d] + gh[:, :d])
        z = jax.nn.sigmoid(gi[:, d:2 * d] + gh[:, d:2 * d])
        ng = jnp.tanh(gi[:, 2 * d:] + r * gh[:, 2 * d:])
        slots = (1.0 - z) * ng + z * slots_prev

        # residual MLP
        sff = _ln(slots, g_ff, b_ff)
        hidv = jnp.maximum(
            jnp.dot(sff.astype(md), w1, preferred_element_type=f32) + b1, 0.0)
        return slots + jnp.dot(hidv.astype(md), w2, preferred_element_type=f32) + b2

    slots_final = lax.fori_loop(0, iters, body, slots0, unroll=True)
    out_ref[...] = slots_final.reshape(bb, s, d).astype(out_ref.dtype)


def _default_block_b(b):
    """Generation-aware batch blocking: whole batch on single-TC parts,
    >=4 parallel grid steps on multi-TC parts (v7x) so each core pipelines."""
    try:
        kind = jax.devices()[0].device_kind.lower()
    except Exception:  # pragma: no cover - defensive
        kind = ""
    single_tc = any(t in kind for t in ("lite", "v5e", "v6e"))
    if single_tc or b < 4:
        return b
    for steps in (4, 2):
        if b % steps == 0:
            return b // steps
    return b


def slot_attention_forward(inputs, slots_init, mask, params, *, iters, eps, scale,
                           block_b=None, matmul_dtype=jnp.float32):
    """inputs: (B, N, D) f32, slots_init: (B, S, D) f32, mask: (B, N) bool."""
    b, n, d = inputs.shape
    ns = slots_init.shape[1]
    hdim = params["w1"].shape[1]
    # Keep in-kernel (Bb, X, D) <-> (Bb*X, D) reshapes layout-preserving (8 sublanes).
    assert n % 8 == 0 and ns % 8 == 0, "N and num_slots must be multiples of 8"

    if block_b is None:
        block_b = _default_block_b(b)
    assert b % block_b == 0

    mask3 = mask.reshape(b, 1, n).astype(jnp.float32)

    # -------- parameter packing (cheap one-time XLA ops outside the kernel) --------
    width = max(hdim, 3 * d)

    def row(p):
        p = p.reshape(1, -1)
        pad = width - p.shape[1]
        return jnp.pad(p, ((0, 0), (0, pad))) if pad else p

    vec_slab = jnp.concatenate([
        row(params["g_in"]), row(params["b_in"]),
        row(params["g_s"]), row(params["b_s"]),
        row(params["g_ff"]), row(params["b_ff"]),
        row(jnp.concatenate([params["bk"], params["bv"]], axis=1)),   # b_kv
        row(params["bq"] * scale),                                     # scale folded
        row(params["bih"]), row(params["bhh"]),
        row(params["b1"]), row(params["b2"]),
    ], axis=0)                                                          # (12, width)

    wproj = jnp.concatenate(
        [params["wk"], params["wv"], params["wq"] * scale, params["w1"]],
        axis=1)                                                         # (D, 3D+H)
    gru_w = jnp.stack([params["wih"], params["whh"]], axis=0)           # (2, D, 3D)
    w2 = params["w2"]                                                   # (H, D)

    in_specs = [
        pl.BlockSpec((block_b, n, d), lambda i: (i, 0, 0)),    # inputs
        pl.BlockSpec((block_b, ns, d), lambda i: (i, 0, 0)),   # slots init
        pl.BlockSpec((block_b, 1, n), lambda i: (i, 0, 0)),    # mask
        pl.BlockSpec(vec_slab.shape, lambda i: (0, 0)),        # packed LN params + biases
        pl.BlockSpec(wproj.shape, lambda i: (0, 0)),           # [wk|wv|wq*scale|w1]
        pl.BlockSpec(gru_w.shape, lambda i: (0, 0, 0)),        # [wih; whh]
        pl.BlockSpec(w2.shape, lambda i: (0, 0)),              # w2
    ]

    # Advisory cost estimate so XLA schedules the custom call sensibly.
    m_in, m_s = b * n, b * ns
    flops = (2 * m_in * d * (2 * d)
             + iters * (2 * m_s * d * d
                        + 2 * 2 * b * ns * n * d
                        + 2 * 2 * m_s * d * (3 * d)
                        + 2 * 2 * m_s * d * hdim))
    transcendentals = iters * (b * ns * n + 3 * m_s * d)
    bytes_accessed = 4 * (inputs.size + slots_init.size + mask3.size
                          + vec_slab.size + wproj.size + gru_w.size + w2.size
                          + b * ns * d)

    kernel = functools.partial(
        _slot_attention_kernel, iters=iters, eps=eps, matmul_dtype=matmul_dtype)

    return pl.pallas_call(
        kernel,
        out_shape=jax.ShapeDtypeStruct((b, ns, d), jnp.float32),
        grid=(b // block_b,),
        in_specs=in_specs,
        out_specs=pl.BlockSpec((block_b, ns, d), lambda i: (i, 0, 0)),
        compiler_params=pltpu.CompilerParams(
            dimension_semantics=("parallel",),
            vmem_limit_bytes=32 * 1024 * 1024),
        cost_estimate=pl.CostEstimate(
            flops=int(flops), transcendentals=int(transcendentals),
            bytes_accessed=int(bytes_accessed)),
    )(inputs, slots_init, mask3, vec_slab, wproj, gru_w, w2)


def slot_attention_reference(inputs, slots_init, mask, params, *, iters, eps, scale):
    """Pure-JAX (f32) reference mirroring the PyTorch forward."""
    b, n, d = inputs.shape
    x = _ln(inputs, params["g_in"], params["b_in"])
    k = x @ params["wk"] + params["bk"]
    v = x @ params["wv"] + params["bv"]
    slots = slots_init
    neg = -jnp.finfo(jnp.float32).max
    maskb = mask[:, None, :]  # (B, 1, N)
    for _ in range(iters):
        slots_prev = slots
        sn = _ln(slots, params["g_s"], params["b_s"])
        q = sn @ params["wq"] + params["bq"]
        dots = jnp.einsum("bid,bjd->bij", q, k) * scale
        dots = jnp.where(maskb, neg, dots)
        attn = jax.nn.softmax(dots, axis=1) + eps
        attn = attn / jnp.sum(attn, axis=-1, keepdims=True)
        updates = jnp.einsum("bjd,bij->bid", v, attn)
        gi = updates @ params["wih"] + params["bih"]
        gh = slots_prev @ params["whh"] + params["bhh"]
        i_r, i_z, i_n = gi[..., :d], gi[..., d:2 * d], gi[..., 2 * d:]
        h_r, h_z, h_n = gh[..., :d], gh[..., d:2 * d], gh[..., 2 * d:]
        r = jax.nn.sigmoid(i_r + h_r)
        z = jax.nn.sigmoid(i_z + h_z)
        n_ = jnp.tanh(i_n + r * h_n)
        slots = (1.0 - z) * n_ + z * slots_prev
        sff = _ln(slots, params["g_ff"], params["b_ff"])
        hid = jnp.maximum(sff @ params["w1"] + params["b1"], 0.0)
        slots = slots + hid @ params["w2"] + params["b2"]
    return slots


def make_params(key, dim, num_slots, hidden_dim):
    hidden = max(dim, hidden_dim)
    ks = jax.random.split(key, 16)

    def lin_w(k, fan_in, fan_out):
        bound = 1.0 / np.sqrt(fan_in)
        return jax.random.uniform(k, (fan_in, fan_out), jnp.float32, -bound, bound)

    def lin_b(k, fan_in, fan_out):
        bound = 1.0 / np.sqrt(fan_in)
        return jax.random.uniform(k, (1, fan_out), jnp.float32, -bound, bound)

    params = {
        "g_in": jnp.ones((1, dim), jnp.float32),
        "b_in": jnp.zeros((1, dim), jnp.float32),
        "g_s": jnp.ones((1, dim), jnp.float32),
        "b_s": jnp.zeros((1, dim), jnp.float32),
        "g_ff": jnp.ones((1, dim), jnp.float32),
        "b_ff": jnp.zeros((1, dim), jnp.float32),
        "wq": lin_w(ks[0], dim, dim), "bq": lin_b(ks[1], dim, dim),
        "wk": lin_w(ks[2], dim, dim), "bk": lin_b(ks[3], dim, dim),
        "wv": lin_w(ks[4], dim, dim), "bv": lin_b(ks[5], dim, dim),
        # GRUCell: weight_ih (3d, d) / weight_hh (3d, d) in torch; stored transposed here
        "wih": lin_w(ks[6], dim, 3 * dim), "bih": lin_b(ks[7], dim, 3 * dim),
        "whh": lin_w(ks[8], dim, 3 * dim), "bhh": lin_b(ks[9], dim, 3 * dim),
        "w1": lin_w(ks[10], dim, hidden), "b1": lin_b(ks[11], dim, hidden),
        "w2": lin_w(ks[12], hidden, dim), "b2": lin_b(ks[13], hidden, dim),
    }
    slots_mu = jax.random.normal(ks[14], (1, num_slots, dim), jnp.float32)
    bound = float(np.sqrt(6.0 / (num_slots * dim + dim)))  # xavier_uniform-style bound
    slots_logsigma = jax.random.uniform(
        ks[15], (1, num_slots, dim), jnp.float32, -bound, bound)
    return params, slots_mu, slots_logsigma


if __name__ == "__main__":
    B, N, D = 8, 32, 32
    NUM_SLOTS, ITERS, HIDDEN = 8, 3, 128
    EPS = 1e-8
    SCALE = D ** (-0.5)

    key = jax.random.PRNGKey(0)
    k_par, k_x, k_noise, k_mask = jax.random.split(key, 4)

    params, slots_mu, slots_logsigma = make_params(k_par, D, NUM_SLOTS, HIDDEN)

    inputs = jax.random.normal(k_x, (B, N, D), jnp.float32)

    # slots = mu + exp(logsigma) * randn  (sampling done in plain JAX, like torch.randn)
    noise = jax.random.normal(k_noise, (B, NUM_SLOTS, D), jnp.float32)
    slots_init = slots_mu + jnp.exp(slots_logsigma) * noise

    # boolean mask over input tokens (True == masked out); keep some tokens unmasked
    mask = jax.random.uniform(k_mask, (B, N)) > 0.8
    mask = mask.at[:, 0].set(False)

    ref = slot_attention_reference(
        inputs, slots_init, mask, params, iters=ITERS, eps=EPS, scale=SCALE)
    ref = jax.block_until_ready(ref)

    # f32-matmul path (correctness gate): exact softmax division now used, so the
    # residual gap vs. the reference is matmul accumulation-order / XLA default
    # matmul precision, not kernel approximations.
    out_f32 = slot_attention_forward(
        inputs, slots_init, mask, params, iters=ITERS, eps=EPS, scale=SCALE,
        matmul_dtype=jnp.float32)
    out_f32 = jax.block_until_ready(out_f32)
    np.testing.assert_allclose(np.asarray(out_f32), np.asarray(ref), rtol=1e-2, atol=1e-2)

    # bf16 fast path (v6e/v7x): bf16 only on the k/v/q projections, QK logits and
    # the MLP; attn@v and the GRU stay f32, so precision loss is bounded.
    out_bf16 = slot_attention_forward(
        inputs, slots_init, mask, params, iters=ITERS, eps=EPS, scale=SCALE,
        matmul_dtype=jnp.bfloat16)
    out_bf16 = jax.block_until_ready(out_bf16)
    np.testing.assert_allclose(np.asarray(out_bf16), np.asarray(ref), rtol=1e-1, atol=1e-1)

    print("KERNEL_OK")
</pallas_src>

<mosaic_0001>
module attributes {stable_mosaic.version = 11 : i64} {
  func.func @_slot_attention_kernel(%arg0: i32, %arg1: memref<2x32x32xf32, #tpu.memory_space<vmem>>, %arg2: memref<2x8x32xf32, #tpu.memory_space<vmem>>, %arg3: memref<2x1x32xf32, #tpu.memory_space<vmem>>, %arg4: memref<12x128xf32, #tpu.memory_space<vmem>>, %arg5: memref<32x224xf32, #tpu.memory_space<vmem>>, %arg6: memref<2x32x96xf32, #tpu.memory_space<vmem>>, %arg7: memref<128x32xf32, #tpu.memory_space<vmem>>, %arg8: memref<2x8x32xf32, #tpu.memory_space<vmem>>) attributes {dimension_semantics = [#tpu.dimension_semantics<parallel>], iteration_bounds = array<i64: 4>, scalar_prefetch = 0 : i64, scratch_operands = 0 : i64, tpu.core_type = #tpu.core_type<tc>, window_params = [{transform_indices = @transform_0, window_bounds = array<i64: 2, 32, 32>}, {transform_indices = @transform_1, window_bounds = array<i64: 2, 8, 32>}, {transform_indices = @transform_2, window_bounds = array<i64: 2, 1, 32>}, {pipeline_mode = #tpu.pipeline_mode<synchronous>, transform_indices = @transform_3, window_bounds = array<i64: 12, 128>}, {pipeline_mode = #tpu.pipeline_mode<synchronous>, transform_indices = @transform_4, window_bounds = array<i64: 32, 224>}, {pipeline_mode = #tpu.pipeline_mode<synchronous>, transform_indices = @transform_5, window_bounds = array<i64: 2, 32, 96>}, {pipeline_mode = #tpu.pipeline_mode<synchronous>, transform_indices = @transform_6, window_bounds = array<i64: 128, 32>}, {transform_indices = @transform_7, window_bounds = array<i64: 2, 8, 32>}]} {
    %c0 = arith.constant 0 : index
    %c0_0 = arith.constant 0 : index
    %0 = vector.load %arg4[%c0, %c0_0] : memref<12x128xf32, #tpu.memory_space<vmem>>, vector<12x128xf32>
    %1 = vector.extract_strided_slice %0 {offsets = [0, 0], sizes = [1, 32], strides = [1, 1]} : vector<12x128xf32> to vector<1x32xf32>
    %2 = vector.extract_strided_slice %0 {offsets = [1, 0], sizes = [1, 32], strides = [1, 1]} : vector<12x128xf32> to vector<1x32xf32>
    %3 = vector.extract_strided_slice %0 {offsets = [2, 0], sizes = [1, 32], strides = [1, 1]} : vector<12x128xf32> to vector<1x32xf32>
    %4 = vector.extract_strided_slice %0 {offsets = [3, 0], sizes = [1, 32], strides = [1, 1]} : vector<12x128xf32> to vector<1x32xf32>
    %5 = vector.extract_strided_slice %0 {offsets = [4, 0], sizes = [1, 32], strides = [1, 1]} : vector<12x128xf32> to vector<1x32xf32>
    %6 = vector.extract_strided_slice %0 {offsets = [5, 0], sizes = [1, 32], strides = [1, 1]} : vector<12x128xf32> to vector<1x32xf32>
    %7 = vector.extract_strided_slice %0 {offsets = [6, 0], sizes = [1, 64], strides = [1, 1]} : vector<12x128xf32> to vector<1x64xf32>
    %8 = vector.extract_strided_slice %0 {offsets = [7, 0], sizes = [1, 32], strides = [1, 1]} : vector<12x128xf32> to vector<1x32xf32>
    %9 = vector.extract_strided_slice %0 {offsets = [8, 0], sizes = [1, 96], strides = [1, 1]} : vector<12x128xf32> to vector<1x96xf32>
    %10 = vector.extract_strided_slice %0 {offsets = [9, 0], sizes = [1, 96], strides = [1, 1]} : vector<12x128xf32> to vector<1x96xf32>
    %11 = vector.extract_strided_slice %0 {offsets = [10, 0], sizes = [1, 128], strides = [1, 1]} : vector<12x128xf32> to vector<1x128xf32>
    %12 = vector.extract_strided_slice %0 {offsets = [11, 0], sizes = [1, 32], strides = [1, 1]} : vector<12x128xf32> to vector<1x32xf32>
    %c0_1 = arith.constant 0 : index
    %c0_2 = arith.constant 0 : index
    %13 = vector.load %arg5[%c0_1, %c0_2] : memref<32x224xf32, #tpu.memory_space<vmem>>, vector<32x224xf32>
    %14 = vector.extract_strided_slice %13 {offsets = [0, 0], sizes = [32, 64], strides = [1, 1]} : vector<32x224xf32> to vector<32x64xf32>
    %15 = vector.extract_strided_slice %13 {offsets = [0, 64], sizes = [32, 32], strides = [1, 1]} : vector<32x224xf32> to vector<32x32xf32>
    %16 = vector.extract_strided_slice %13 {offsets = [0, 96], sizes = [32, 128], strides = [1, 1]} : vector<32x224xf32> to vector<32x128xf32>
    %c0_3 = arith.constant 0 : index
    %c0_4 = arith.constant 0 : index
    %c0_5 = arith.constant 0 : index
    %17 = vector.load %arg6[%c0_3, %c0_4, %c0_5] : memref<2x32x96xf32, #tpu.memory_space<vmem>>, vector<1x32x96xf32>
    %18 = vector.shape_cast %17 : vector<1x32x96xf32> to vector<32x96xf32>
    %c1 = arith.constant 1 : index
    %c0_6 = arith.constant 0 : index
    %c0_7 = arith.constant 0 : index
    %19 = vector.load %arg6[%c1, %c0_6, %c0_7] : memref<2x32x96xf32, #tpu.memory_space<vmem>>, vector<1x32x96xf32>
    %20 = vector.shape_cast %19 : vector<1x32x96xf32> to vector<32x96xf32>
    %c0_8 = arith.constant 0 : index
    %c0_9 = arith.constant 0 : index
    %21 = vector.load %arg7[%c0_8, %c0_9] : memref<128x32xf32, #tpu.memory_space<vmem>>, vector<128x32xf32>
    %c0_10 = arith.constant 0 : index
    %c0_11 = arith.constant 0 : index
    %c0_12 = arith.constant 0 : index
    %22 = vector.load %arg3[%c0_10, %c0_11, %c0_12] : memref<2x1x32xf32, #tpu.memory_space<vmem>>, vector<2x1x32xf32>
    %cst = arith.constant 5.000000e-01 : f32
    %23 = vector.broadcast %cst : f32 to vector<2x1x32xf32>
    %24 = arith.cmpf ogt, %22, %23 : vector<2x1x32xf32>
    %25 = vector.shape_cast %24 : vector<2x1x32xi1> to vector<2x1x32xi1>
    %26 = vector.broadcast %25 : vector<2x1x32xi1> to vector<2x8x32xi1>
    %c0_13 = arith.constant 0 : index
    %c0_14 = arith.constant 0 : index
    %c0_15 = arith.constant 0 : index
    %27 = vector.load %arg1[%c0_13, %c0_14, %c0_15] : memref<2x32x32xf32, #tpu.memory_space<vmem>>, vector<2x32x32xf32>
    %28 = vector.shape_cast %27 : vector<2x32x32xf32> to vector<64x32xf32>
    %cst_16 = arith.constant dense<0.000000e+00> : vector<64xf32>
    %29 = vector.multi_reduction <add>, %28, %cst_16 [1] : vector<64x32xf32> to vector<64xf32>
    %30 = vector.shape_cast %29 : vector<64xf32> to vector<64x1xf32>
    %cst_17 = arith.constant 3.200000e+01 : f32
    %31 = vector.broadcast %cst_17 : f32 to vector<64x1xf32>
    %32 = arith.divf %30, %31 : vector<64x1xf32>
    %33 = vector.broadcast %32 : vector<64x1xf32> to vector<64x32xf32>
    %34 = arith.subf %28, %33 : vector<64x32xf32>
    %35 = arith.mulf %34, %34 : vector<64x32xf32>
    %cst_18 = arith.constant dense<0.000000e+00> : vector<64xf32>
    %36 = vector.multi_reduction <add>, %35, %cst_18 [1] : vector<64x32xf32> to vector<64xf32>
    %37 = vector.shape_cast %36 : vector<64xf32> to vector<64x1xf32>
    %cst_19 = arith.constant 3.200000e+01 : f32
    %38 = vector.broadcast %cst_19 : f32 to vector<64x1xf32>
    %39 = arith.divf %37, %38 : vector<64x1xf32>
    %40 = vector.broadcast %32 : vector<64x1xf32> to vector<64x32xf32>
    %41 = arith.subf %28, %40 : vector<64x32xf32>
    %cst_20 = arith.constant 9.99999974E-6 : f32
    %42 = vector.broadcast %cst_20 : f32 to vector<64x1xf32>
    %43 = arith.addf %39, %42 : vector<64x1xf32>
    %44 = math.rsqrt %43 : vector<64x1xf32>
    %45 = vector.broadcast %44 : vector<64x1xf32> to vector<64x32xf32>
    %46 = arith.mulf %41, %45 : vector<64x32xf32>
    %47 = vector.broadcast %1 : vector<1x32xf32> to vector<64x32xf32>
    %48 = arith.mulf %46, %47 : vector<64x32xf32>
    %49 = vector.broadcast %2 : vector<1x32xf32> to vector<64x32xf32>
    %50 = arith.addf %48, %49 : vector<64x32xf32>
    %cst_21 = arith.constant dense<0.000000e+00> : vector<64x64xf32>
    %51 = tpu.matmul %50, %14, %cst_21 {dimension_numbers = #tpu.dot_dimension_numbers<[1], [0], [0], [1], [0, 0, 1, 1], [], []>} : vector<64x32xf32>, vector<32x64xf32>, vector<64x64xf32> -> vector<64x64xf32>
    %52 = vector.broadcast %7 : vector<1x64xf32> to vector<64x64xf32>
    %53 = arith.addf %51, %52 : vector<64x64xf32>
    %54 = vector.extract_strided_slice %53 {offsets = [0, 0], sizes = [64, 32], strides = [1, 1]} : vector<64x64xf32> to vector<64x32xf32>
    %55 = vector.shape_cast %54 : vector<64x32xf32> to vector<2x32x32xf32>
    %56 = tpu.transpose %55, [0, 2, 1] : vector<2x32x32xf32> -> vector<2x32x32xf32>
    %57 = vector.extract_strided_slice %53 {offsets = [0, 32], sizes = [64, 32], strides = [1, 1]} : vector<64x64xf32> to vector<64x32xf32>
    %58 = vector.shape_cast %57 : vector<64x32xf32> to vector<2x32x32xf32>
    %c0_22 = arith.constant 0 : index
    %c0_23 = arith.constant 0 : index
    %c0_24 = arith.constant 0 : index
    %59 = vector.load %arg2[%c0_22, %c0_23, %c0_24] : memref<2x8x32xf32, #tpu.memory_space<vmem>>, vector<2x8x32xf32>
    %60 = vector.shape_cast %59 : vector<2x8x32xf32> to vector<16x32xf32>
    %c0_i32 = arith.constant 0 : i32
    %cst_25 = arith.constant dense<0.000000e+00> : vector<16xf32>
    %61 = vector.multi_reduction <add>, %60, %cst_25 [1] : vector<16x32xf32> to vector<16xf32>
    %62 = vector.shape_cast %61 : vector<16xf32> to vector<16x1xf32>
    %cst_26 = arith.constant 3.200000e+01 : f32
    %63 = vector.broadcast %cst_26 : f32 to vector<16x1xf32>
    %64 = arith.divf %62, %63 : vector<16x1xf32>
    %65 = vector.broadcast %64 : vector<16x1xf32> to vector<16x32xf32>
    %66 = arith.subf %60, %65 : vector<16x32xf32>
    %67 = arith.mulf %66, %66 : vector<16x32xf32>
    %cst_27 = arith.constant dense<0.000000e+00> : vector<16xf32>
    %68 = vector.multi_reduction <add>, %67, %cst_27 [1] : vector<16x32xf32> to vector<16xf32>
    %69 = vector.shape_cast %68 : vector<16xf32> to vector<16x1xf32>
    %cst_28 = arith.constant 3.200000e+01 : f32
    %70 = vector.broadcast %cst_28 : f32 to vector<16x1xf32>
    %71 = arith.divf %69, %70 : vector<16x1xf32>
    %72 = vector.broadcast %64 : vector<16x1xf32> to vector<16x32xf32>
    %73 = arith.subf %60, %72 : vector<16x32xf32>
    %cst_29 = arith.constant 9.99999974E-6 : f32
    %74 = vector.broadcast %cst_29 : f32 to vector<16x1xf32>
    %75 = arith.addf %71, %74 : vector<16x1xf32>
    %76 = math.rsqrt %75 : vector<16x1xf32>
    %77 = vector.broadcast %76 : vector<16x1xf32> to vector<16x32xf32>
    %78 = arith.mulf %73, %77 : vector<16x32xf32>
    %79 = vector.broadcast %3 : vector<1x32xf32> to vector<16x32xf32>
    %80 = arith.mulf %78, %79 : vector<16x32xf32>
    %81 = vector.broadcast %4 : vector<1x32xf32> to vector<16x32xf32>
    %82 = arith.addf %80, %81 : vector<16x32xf32>
    %cst_30 = arith.constant dense<0.000000e+00> : vector<16x32xf32>
    %83 = tpu.matmul %82, %15, %cst_30 {dimension_numbers = #tpu.dot_dimension_numbers<[1], [0], [0], [1], [0, 0, 1, 1], [], []>} : vector<16x32xf32>, vector<32x32xf32>, vector<16x32xf32> -> vector<16x32xf32>
    %84 = vector.broadcast %8 : vector<1x32xf32> to vector<16x32xf32>
    %85 = arith.addf %83, %84 : vector<16x32xf32>
    %86 = vector.shape_cast %85 : vector<16x32xf32> to vector<2x8x32xf32>
    "tpu.trace_start"() <{level = 10 : i32, message = "bsd,bdn->bsn"}> : () -> ()
    %cst_31 = arith.constant dense<0.000000e+00> : vector<2x8x32xf32>
    %87 = tpu.matmul %86, %56, %cst_31 {dimension_numbers = #tpu.dot_dimension_numbers<[2], [1], [1], [2], [0, 0, 0, 1, 1, 2], [0], [0]>} : vector<2x8x32xf32>, vector<2x32x32xf32>, vector<2x8x32xf32> -> vector<2x8x32xf32>
    %cst_32 = arith.constant -1.000000e+30 : f32
    "tpu.trace_stop"() : () -> ()
    %88 = vector.broadcast %cst_32 : f32 to vector<2x8x32xf32>
    %89 = arith.select %26, %88, %87 : vector<2x8x32xi1>, vector<2x8x32xf32>
    %cst_33 = arith.constant dense<0xFF800000> : vector<2x32xf32>
    %90 = vector.multi_reduction <maximumf>, %89, %cst_33 [1] : vector<2x8x32xf32> to vector<2x32xf32>
    %91 = vector.shape_cast %90 : vector<2x32xf32> to vector<2x1x32xf32>
    %92 = vector.broadcast %91 : vector<2x1x32xf32> to vector<2x8x32xf32>
    %93 = arith.subf %89, %92 : vector<2x8x32xf32>
    %94 = math.exp %93 : vector<2x8x32xf32>
    %cst_34 = arith.constant dense<0.000000e+00> : vector<2x32xf32>
    %95 = vector.multi_reduction <add>, %94, %cst_34 [1] : vector<2x8x32xf32> to vector<2x32xf32>
    %96 = vector.shape_cast %95 : vector<2x32xf32> to vector<2x1x32xf32>
    %97 = vector.broadcast %96 : vector<2x1x32xf32> to vector<2x8x32xf32>
    %98 = arith.divf %94, %97 : vector<2x8x32xf32>
    %cst_35 = arith.constant 9.99999993E-9 : f32
    %99 = vector.broadcast %cst_35 : f32 to vector<2x8x32xf32>
    %100 = arith.addf %98, %99 : vector<2x8x32xf32>
    %cst_36 = arith.constant dense<0.000000e+00> : vector<2x8xf32>
    %101 = vector.multi_reduction <add>, %100, %cst_36 [2] : vector<2x8x32xf32> to vector<2x8xf32>
    %102 = vector.shape_cast %101 : vector<2x8xf32> to vector<2x8x1xf32>
    %103 = vector.broadcast %102 : vector<2x8x1xf32> to vector<2x8x32xf32>
    %104 = arith.divf %100, %103 : vector<2x8x32xf32>
    "tpu.trace_start"() <{level = 10 : i32, message = "bsn,bnd->bsd"}> : () -> ()
    %cst_37 = arith.constant dense<0.000000e+00> : vector<2x8x32xf32>
    %105 = tpu.matmul %104, %58, %cst_37 {dimension_numbers = #tpu.dot_dimension_numbers<[2], [1], [1], [2], [0, 0, 0, 1, 1, 2], [0], [0]>} : vector<2x8x32xf32>, vector<2x32x32xf32>, vector<2x8x32xf32> -> vector<2x8x32xf32>
    "tpu.trace_stop"() : () -> ()
    %106 = vector.shape_cast %105 : vector<2x8x32xf32> to vector<16x32xf32>
    %cst_38 = arith.constant dense<0.000000e+00> : vector<16x96xf32>
    %107 = tpu.matmul %106, %18, %cst_38 {dimension_numbers = #tpu.dot_dimension_numbers<[1], [0], [0], [1], [0, 0, 1, 1], [], []>} : vector<16x32xf32>, vector<32x96xf32>, vector<16x96xf32> -> vector<16x96xf32>
    %108 = vector.broadcast %9 : vector<1x96xf32> to vector<16x96xf32>
    %109 = arith.addf %107, %108 : vector<16x96xf32>
    %cst_39 = arith.constant dense<0.000000e+00> : vector<16x96xf32>
    %110 = tpu.matmul %60, %20, %cst_39 {dimension_numbers = #tpu.dot_dimension_numbers<[1], [0], [0], [1], [0, 0, 1, 1], [], []>} : vector<16x32xf32>, vector<32x96xf32>, vector<16x96xf32> -> vector<16x96xf32>
    %111 = vector.broadcast %10 : vector<1x96xf32> to vector<16x96xf32>
    %112 = arith.addf %110, %111 : vector<16x96xf32>
    %113 = vector.extract_strided_slice %109 {offsets = [0, 0], sizes = [16, 32], strides = [1, 1]} : vector<16x96xf32> to vector<16x32xf32>
    %114 = vector.extract_strided_slice %112 {offsets = [0, 0], sizes = [16, 32], strides = [1, 1]} : vector<16x96xf32> to vector<16x32xf32>
    %115 = arith.addf %113, %114 : vector<16x32xf32>
    %116 = arith.negf %115 : vector<16x32xf32>
    %117 = math.exp %116 : vector<16x32xf32>
    %cst_40 = arith.constant 1.000000e+00 : f32
    %118 = vector.broadcast %cst_40 : f32 to vector<16x32xf32>
    %119 = arith.addf %118, %117 : vector<16x32xf32>
    %120 = arith.divf %118, %119 : vector<16x32xf32>
    %121 = vector.extract_strided_slice %109 {offsets = [0, 32], sizes = [16, 32], strides = [1, 1]} : vector<16x96xf32> to vector<16x32xf32>
    %122 = vector.extract_strided_slice %112 {offsets = [0, 32], sizes = [16, 32], strides = [1, 1]} : vector<16x96xf32> to vector<16x32xf32>
    %123 = arith.addf %121, %122 : vector<16x32xf32>
    %124 = arith.negf %123 : vector<16x32xf32>
    %125 = math.exp %124 : vector<16x32xf32>
    %cst_41 = arith.constant 1.000000e+00 : f32
    %126 = vector.broadcast %cst_41 : f32 to vector<16x32xf32>
    %127 = arith.addf %126, %125 : vector<16x32xf32>
    %128 = arith.divf %126, %127 : vector<16x32xf32>
    %129 = vector.extract_strided_slice %109 {offsets = [0, 64], sizes = [16, 32], strides = [1, 1]} : vector<16x96xf32> to vector<16x32xf32>
    %130 = vector.extract_strided_slice %112 {offsets = [0, 64], sizes = [16, 32], strides = [1, 1]} : vector<16x96xf32> to vector<16x32xf32>
    %131 = arith.mulf %120, %130 : vector<16x32xf32>
    %132 = arith.addf %129, %131 : vector<16x32xf32>
    %133 = math.tanh %132 : vector<16x32xf32>
    %cst_42 = arith.constant 1.000000e+00 : f32
    %134 = vector.broadcast %cst_42 : f32 to vector<16x32xf32>
    %135 = arith.subf %134, %128 : vector<16x32xf32>
    %136 = arith.mulf %135, %133 : vector<16x32xf32>
    %137 = arith.mulf %128, %60 : vector<16x32xf32>
    %138 = arith.addf %136, %137 : vector<16x32xf32>
    %cst_43 = arith.constant dense<0.000000e+00> : vector<16xf32>
    %139 = vector.multi_reduction <add>, %138, %cst_43 [1] : vector<16x32xf32> to vector<16xf32>
    %140 = vector.shape_cast %139 : vector<16xf32> to vector<16x1xf32>
    %cst_44 = arith.constant 3.200000e+01 : f32
    %141 = vector.broadcast %cst_44 : f32 to vector<16x1xf32>
    %142 = arith.divf %140, %141 : vector<16x1xf32>
    %143 = vector.broadcast %142 : vector<16x1xf32> to vector<16x32xf32>
    %144 = arith.subf %138, %143 : vector<16x32xf32>
    %145 = arith.mulf %144, %144 : vector<16x32xf32>
    %cst_45 = arith.constant dense<0.000000e+00> : vector<16xf32>
    %146 = vector.multi_reduction <add>, %145, %cst_45 [1] : vector<16x32xf32> to vector<16xf32>
    %147 = vector.shape_cast %146 : vector<16xf32> to vector<16x1xf32>
    %cst_46 = arith.constant 3.200000e+01 : f32
    %148 = vector.broadcast %cst_46 : f32 to vector<16x1xf32>
    %149 = arith.divf %147, %148 : vector<16x1xf32>
    %150 = vector.broadcast %142 : vector<16x1xf32> to vector<16x32xf32>
    %151 = arith.subf %138, %150 : vector<16x32xf32>
    %cst_47 = arith.constant 9.99999974E-6 : f32
    %152 = vector.broadcast %cst_47 : f32 to vector<16x1xf32>
    %153 = arith.addf %149, %152 : vector<16x1xf32>
    %154 = math.rsqrt %153 : vector<16x1xf32>
    %155 = vector.broadcast %154 : vector<16x1xf32> to vector<16x32xf32>
    %156 = arith.mulf %151, %155 : vector<16x32xf32>
    %157 = vector.broadcast %5 : vector<1x32xf32> to vector<16x32xf32>
    %158 = arith.mulf %156, %157 : vector<16x32xf32>
    %159 = vector.broadcast %6 : vector<1x32xf32> to vector<16x32xf32>
    %160 = arith.addf %158, %159 : vector<16x32xf32>
    %cst_48 = arith.constant dense<0.000000e+00> : vector<16x128xf32>
    %161 = tpu.matmul %160, %16, %cst_48 {dimension_numbers = #tpu.dot_dimension_numbers<[1], [0], [0], [1], [0, 0, 1, 1], [], []>} : vector<16x32xf32>, vector<32x128xf32>, vector<16x128xf32> -> vector<16x128xf32>
    %162 = vector.broadcast %11 : vector<1x128xf32> to vector<16x128xf32>
    %163 = arith.addf %161, %162 : vector<16x128xf32>
    %cst_49 = arith.constant 0.000000e+00 : f32
    %164 = vector.broadcast %cst_49 : f32 to vector<16x128xf32>
    %165 = arith.maximumf %163, %164 : vector<16x128xf32>
    %cst_50 = arith.constant dense<0.000000e+00> : vector<16x32xf32>
    %166 = tpu.matmul %165, %21, %cst_50 {dimension_numbers = #tpu.dot_dimension_numbers<[1], [0], [0], [1], [0, 0, 1, 1], [], []>} : vector<16x128xf32>, vector<128x32xf32>, vector<16x32xf32> -> vector<16x32xf32>
    %167 = arith.addf %138, %166 : vector<16x32xf32>
    %168 = vector.broadcast %12 : vector<1x32xf32> to vector<16x32xf32>
    %169 = arith.addf %167, %168 : vector<16x32xf32>
    %c1_i32 = arith.constant 1 : i32
    %cst_51 = arith.constant dense<0.000000e+00> : vector<16xf32>
    %170 = vector.multi_reduction <add>, %169, %cst_51 [1] : vector<16x32xf32> to vector<16xf32>
    %171 = vector.shape_cast %170 : vector<16xf32> to vector<16x1xf32>
    %cst_52 = arith.constant 3.200000e+01 : f32
    %172 = vector.broadcast %cst_52 : f32 to vector<16x1xf32>
    %173 = arith.divf %171, %172 : vector<16x1xf32>
    %174 = vector.broadcast %173 : vector<16x1xf32> to vector<16x32xf32>
    %175 = arith.subf %169, %174 : vector<16x32xf32>
    %176 = arith.mulf %175, %175 : vector<16x32xf32>
    %cst_53 = arith.constant dense<0.000000e+00> : vector<16xf32>
    %177 = vector.multi_reduction <add>, %176, %cst_53 [1] : vector<16x32xf32> to vector<16xf32>
    %178 = vector.shape_cast %177 : vector<16xf32> to vector<16x1xf32>
    %cst_54 = arith.constant 3.200000e+01 : f32
    %179 = vector.broadcast %cst_54 : f32 to vector<16x1xf32>
    %180 = arith.divf %178, %179 : vector<16x1xf32>
    %181 = vector.broadcast %173 : vector<16x1xf32> to vector<16x32xf32>
    %182 = arith.subf %169, %181 : vector<16x32xf32>
    %cst_55 = arith.constant 9.99999974E-6 : f32
    %183 = vector.broadcast %cst_55 : f32 to vector<16x1xf32>
    %184 = arith.addf %180, %183 : vector<16x1xf32>
    %185 = math.rsqrt %184 : vector<16x1xf32>
    %186 = vector.broadcast %185 : vector<16x1xf32> to vector<16x32xf32>
    %187 = arith.mulf %182, %186 : vector<16x32xf32>
    %188 = vector.broadcast %3 : vector<1x32xf32> to vector<16x32xf32>
    %189 = arith.mulf %187, %188 : vector<16x32xf32>
    %190 = vector.broadcast %4 : vector<1x32xf32> to vector<16x32xf32>
    %191 = arith.addf %189, %190 : vector<16x32xf32>
    %cst_56 = arith.constant dense<0.000000e+00> : vector<16x32xf32>
    %192 = tpu.matmul %191, %15, %cst_56 {dimension_numbers = #tpu.dot_dimension_numbers<[1], [0], [0], [1], [0, 0, 1, 1], [], []>} : vector<16x32xf32>, vector<32x32xf32>, vector<16x32xf32> -> vector<16x32xf32>
    %193 = vector.broadcast %8 : vector<1x32xf32> to vector<16x32xf32>
    %194 = arith.addf %192, %193 : vector<16x32xf32>
    %195 = vector.shape_cast %194 : vector<16x32xf32> to vector<2x8x32xf32>
    "tpu.trace_start"() <{level = 10 : i32, message = "bsd,bdn->bsn"}> : () -> ()
    %cst_57 = arith.constant dense<0.000000e+00> : vector<2x8x32xf32>
    %196 = tpu.matmul %195, %56, %cst_57 {dimension_numbers = #tpu.dot_dimension_numbers<[2], [1], [1], [2], [0, 0, 0, 1, 1, 2], [0], [0]>} : vector<2x8x32xf32>, vector<2x32x32xf32>, vector<2x8x32xf32> -> vector<2x8x32xf32>
    %cst_58 = arith.constant -1.000000e+30 : f32
    "tpu.trace_stop"() : () -> ()
    %197 = vector.broadcast %cst_58 : f32 to vector<2x8x32xf32>
    %198 = arith.select %26, %197, %196 : vector<2x8x32xi1>, vector<2x8x32xf32>
    %cst_59 = arith.constant dense<0xFF800000> : vector<2x32xf32>
    %199 = vector.multi_reduction <maximumf>, %198, %cst_59 [1] : vector<2x8x32xf32> to vector<2x32xf32>
    %200 = vector.shape_cast %199 : vector<2x32xf32> to vector<2x1x32xf32>
    %201 = vector.broadcast %200 : vector<2x1x32xf32> to vector<2x8x32xf32>
    %202 = arith.subf %198, %201 : vector<2x8x32xf32>
    %203 = math.exp %202 : vector<2x8x32xf32>
    %cst_60 = arith.constant dense<0.000000e+00> : vector<2x32xf32>
    %204 = vector.multi_reduction <add>, %203, %cst_60 [1] : vector<2x8x32xf32> to vector<2x32xf32>
    %205 = vector.shape_cast %204 : vector<2x32xf32> to vector<2x1x32xf32>
    %206 = vector.broadcast %205 : vector<2x1x32xf32> to vector<2x8x32xf32>
    %207 = arith.divf %203, %206 : vector<2x8x32xf32>
    %cst_61 = arith.constant 9.99999993E-9 : f32
    %208 = vector.broadcast %cst_61 : f32 to vector<2x8x32xf32>
    %209 = arith.addf %207, %208 : vector<2x8x32xf32>
    %cst_62 = arith.constant dense<0.000000e+00> : vector<2x8xf32>
    %210 = vector.multi_reduction <add>, %209, %cst_62 [2] : vector<2x8x32xf32> to vector<2x8xf32>
    %211 = vector.shape_cast %210 : vector<2x8xf32> to vector<2x8x1xf32>
    %212 = vector.broadcast %211 : vector<2x8x1xf32> to vector<2x8x32xf32>
    %213 = arith.divf %209, %212 : vector<2x8x32xf32>
    "tpu.trace_start"() <{level = 10 : i32, message = "bsn,bnd->bsd"}> : () -> ()
    %cst_63 = arith.constant dense<0.000000e+00> : vector<2x8x32xf32>
    %214 = tpu.matmul %213, %58, %cst_63 {dimension_numbers = #tpu.dot_dimension_numbers<[2], [1], [1], [2], [0, 0, 0, 1, 1, 2], [0], [0]>} : vector<2x8x32xf32>, vector<2x32x32xf32>, vector<2x8x32xf32> -> vector<2x8x32xf32>
    "tpu.trace_stop"() : () -> ()
    %215 = vector.shape_cast %214 : vector<2x8x32xf32> to vector<16x32xf32>
    %cst_64 = arith.constant dense<0.000000e+00> : vector<16x96xf32>
    %216 = tpu.matmul %215, %18, %cst_64 {dimension_numbers = #tpu.dot_dimension_numbers<[1], [0], [0], [1], [0, 0, 1, 1], [], []>} : vector<16x32xf32>, vector<32x96xf32>, vector<16x96xf32> -> vector<16x96xf32>
    %217 = vector.broadcast %9 : vector<1x96xf32> to vector<16x96xf32>
    %218 = arith.addf %216, %217 : vector<16x96xf32>
    %cst_65 = arith.constant dense<0.000000e+00> : vector<16x96xf32>
    %219 = tpu.matmul %169, %20, %cst_65 {dimension_numbers = #tpu.dot_dimension_numbers<[1], [0], [0], [1], [0, 0, 1, 1], [], []>} : vector<16x32xf32>, vector<32x96xf32>, vector<16x96xf32> -> vector<16x96xf32>
    %220 = vector.broadcast %10 : vector<1x96xf32> to vector<16x96xf32>
    %221 = arith.addf %219, %220 : vector<16x96xf32>
    %222 = vector.extract_strided_slice %218 {offsets = [0, 0], sizes = [16, 32], strides = [1, 1]} : vector<16x96xf32> to vector<16x32xf32>
    %223 = vector.extract_strided_slice %221 {offsets = [0, 0], sizes = [16, 32], strides = [1, 1]} : vector<16x96xf32> to vector<16x32xf32>
    %224 = arith.addf %222, %223 : vector<16x32xf32>
    %225 = arith.negf %224 : vector<16x32xf32>
    %226 = math.exp %225 : vector<16x32xf32>
    %cst_66 = arith.constant 1.000000e+00 : f32
    %227 = vector.broadcast %cst_66 : f32 to vector<16x32xf32>
    %228 = arith.addf %227, %226 : vector<16x32xf32>
    %229 = arith.divf %227, %228 : vector<16x32xf32>
    %230 = vector.extract_strided_slice %218 {offsets = [0, 32], sizes = [16, 32], strides = [1, 1]} : vector<16x96xf32> to vector<16x32xf32>
    %231 = vector.extract_strided_slice %221 {offsets = [0, 32], sizes = [16, 32], strides = [1, 1]} : vector<16x96xf32> to vector<16x32xf32>
    %232 = arith.addf %230, %231 : vector<16x32xf32>
    %233 = arith.negf %232 : vector<16x32xf32>
    %234 = math.exp %233 : vector<16x32xf32>
    %cst_67 = arith.constant 1.000000e+00 : f32
    %235 = vector.broadcast %cst_67 : f32 to vector<16x32xf32>
    %236 = arith.addf %235, %234 : vector<16x32xf32>
    %237 = arith.divf %235, %236 : vector<16x32xf32>
    %238 = vector.extract_strided_slice %218 {offsets = [0, 64], sizes = [16, 32], strides = [1, 1]} : vector<16x96xf32> to vector<16x32xf32>
    %239 = vector.extract_strided_slice %221 {offsets = [0, 64], sizes = [16, 32], strides = [1, 1]} : vector<16x96xf32> to vector<16x32xf32>
    %240 = arith.mulf %229, %239 : vector<16x32xf32>
    %241 = arith.addf %238, %240 : vector<16x32xf32>
    %242 = math.tanh %241 : vector<16x32xf32>
    %cst_68 = arith.constant 1.000000e+00 : f32
    %243 = vector.broadcast %cst_68 : f32 to vector<16x32xf32>
    %244 = arith.subf %243, %237 : vector<16x32xf32>
    %245 = arith.mulf %244, %242 : vector<16x32xf32>
    %246 = arith.mulf %237, %169 : vector<16x32xf32>
    %247 = arith.addf %245, %246 : vector<16x32xf32>
    %cst_69 = arith.constant dense<0.000000e+00> : vector<16xf32>
    %248 = vector.multi_reduction <add>, %247, %cst_69 [1] : vector<16x32xf32> to vector<16xf32>
    %249 = vector.shape_cast %248 : vector<16xf32> to vector<16x1xf32>
    %cst_70 = arith.constant 3.200000e+01 : f32
    %250 = vector.broadcast %cst_70 : f32 to vector<16x1xf32>
    %251 = arith.divf %249, %250 : vector<16x1xf32>
    %252 = vector.broadcast %251 : vector<16x1xf32> to vector<16x32xf32>
    %253 = arith.subf %247, %252 : vector<16x32xf32>
    %254 = arith.mulf %253, %253 : vector<16x32xf32>
    %cst_71 = arith.constant dense<0.000000e+00> : vector<16xf32>
    %255 = vector.multi_reduction <add>, %254, %cst_71 [1] : vector<16x32xf32> to vector<16xf32>
    %256 = vector.shape_cast %255 : vector<16xf32> to vector<16x1xf32>
    %cst_72 = arith.constant 3.200000e+01 : f32
    %257 = vector.broadcast %cst_72 : f32 to vector<16x1xf32>
    %258 = arith.divf %256, %257 : vector<16x1xf32>
    %259 = vector.broadcast %251 : vector<16x1xf32> to vector<16x32xf32>
    %260 = arith.subf %247, %259 : vector<16x32xf32>
    %cst_73 = arith.constant 9.99999974E-6 : f32
    %261 = vector.broadcast %cst_73 : f32 to vector<16x1xf32>
    %262 = arith.addf %258, %261 : vector<16x1xf32>
    %263 = math.rsqrt %262 : vector<16x1xf32>
    %264 = vector.broadcast %263 : vector<16x1xf32> to vector<16x32xf32>
    %265 = arith.mulf %260, %264 : vector<16x32xf32>
    %266 = vector.broadcast %5 : vector<1x32xf32> to vector<16x32xf32>
    %267 = arith.mulf %265, %266 : vector<16x32xf32>
    %268 = vector.broadcast %6 : vector<1x32xf32> to vector<16x32xf32>
    %269 = arith.addf %267, %268 : vector<16x32xf32>
    %cst_74 = arith.constant dense<0.000000e+00> : vector<16x128xf32>
    %270 = tpu.matmul %269, %16, %cst_74 {dimension_numbers = #tpu.dot_dimension_numbers<[1], [0], [0], [1], [0, 0, 1, 1], [], []>} : vector<16x32xf32>, vector<32x128xf32>, vector<16x128xf32> -> vector<16x128xf32>
    %271 = vector.broadcast %11 : vector<1x128xf32> to vector<16x128xf32>
    %272 = arith.addf %270, %271 : vector<16x128xf32>
    %cst_75 = arith.constant 0.000000e+00 : f32
    %273 = vector.broadcast %cst_75 : f32 to vector<16x128xf32>
    %274 = arith.maximumf %272, %273 : vector<16x128xf32>
    %cst_76 = arith.constant dense<0.000000e+00> : vector<16x32xf32>
    %275 = tpu.matmul %274, %21, %cst_76 {dimension_numbers = #tpu.dot_dimension_numbers<[1], [0], [0], [1], [0, 0, 1, 1], [], []>} : vector<16x128xf32>, vector<128x32xf32>, vector<16x32xf32> -> vector<16x32xf32>
    %276 = arith.addf %247, %275 : vector<16x32xf32>
    %277 = vector.broadcast %12 : vector<1x32xf32> to vector<16x32xf32>
    %278 = arith.addf %276, %277 : vector<16x32xf32>
    %c2_i32 = arith.constant 2 : i32
    %cst_77 = arith.constant dense<0.000000e+00> : vector<16xf32>
    %279 = vector.multi_reduction <add>, %278, %cst_77 [1] : vector<16x32xf32> to vector<16xf32>
    %280 = vector.shape_cast %279 : vector<16xf32> to vector<16x1xf32>
    %cst_78 = arith.constant 3.200000e+01 : f32
    %281 = vector.broadcast %cst_78 : f32 to vector<16x1xf32>
    %282 = arith.divf %280, %281 : vector<16x1xf32>
    %283 = vector.broadcast %282 : vector<16x1xf32> to vector<16x32xf32>
    %284 = arith.subf %278, %283 : vector<16x32xf32>
    %285 = arith.mulf %284, %284 : vector<16x32xf32>
    %cst_79 = arith.constant dense<0.000000e+00> : vector<16xf32>
    %286 = vector.multi_reduction <add>, %285, %cst_79 [1] : vector<16x32xf32> to vector<16xf32>
    %287 = vector.shape_cast %286 : vector<16xf32> to vector<16x1xf32>
    %cst_80 = arith.constant 3.200000e+01 : f32
    %288 = vector.broadcast %cst_80 : f32 to vector<16x1xf32>
    %289 = arith.divf %287, %288 : vector<16x1xf32>
    %290 = vector.broadcast %282 : vector<16x1xf32> to vector<16x32xf32>
    %291 = arith.subf %278, %290 : vector<16x32xf32>
    %cst_81 = arith.constant 9.99999974E-6 : f32
    %292 = vector.broadcast %cst_81 : f32 to vector<16x1xf32>
    %293 = arith.addf %289, %292 : vector<16x1xf32>
    %294 = math.rsqrt %293 : vector<16x1xf32>
    %295 = vector.broadcast %294 : vector<16x1xf32> to vector<16x32xf32>
    %296 = arith.mulf %291, %295 : vector<16x32xf32>
    %297 = vector.broadcast %3 : vector<1x32xf32> to vector<16x32xf32>
    %298 = arith.mulf %296, %297 : vector<16x32xf32>
    %299 = vector.broadcast %4 : vector<1x32xf32> to vector<16x32xf32>
    %300 = arith.addf %298, %299 : vector<16x32xf32>
    %cst_82 = arith.constant dense<0.000000e+00> : vector<16x32xf32>
    %301 = tpu.matmul %300, %15, %cst_82 {dimension_numbers = #tpu.dot_dimension_numbers<[1], [0], [0], [1], [0, 0, 1, 1], [], []>} : vector<16x32xf32>, vector<32x32xf32>, vector<16x32xf32> -> vector<16x32xf32>
    %302 = vector.broadcast %8 : vector<1x32xf32> to vector<16x32xf32>
    %303 = arith.addf %301, %302 : vector<16x32xf32>
    %304 = vector.shape_cast %303 : vector<16x32xf32> to vector<2x8x32xf32>
    "tpu.trace_start"() <{level = 10 : i32, message = "bsd,bdn->bsn"}> : () -> ()
    %cst_83 = arith.constant dense<0.000000e+00> : vector<2x8x32xf32>
    %305 = tpu.matmul %304, %56, %cst_83 {dimension_numbers = #tpu.dot_dimension_numbers<[2], [1], [1], [2], [0, 0, 0, 1, 1, 2], [0], [0]>} : vector<2x8x32xf32>, vector<2x32x32xf32>, vector<2x8x32xf32> -> vector<2x8x32xf32>
    %cst_84 = arith.constant -1.000000e+30 : f32
    "tpu.trace_stop"() : () -> ()
    %306 = vector.broadcast %cst_84 : f32 to vector<2x8x32xf32>
    %307 = arith.select %26, %306, %305 : vector<2x8x32xi1>, vector<2x8x32xf32>
    %cst_85 = arith.constant dense<0xFF800000> : vector<2x32xf32>
    %308 = vector.multi_reduction <maximumf>, %307, %cst_85 [1] : vector<2x8x32xf32> to vector<2x32xf32>
    %309 = vector.shape_cast %308 : vector<2x32xf32> to vector<2x1x32xf32>
    %310 = vector.broadcast %309 : vector<2x1x32xf32> to vector<2x8x32xf32>
    %311 = arith.subf %307, %310 : vector<2x8x32xf32>
    %312 = math.exp %311 : vector<2x8x32xf32>
    %cst_86 = arith.constant dense<0.000000e+00> : vector<2x32xf32>
    %313 = vector.multi_reduction <add>, %312, %cst_86 [1] : vector<2x8x32xf32> to vector<2x32xf32>
    %314 = vector.shape_cast %313 : vector<2x32xf32> to vector<2x1x32xf32>
    %315 = vector.broadcast %314 : vector<2x1x32xf32> to vector<2x8x32xf32>
    %316 = arith.divf %312, %315 : vector<2x8x32xf32>
    %cst_87 = arith.constant 9.99999993E-9 : f32
    %317 = vector.broadcast %cst_87 : f32 to vector<2x8x32xf32>
    %318 = arith.addf %316, %317 : vector<2x8x32xf32>
    %cst_88 = arith.constant dense<0.000000e+00> : vector<2x8xf32>
    %319 = vector.multi_reduction <add>, %318, %cst_88 [2] : vector<2x8x32xf32> to vector<2x8xf32>
    %320 = vector.shape_cast %319 : vector<2x8xf32> to vector<2x8x1xf32>
    %321 = vector.broadcast %320 : vector<2x8x1xf32> to vector<2x8x32xf32>
    %322 = arith.divf %318, %321 : vector<2x8x32xf32>
    "tpu.trace_start"() <{level = 10 : i32, message = "bsn,bnd->bsd"}> : () -> ()
    %cst_89 = arith.constant dense<0.000000e+00> : vector<2x8x32xf32>
    %323 = tpu.matmul %322, %58, %cst_89 {dimension_numbers = #tpu.dot_dimension_numbers<[2], [1], [1], [2], [0, 0, 0, 1, 1, 2], [0], [0]>} : vector<2x8x32xf32>, vector<2x32x32xf32>, vector<2x8x32xf32> -> vector<2x8x32xf32>
    "tpu.trace_stop"() : () -> ()
    %324 = vector.shape_cast %323 : vector<2x8x32xf32> to vector<16x32xf32>
    %cst_90 = arith.constant dense<0.000000e+00> : vector<16x96xf32>
    %325 = tpu.matmul %324, %18, %cst_90 {dimension_numbers = #tpu.dot_dimension_numbers<[1], [0], [0], [1], [0, 0, 1, 1], [], []>} : vector<16x32xf32>, vector<32x96xf32>, vector<16x96xf32> -> vector<16x96xf32>
    %326 = vector.broadcast %9 : vector<1x96xf32> to vector<16x96xf32>
    %327 = arith.addf %325, %326 : vector<16x96xf32>
    %cst_91 = arith.constant dense<0.000000e+00> : vector<16x96xf32>
    %328 = tpu.matmul %278, %20, %cst_91 {dimension_numbers = #tpu.dot_dimension_numbers<[1], [0], [0], [1], [0, 0, 1, 1], [], []>} : vector<16x32xf32>, vector<32x96xf32>, vector<16x96xf32> -> vector<16x96xf32>
    %329 = vector.broadcast %10 : vector<1x96xf32> to vector<16x96xf32>
    %330 = arith.addf %328, %329 : vector<16x96xf32>
    %331 = vector.extract_strided_slice %327 {offsets = [0, 0], sizes = [16, 32], strides = [1, 1]} : vector<16x96xf32> to vector<16x32xf32>
    %332 = vector.extract_strided_slice %330 {offsets = [0, 0], sizes = [16, 32], strides = [1, 1]} : vector<16x96xf32> to vector<16x32xf32>
    %333 = arith.addf %331, %332 : vector<16x32xf32>
    %334 = arith.negf %333 : vector<16x32xf32>
    %335 = math.exp %334 : vector<16x32xf32>
    %cst_92 = arith.constant 1.000000e+00 : f32
    %336 = vector.broadcast %cst_92 : f32 to vector<16x32xf32>
    %337 = arith.addf %336, %335 : vector<16x32xf32>
    %338 = arith.divf %336, %337 : vector<16x32xf32>
    %339 = vector.extract_strided_slice %327 {offsets = [0, 32], sizes = [16, 32], strides = [1, 1]} : vector<16x96xf32> to vector<16x32xf32>
    %340 = vector.extract_strided_slice %330 {offsets = [0, 32], sizes = [16, 32], strides = [1, 1]} : vector<16x96xf32> to vector<16x32xf32>
    %341 = arith.addf %339, %340 : vector<16x32xf32>
    %342 = arith.negf %341 : vector<16x32xf32>
    %343 = math.exp %342 : vector<16x32xf32>
    %cst_93 = arith.constant 1.000000e+00 : f32
    %344 = vector.broadcast %cst_93 : f32 to vector<16x32xf32>
    %345 = arith.addf %344, %343 : vector<16x32xf32>
    %346 = arith.divf %344, %345 : vector<16x32xf32>
    %347 = vector.extract_strided_slice %327 {offsets = [0, 64], sizes = [16, 32], strides = [1, 1]} : vector<16x96xf32> to vector<16x32xf32>
    %348 = vector.extract_strided_slice %330 {offsets = [0, 64], sizes = [16, 32], strides = [1, 1]} : vector<16x96xf32> to vector<16x32xf32>
    %349 = arith.mulf %338, %348 : vector<16x32xf32>
    %350 = arith.addf %347, %349 : vector<16x32xf32>
    %351 = math.tanh %350 : vector<16x32xf32>
    %cst_94 = arith.constant 1.000000e+00 : f32
    %352 = vector.broadcast %cst_94 : f32 to vector<16x32xf32>
    %353 = arith.subf %352, %346 : vector<16x32xf32>
    %354 = arith.mulf %353, %351 : vector<16x32xf32>
    %355 = arith.mulf %346, %278 : vector<16x32xf32>
    %356 = arith.addf %354, %355 : vector<16x32xf32>
    %cst_95 = arith.constant dense<0.000000e+00> : vector<16xf32>
    %357 = vector.multi_reduction <add>, %356, %cst_95 [1] : vector<16x32xf32> to vector<16xf32>
    %358 = vector.shape_cast %357 : vector<16xf32> to vector<16x1xf32>
    %cst_96 = arith.constant 3.200000e+01 : f32
    %359 = vector.broadcast %cst_96 : f32 to vector<16x1xf32>
    %360 = arith.divf %358, %359 : vector<16x1xf32>
    %361 = vector.broadcast %360 : vector<16x1xf32> to vector<16x32xf32>
    %362 = arith.subf %356, %361 : vector<16x32xf32>
    %363 = arith.mulf %362, %362 : vector<16x32xf32>
    %cst_97 = arith.constant dense<0.000000e+00> : vector<16xf32>
    %364 = vector.multi_reduction <add>, %363, %cst_97 [1] : vector<16x32xf32> to vector<16xf32>
    %365 = vector.shape_cast %364 : vector<16xf32> to vector<16x1xf32>
    %cst_98 = arith.constant 3.200000e+01 : f32
    %366 = vector.broadcast %cst_98 : f32 to vector<16x1xf32>
    %367 = arith.divf %365, %366 : vector<16x1xf32>
    %368 = vector.broadcast %360 : vector<16x1xf32> to vector<16x32xf32>
    %369 = arith.subf %356, %368 : vector<16x32xf32>
    %cst_99 = arith.constant 9.99999974E-6 : f32
    %370 = vector.broadcast %cst_99 : f32 to vector<16x1xf32>
    %371 = arith.addf %367, %370 : vector<16x1xf32>
    %372 = math.rsqrt %371 : vector<16x1xf32>
    %373 = vector.broadcast %372 : vector<16x1xf32> to vector<16x32xf32>
    %374 = arith.mulf %369, %373 : vector<16x32xf32>
    %375 = vector.broadcast %5 : vector<1x32xf32> to vector<16x32xf32>
    %376 = arith.mulf %374, %375 : vector<16x32xf32>
    %377 = vector.broadcast %6 : vector<1x32xf32> to vector<16x32xf32>
    %378 = arith.addf %376, %377 : vector<16x32xf32>
    %cst_100 = arith.constant dense<0.000000e+00> : vector<16x128xf32>
    %379 = tpu.matmul %378, %16, %cst_100 {dimension_numbers = #tpu.dot_dimension_numbers<[1], [0], [0], [1], [0, 0, 1, 1], [], []>} : vector<16x32xf32>, vector<32x128xf32>, vector<16x128xf32> -> vector<16x128xf32>
    %380 = vector.broadcast %11 : vector<1x128xf32> to vector<16x128xf32>
    %381 = arith.addf %379, %380 : vector<16x128xf32>
    %cst_101 = arith.constant 0.000000e+00 : f32
    %382 = vector.broadcast %cst_101 : f32 to vector<16x128xf32>
    %383 = arith.maximumf %381, %382 : vector<16x128xf32>
    %cst_102 = arith.constant dense<0.000000e+00> : vector<16x32xf32>
    %384 = tpu.matmul %383, %21, %cst_102 {dimension_numbers = #tpu.dot_dimension_numbers<[1], [0], [0], [1], [0, 0, 1, 1], [], []>} : vector<16x128xf32>, vector<128x32xf32>, vector<16x32xf32> -> vector<16x32xf32>
    %385 = arith.addf %356, %384 : vector<16x32xf32>
    %386 = vector.broadcast %12 : vector<1x32xf32> to vector<16x32xf32>
    %387 = arith.addf %385, %386 : vector<16x32xf32>
    %388 = vector.shape_cast %387 : vector<16x32xf32> to vector<2x8x32xf32>
    %c0_103 = arith.constant 0 : index
    %c0_104 = arith.constant 0 : index
    %c0_105 = arith.constant 0 : index
    %389 = vector.load %arg8[%c0_103, %c0_104, %c0_105] : memref<2x8x32xf32, #tpu.memory_space<vmem>>, vector<2x8x32xf32>
    tpu.vector_store %arg8[%c0_103, %c0_104, %c0_105], %388 {strides = array<i32>} : memref<2x8x32xf32, #tpu.memory_space<vmem>>, vector<2x8x32xf32>,
    return
  }
  func.func @transform_0(%arg0: i32) -> (i32, i32, i32) {
    %c0_i32 = arith.constant 0 : i32
    %c0_i32_0 = arith.constant 0 : i32
    %c0_i32_1 = arith.constant 0 : i32
    return %arg0, %c0_i32, %c0_i32_0 : i32, i32, i32
  }
  func.func @transform_1(%arg0: i32) -> (i32, i32, i32) {
    %c0_i32 = arith.constant 0 : i32
    %c0_i32_0 = arith.constant 0 : i32
    %c0_i32_1 = arith.constant 0 : i32
    return %arg0, %c0_i32, %c0_i32_0 : i32, i32, i32
  }
  func.func @transform_2(%arg0: i32) -> (i32, i32, i32) {
    %c0_i32 = arith.constant 0 : i32
    %c0_i32_0 = arith.constant 0 : i32
    %c0_i32_1 = arith.constant 0 : i32
    return %arg0, %c0_i32, %c0_i32_0 : i32, i32, i32
  }
  func.func @transform_3(%arg0: i32) -> (i32, i32) {
    %c0_i32 = arith.constant 0 : i32
    %c0_i32_0 = arith.constant 0 : i32
    %c0_i32_1 = arith.constant 0 : i32
    return %c0_i32, %c0_i32_0 : i32, i32
  }
  func.func @transform_4(%arg0: i32) -> (i32, i32) {
    %c0_i32 = arith.constant 0 : i32
    %c0_i32_0 = arith.constant 0 : i32
    %c0_i32_1 = arith.constant 0 : i32
    return %c0_i32, %c0_i32_0 : i32, i32
  }
  func.func @transform_5(%arg0: i32) -> (i32, i32, i32) {
    %c0_i32 = arith.constant 0 : i32
    %c0_i32_0 = arith.constant 0 : i32
    %c0_i32_1 = arith.constant 0 : i32
    %c0_i32_2 = arith.constant 0 : i32
    return %c0_i32, %c0_i32_0, %c0_i32_1 : i32, i32, i32
  }
  func.func @transform_6(%arg0: i32) -> (i32, i32) {
    %c0_i32 = arith.constant 0 : i32
    %c0_i32_0 = arith.constant 0 : i32
    %c0_i32_1 = arith.constant 0 : i32
    return %c0_i32, %c0_i32_0 : i32, i32
  }
  func.func @transform_7(%arg0: i32) -> (i32, i32, i32) {
    %c0_i32 = arith.constant 0 : i32
    %c0_i32_0 = arith.constant 0 : i32
    %c0_i32_1 = arith.constant 0 : i32
    return %arg0, %c0_i32, %c0_i32_0 : i32, i32, i32
  }
}

</mosaic_0001>

<bundles_post_ra>
// kernel: tpu_custom_call.1
= control target key start
LH: loop header
LB: loop body
LE: loop exit
PB: predicated region body
PF: predicated region fallthrough
CT: control target
= control target key end

     0   :  { %s5925_s0 = inlined_call_operand.hbm [shape: f32[8,32,32], index: 0, kind: input, shape index: {}]   ;;  %s5926_s1 = inlined_call_operand.vmem [shape: f32[8,8,32], index: 1, kind: input, shape index: {}]   ;;  %s5927_s2 = inlined_call_operand.vmem [shape: f32[8,1,32], index: 2, kind: input, shape index: {}]   ;;  %s5928_s3 = inlined_call_operand.vmem [shape: f32[12,128], index: 3, kind: input, shape index: {}]   ;;  %s5929_s4 = inlined_call_operand.vmem [shape: f32[32,224], index: 4, kind: input, shape index: {}]   ;;  %s5930_s5 = inlined_call_operand.hbm [shape: f32[2,32,96], index: 5, kind: input, shape index: {}]   ;;  %s5931_s6 = inlined_call_operand.vmem [shape: f32[128,32], index: 6, kind: input, shape index: {}]   ;;  %s5932_s7 = inlined_call_operand.hbm [shape: f32[8,8,32], index: 7, kind: output, shape index: {}]  }
   0x1   :  { %5967 = sst [smem:[#allocation27_spill]] %s5930_s5 }
   0x2   :  { %12 = vsyncpa [#allocation3], 0 }
   0x3   :  { %14 = vsyncpa [#allocation3 + $0x1], 0 }
   0x4   :  { %15 = vsyncpa [#allocation6], 0 }
   0x5   :  { %16 = vsyncpa [#allocation4], 0 }
   0x6   :  { %18 = vsyncpa [#allocation4 + $0x1], 0  ;;  %s4729_s24 = smov 0   ;;  %s4731_s25 = smov 0  }
   0x7   :  { %s4733_s26 = smov 0   ;;  %s4735_s27 = smov 0  }
   0x8 LB: > { %s4750_s28 = sadd.s32 4294967295, %s4674_s27   ;;  %s3665_s29 = sadd.s32 4294967294, %s4674_s27   ;;  %s4674_s27 = sphi %s4735_s27, %s6026_s27   ;;  %s4670_s26 = sphi %s4733_s26, %s6025_s26   ;;  %s4666_s25 = sphi %s4731_s25, %s6024_s25   ;;  %s4662_s24 = sphi %s4729_s24, %s6023_s24  }
   0x9   : > { %p44_p0 = scmp.ne.s32.totalorder %s4666_s25, %s4662_s24  ;;  %p5934_p1 = scmp.eq.s32.totalorder %s4750_s28, 0 }
   0xa   : > { %p210_p3 = scmp.eq.s32.totalorder %s3665_s29, 3  ;;  %p3666_p5 = scmp.ge.s32.totalorder %s4674_s27, 1 }
   0xb   : > { %p4759_p4 = por %p5934_p1, %p44_p0  ;;  %p217_p7 = scmp.lt.s32.totalorder %s4674_s27, 5 }
   0xc   : > { %p4764_p6 = por %p210_p3, %p44_p0  ;;  %s4676_s10 = smov [#allocation5]  }
   0xd   : > { %s5968_s30 = scalar_select %p4759_p4, 1, 0 }
   0xe   : > { %s5969_s8 = scalar_select %p4764_p6, 1, 0 }
   0xf   : > { %p4769_p8 = pnand %p3666_p5, %p217_p7  ;;  %s235_s11 = sshll.u32 %s4676_s10, 4  ;;  %s236_s11 = int_to_ptr.vmem [resolvable:$true] %s235_s11 }
  0x10   : > { %s4782_s13 = sadd.s32 1, %s4674_s27   ;;  %s31_s14 = sadd.s32 1, %s4670_s26 }
  0x11   : > { %s5970_s9 = scalar_select %p4769_p8, 1, 0 }
  0x12   : > { %p4357_p9 = pneg %p4769_p8  ;;  %s28_s15 = ssub.s32 %s4674_s27, %s4782_s13 }
  0x13   : > { %s4563_s16 = scalar_lea.vmem %s236_s11, 1024  ;;  %p4571_p3 = scmp.lt.s32.totalorder %s236_s11, %s236_s11 }
  0x14   : > { %p4777_p10 = pnand %p4357_p9, %p5934_p1  ;;  %p4564_p12 = scmp.ne.s32.totalorder %s236_s11, %s4563_s16 }
  0x15   : > { %p4572_p5 = scmp.lt.s32.totalorder %s4563_s16, %s4563_s16 }
  0x16   : > { %p4554_p11 = pneg %p4777_p10 }
  0x17   : > { %p4573_p7 = por %p4572_p5, %p4571_p3 }
  0x18   : > { %p4566_p13 = pnand %p4564_p12, %p4554_p11 }
  0x1a   : > { %p4567_p0 = pneg %p4566_p13 }
  0x1c   : > { %p4574_p2 = pnand %p4573_p7, %p4567_p0 }
  0x1e   : > { %4577 = shalt.err (!%p4574_p2)
}
  0x1f   : > { %s5933_s17 = smov 128   ;;  %s5935_s18 = smov 8  }
  0x20   : > { %s5972_s5 = sld [smem:[#allocation27_spill]]  ;;  %p29_p2 = scmp.eq.s32.totalorder %s28_s15, 0 }
  0x21   : > { %p38_p9 = scmp.ne.s32.totalorder %s4670_s26, %s4666_s25  ;;  %p39_p11 = scmp.eq.s32.totalorder %s4674_s27, 0 }
  0x22   : > { %p4370_p12 = scmp.lt.s32.totalorder %s4674_s27, 4  ;;  %p5973_p0 = scmp.eq.s32.totalorder %s4750_s28, 3 }
  0x23   : > { %s4802_s21 = scalar_select %p29_p2, %s4670_s26, %s31_s14  }
  0x24   : > { %p40_p13 = por %p39_p11, %p38_p9  ;;  %p4806_p3 = por %p5973_p0, %p38_p9 }
  0x25   : > { %s252_s23 = sand.u32 1, %s4670_s26   ;;  %s3760_s29 = sshll.u32 %s4674_s27, 10 }
  0x26   : > { %4360 = dma.hbm_to_vmem [thread:$0]  (!%p4777_p10), %s5972_s5, 1024, %s236_s11, [#allocation6], %s5933_s17, %s5933_s17, %s5935_s18  }
  0x27   : > { %s5974_s22 = scalar_select %p4806_p3, 1, 0 }
  0x28   : > { %s3669_s10 = sshll.u32 %s252_s23, 6  ;;  %s4815_s19 = scalar_lea.hbm %s5925_s0, %s3760_s29 }
  0x29   : > { %s256_s11 = scalar_lea.vmem [#allocation2], %s3669_s10  ;;  %p4817_p10 = pnand %p4370_p12, %p40_p13 }
  0x2a   : > { %s264_s14 = sshll.u32 %s256_s11, 4  ;;  %s4823_s20 = scalar_lea.sflag [#allocation3], %s252_s23  ;;  %s4821_s14 = int_to_ptr.vmem [resolvable:$true] %s264_s14 }
  0x2b   : > { %s4578_s17 = scalar_lea.hbm %s4815_s19, 1024  ;;  %p4580_p7 = pneg %p4817_p10 }
  0x2c   : > { %p4579_p5 = scmp.ne.s32.totalorder %s4815_s19, %s4578_s17  ;;  %s4583_s10 = scalar_lea.hbm %s5925_s0, 4096 }
  0x2d   : > { %p4584_p11 = scmp.lt.s32.totalorder %s4815_s19, %s5925_s0  ;;  %p4585_p12 = scmp.lt.s32.totalorder %s4583_s10, %s4578_s17 }
  0x2e   : > { %p4581_p2 = pnand %p4580_p7, %p4579_p5 }
  0x2f   : > { %p4586_p13 = por %p4585_p12, %p4584_p11 }
  0x30   : > { %p4582_p9 = pneg %p4581_p2 }
  0x32   : > { %p4587_p0 = pnand %p4586_p13, %p4582_p9 }
  0x34   : > { %4590 = shalt.err (!%p4587_p0)
}
  0x35   : > { %s4591_s23 = scalar_lea.vmem %s4821_s14, 1024  ;;  %s4679_s18 = smov [#allocation2]  }
  0x36   : > { %p4592_p1 = scmp.ne.s32.totalorder %s4821_s14, %s4591_s23  ;;  %s4596_s5 = sshll.u32 %s4679_s18, 4  ;;  %s4597_s5 = int_to_ptr.vmem [resolvable:$false] %s4596_s5 }
  0x37   : > { %s4598_s29 = scalar_lea.vmem %s4597_s5, 2048  ;;  %p4599_p2 = scmp.lt.s32.totalorder %s4821_s14, %s4597_s5 }
  0x38   : > { %p4594_p6 = pnand %p4592_p1, %p4580_p7  ;;  %p4600_p3 = scmp.lt.s32.totalorder %s4598_s29, %s4591_s23 }
  0x3a   : > { %p4595_p5 = pneg %p4594_p6  ;;  %p4601_p4 = por %p4600_p3, %p4599_p2 }
  0x3c   : > { %p4602_p8 = pnand %p4601_p4, %p4595_p5 }
  0x3e   : > { %4605 = shalt.err (!%p4602_p8)
}
  0x3f   : > { %s5976_s17 = smov 8   ;;  %s5977_s12 = smov 128  }
  0x40   : > { %4364 = dma.hbm_to_vmem [thread:$0]  (!%p4817_p10), %s4815_s19, 1024, %s4821_s14, %s4823_s20, %s5977_s12, %s5977_s12, %s5976_s17  }
  0x41   : > { %p5978_p1 = scmp.ne.s32.totalorder %s5970_s9, 0 }
  0x43   : > { %293 = sbr.rel (%p5978_p1) target bundleno = 9293 (0x244d), region = 48 }
  0x48   : > { %s4850_s18 = sand.u32 1, %s4666_s25   ;;  %p5979_p4 = scmp.ne.s32.totalorder %s5968_s30, 0 }
  0x49   : > { %s3674_s5 = sshll.u32 %s4850_s18, 6  ;;  %s296_s10 = scalar_lea.sflag [#allocation3], %s4850_s18 }
  0x4a   : > { %s299_s16 = scalar_lea.vmem [#allocation2], %s3674_s5 }
  0x4b   : > { %4649 = dma.done.wait (%p5979_p4), %s296_s10, 1024  }
  0x4c   : > { %4651 = vsyncadd (%p5979_p4), %s296_s10, 4294966272  ;;  %p5980_p6 = scmp.eq.s32.totalorder %s4750_s28, 0 }
  0x4e   : > { %4653 = dma.done.wait (%p5980_p6), [#allocation6], 1024   ;;  %p5981_p8 = pmov %p5980_p6 }
  0x4f   : > { %s3677_s9 = sshll.u32 %s4750_s28, 1  ;;  %vm415_vm0 = vcmask 261120   ;;  %v407_v0 = vld [vmem:[%s299_s16] sm:$0xff]  ;;  %v409_v1 = vld [vmem:[%s299_s16 + $0x10] sm:$0xff]  ;;  %v408_v2 = vld [vmem:[%s299_s16 + $0x8] sm:$0xff]  ;;  %vm4682_vm1 = vmmov 0  }
  0x50   : > { %4655 = vsyncadd (%p5981_p8), [#allocation6], 4294966272  ;;  %p345_p3 = scmp.lt.s32.totalorder %s3677_s9, 7  ;;  %v416_v3 = vsel %vm415_vm0, %v407_v0, 0.0  ;;  %v422_v4 = vsel %vm415_vm0, %v409_v1, 0.0  ;;  %v410_v5 = vld [vmem:[%s299_s16 + $0x18] sm:$0xff] }
  0x51   : > { %417 = vadd.xlane.f32.xlu0 %v416_v3  ;;  %423 = vadd.xlane.f32.xlu1 %v422_v4  ;;  %v419_v6 = vsel %vm415_vm0, %v408_v2, 0.0  ;;  %v425_v7 = vsel %vm415_vm0, %v410_v5, 0.0  ;;  %v411_v8 = vld [vmem:[%s299_s16 + $0x20] sm:$0xff]  ;;  %v412_v9 = vld [vmem:[%s299_s16 + $0x28] sm:$0xff]  ;;  %v413_v12 = vld [vmem:[%s299_s16 + $0x30] sm:$0xff]  ;;  %s4683_s14 = smov 96  }
  0x52   : > { %s6028_s9 = smov (!%p345_p3, %s3677_s9), 7  ;;  %v428_v10 = vsel %vm415_vm0, %v411_v8, 0.0  ;;  %v431_v11 = vsel %vm415_vm0, %v412_v9, 0.0  ;;  %v414_v13 = vld [vmem:[%s299_s16 + $0x38] sm:$0xff]  ;;  %v434_v14 = vsel %vm415_vm0, %v413_v12, 0.0  ;;  %v4888_v20 = vld [vmem:[%s5929_s4 + $0x30] sm:$0xff] }
  0x53   : > { %s3678_s30 = sshll.u32 %s6028_s9, 3  ;;  %v437_v15 = vsel %vm415_vm0, %v414_v13, 0.0  ;;  %3960 = vmatprep.subr.mxu0 %v4888_v20  ;;  %v4894_v21 = vld [vmem:[%s5929_s4 + $0x20] sm:$0xff]  ;;  %v4901_v22 = vld [vmem:[%s5929_s4 + $0x10] sm:$0xff]  ;;  %s4680_s16 = smov 64  }
  0x54   : > { %s348_s15 = scalar_lea.vmem %s5926_s1, %s3678_s30  ;;  %3961 = vmatpush3.msra.mxu0 %v4888_v20  ;;  %v4909_v23 = vld [vmem:[%s5929_s4] sm:$0xff]  ;;  %s353_s11 = scalar_lea.vmem %s5927_s2, %s6028_s9 }
  0x55   : > { %420 = vadd.xlane.f32.xlu0 %v419_v6  ;;  %426 = vadd.xlane.f32.xlu1 %v425_v7  ;;  %v4877_v16 = vld [vmem:[%s348_s15] sm:$0xff]  ;;  %v4879_v17 = vld [vmem:[%s348_s15 + $0x8] sm:$0xff]  ;;  %s4685_s29 = smov 32   ;;  %p6021_p7 = scmp.ne.s32.totalorder %s5974_s22, 0 }
  0x56   : > { %v680_v18 = vsel %vm415_vm0, %v4877_v16, 0.0  ;;  %v683_v19 = vsel %vm415_vm0, %v4879_v17, 0.0  ;;  %3962 = vmatprep.subr.mxu0 %v4894_v21 }
  0x57   : > { %3963 = vmatpush3.msra.mxu0 %v4894_v21 }
  0x58   : > { %3964 = vmatprep.subr.mxu0 %v4901_v22 }
  0x59   : > { %429 = vadd.xlane.f32.xlu0 %v428_v10  ;;  %432 = vadd.xlane.f32.xlu1 %v431_v11 }
  0x5a   : > { %3965 = vmatpush3.msra.mxu0 %v4901_v22 }
  0x5b   : > { %3966 = vmatprep.subr.mxu0 %v4909_v23 }
  0x5c   : > { %3967 = vmatpush3.msra.mxu0 %v4909_v23 }
  0x5d   : > { %435 = vadd.xlane.f32.xlu0 %v434_v14  ;;  %438 = vadd.xlane.f32.xlu1 %v437_v15 }
  0x61   : > { %681 = vadd.xlane.f32.xlu0 %v680_v18  ;;  %684 = vadd.xlane.f32.xlu1 %v683_v19  ;;  %v397_v19 = vlaneseq }
  0xda   : > { %v418_v24 = vpop.xlane.xlu0 %417  ;;  %v424_v25 = vpop.xlane.xlu1 %423 }
  0xdb   : > { %v441_v26 = vmul.f32 0.03125, %v418_v24  ;;  %v443_v27 = vmul.f32 0.03125, %v424_v25 }
  0xdd   : > { %v4913_v28 = vsub.f32 %v407_v0, %v441_v26  ;;  %v4915_v29 = vsub.f32 %v409_v1, %v443_v27 }
  0xde   : > { %v421_v30 = vpop.xlane.xlu0 %420  ;;  %v427_v31 = vpop.xlane.xlu1 %426 }
  0xdf   : > { %v442_v32 = vmul.f32 0.03125, %v421_v30  ;;  %v444_v33 = vmul.f32 0.03125, %v427_v31  ;;  %v457_v34 = vmul.f32 %v4913_v28, %v4913_v28  ;;  %v459_v35 = vmul.f32 %v4915_v29, %v4915_v29 }
  0xe1   : > { %v4921_v36 = vsub.f32 %v408_v2, %v442_v32  ;;  %v4923_v37 = vsub.f32 %v410_v5, %v444_v33  ;;  %v465_v38 = vsel %vm415_vm0, %v457_v34, 0.0  ;;  %v471_v41 = vsel %vm415_vm0, %v459_v35, 0.0 }
  0xe2   : > { %466 = vadd.xlane.f32.xlu0 %v465_v38  ;;  %v430_v39 = vpop.xlane.xlu0 %429  ;;  %v433_v40 = vpop.xlane.xlu1 %432  ;;  %v4973_v32 = vshrl.u32 %v397_v19, 7 }
  0xe3   : > { %v445_v42 = vmul.f32 0.03125, %v430_v39  ;;  %v446_v43 = vmul.f32 0.03125, %v433_v40  ;;  %v458_v44 = vmul.f32 %v4921_v36, %v4921_v36  ;;  %v460_v45 = vmul.f32 %v4923_v37, %v4923_v37 }
  0xe5   : > { %v4931_v46 = vsub.f32 %v411_v8, %v445_v42  ;;  %v4933_v47 = vsub.f32 %v412_v9, %v446_v43  ;;  %v468_v48 = vsel %vm415_vm0, %v458_v44, 0.0  ;;  %v474_v51 = vsel %vm415_vm0, %v460_v45, 0.0  ;;  %v4981_v42 = vld [vmem:[%s5928_s3] sm:$0xff] }
  0xe6   : > { %472 = vadd.xlane.f32.xlu0 %v471_v41  ;;  %469 = vadd.xlane.f32.xlu1 %v468_v48  ;;  %v436_v49 = vpop.xlane.xlu0 %435  ;;  %v439_v50 = vpop.xlane.xlu1 %438  ;;  %v4976_v41 = vsub.s32 0, %v4973_v32  ;;  %v535_v45 = vsub.s32 1, %v4973_v32 }
  0xe7   : > { %v447_v52 = vmul.f32 0.03125, %v436_v49  ;;  %v448_v53 = vmul.f32 0.03125, %v439_v50  ;;  %v461_v54 = vmul.f32 %v4931_v46, %v4931_v46  ;;  %v462_v55 = vmul.f32 %v4933_v47, %v4933_v47 }
  0xe9   : > { %v4941_v56 = vsub.f32 %v413_v12, %v447_v52  ;;  %v4943_v57 = vsub.f32 %v414_v13, %v448_v53  ;;  %v477_v58 = vsel %vm415_vm0, %v461_v54, 0.0  ;;  %v480_v61 = vsel %vm415_vm0, %v462_v55, 0.0 }
  0xea   : > { %475 = vadd.xlane.f32.xlu1 %v474_v51  ;;  %478 = vadd.xlane.f32.xlu0 %v477_v58  ;;  %v682_v59 = vpop.xlane.xlu0 %681  ;;  %v685_v5 = vpop.xlane.xlu1 %684  ;;  %v524_v52 = vrot.slane %v4981_v42, %v4976_v41 }
  0xeb   : > { %v686_v60 = vmul.f32 0.03125, %v682_v59  ;;  %v463_v62 = vmul.f32 %v4941_v56, %v4941_v56  ;;  %v464_v63 = vmul.f32 %v4943_v57, %v4943_v57  ;;  %v687_v6 = vmul.f32 0.03125, %v685_v5 }
  0xec   : > { %v536_v59 = vrot.slane %v4981_v42, %v535_v45 }
  0xed   : > { %v4952_v0 = vsub.f32 %v4877_v16, %v686_v60  ;;  %v483_v1 = vsel %vm415_vm0, %v463_v62, 0.0  ;;  %v486_v2 = vsel %vm415_vm0, %v464_v63, 0.0  ;;  %v4966_v7 = vsub.f32 %v4879_v17, %v687_v6 }
  0xee   : > { %481 = vadd.xlane.f32.xlu1 %v480_v61  ;;  %484 = vadd.xlane.f32.xlu0 %v483_v1 }
  0xef   : > { %v690_v3 = vmul.f32 %v4952_v0, %v4952_v0  ;;  %v691_v8 = vmul.f32 %v4966_v7, %v4966_v7 }
  0xf1   : > { %v692_v4 = vsel %vm415_vm0, %v690_v3, 0.0  ;;  %v695_v9 = vsel %vm415_vm0, %v691_v8, 0.0 }
  0xf2   : > { %487 = vadd.xlane.f32.xlu1 %v486_v2  ;;  %693 = vadd.xlane.f32.xlu0 %v692_v4 }
 0x103   : > { %730 = vrot.lane.b32.xlu1 %v4894_v21, %s4680_s16 }
 0x107   : > { %728 = vrot.lane.b32.xlu1 %v4901_v22, %s4680_s16 }
 0x108   : > { %732 = vrot.lane.b32.xlu0 %v4888_v20, %s4680_s16 }
 0x12b   : > { %696 = vadd.xlane.f32.xlu1 %v695_v9 }
 0x13c   : > { %726 = vrot.lane.b32.xlu1 %v4909_v23, %s4680_s16 }
 0x16b   : > { %v467_v10 = vpop.xlane.xlu0 %466 }
 0x16c   : > { %v489_v11 = vmul.f32 0.03125, %v467_v10 }
 0x16e   : > { %v497_v12 = vadd.f32 1e-05, %v489_v11 }
 0x16f   : > { %v470_v13 = vpop.xlane.xlu1 %469  ;;  %v473_v14 = vpop.xlane.xlu0 %472 }
 0x170   : > { %4416 = vrsqrt.f32 %v497_v12  ;;  %v490_v15 = vmul.f32 0.03125, %v470_v13  ;;  %v491_v18 = vmul.f32 0.03125, %v473_v14  ;;  %v5940_v14 = vsub.s32 2, %v4973_v32 }
 0x172   : > { %v498_v24 = vadd.f32 1e-05, %v490_v15  ;;  %v499_v25 = vadd.f32 1e-05, %v491_v18 }
 0x173   : > { %v476_v26 = vpop.xlane.xlu1 %475  ;;  %v479_v27 = vpop.xlane.xlu0 %478 }
 0x174   : > { %4418 = vrsqrt.f32 %v498_v24  ;;  %v492_v30 = vmul.f32 0.03125, %v476_v26  ;;  %v493_v31 = vmul.f32 0.03125, %v479_v27 }
 0x175   : > { %4420 = vrsqrt.f32 %v499_v25  ;;  %v5939_v25 = vsub.s32 3, %v4973_v32 }
 0x176   : > { %v500_v33 = vadd.f32 1e-05, %v492_v30  ;;  %v501_v34 = vadd.f32 1e-05, %v493_v31  ;;  %v5018_v30 = vrot.slane %v4981_v42, %v5940_v14 }
 0x177   : > { %v482_v35 = vpop.xlane.xlu1 %481  ;;  %v485_v38 = vpop.xlane.xlu0 %484 }
 0x178   : > { %4422 = vrsqrt.f32 %v500_v33  ;;  %v494_v39 = vmul.f32 0.03125, %v482_v35  ;;  %v495_v40 = vmul.f32 0.03125, %v485_v38  ;;  %v5025_v38 = vrot.slane %v4981_v42, %v5939_v25 }
 0x179   : > { %4424 = vrsqrt.f32 %v501_v34 }
 0x17a   : > { %v502_v43 = vadd.f32 1e-05, %v494_v39  ;;  %v503_v44 = vadd.f32 1e-05, %v495_v40 }
 0x17b   : > { %v488_v48 = vpop.xlane.xlu1 %487  ;;  %v694_v49 = vpop.xlane.xlu0 %693 }
 0x17c   : > { %4426 = vrsqrt.f32 %v502_v43  ;;  %v496_v50 = vmul.f32 0.03125, %v488_v48  ;;  %v698_v51 = vmul.f32 0.03125, %v694_v49 }
 0x17d   : > { %v4417_v53 = vpop.eup %4416  ;;  %4428 = vrsqrt.f32 %v503_v44 }
 0x17e   : > { %v504_v54 = vadd.f32 1e-05, %v496_v50  ;;  %v700_v55 = vadd.f32 1e-05, %v698_v51  ;;  %v513_v58 = vmul.f32 %v4417_v53, %v4913_v28 }
 0x17f   : > { %v4990_v60 = vpop.permute.xlu0 %732  ;;  %v4996_v5 = vpop.permute.xlu1 %730 }
 0x180   : > { %4430 = vrsqrt.f32 %v504_v54  ;;  %v525_v61 = vmul.f32 %v524_v52, %v513_v58  ;;  %3980 = vmatprep.subr.mxu0 %v4990_v60  ;;  %5982 = vst [vmem:[#allocation11_spill] sm:$0xff] %v4996_v5  ;;  %v5955_v54 = vmov 0.0  }
 0x181   : > { %v4419_v62 = vpop.eup %4418  ;;  %4432 = vrsqrt.f32 %v700_v55  ;;  %4002 = vmatprep.subr.mxu1 %v5955_v54  ;;  %4010 = vmatprep.mubr.msk.f32.mxu1 %vm4682_vm1, %v5955_v54 }
 0x182   : > { %v4421_v63 = vpop.eup %4420  ;;  %v537_v1 = vadd.f32 %v536_v59, %v525_v61  ;;  %v514_v2 = vmul.f32 %v4419_v62, %v4921_v36 }
 0x183   : > { %v515_v3 = vmul.f32 %v4421_v63, %v4915_v29  ;;  %v5006_v19 = vpop.permute.xlu1 %728 }
 0x184   : > { %3968 = vmatprep.mubr.msk.f32.mxu0 %vm415_vm0, %v537_v1  ;;  %v526_v28 = vmul.f32 %v524_v52, %v514_v2  ;;  %5983 = vst [vmem:[#allocation12_spill] sm:$0xff] %v5006_v19 }
 0x185   : > { %v4423_v4 = vpop.eup %4422  ;;  %v527_v6 = vmul.f32 %v524_v52, %v515_v3 }
 0x186   : > { %v4425_v8 = vpop.eup %4424  ;;  %v538_v9 = vadd.f32 %v536_v59, %v526_v28  ;;  %v516_v10 = vmul.f32 %v4423_v4, %v4923_v37 }
 0x187   : > { %v539_v11 = vadd.f32 %v536_v59, %v527_v6  ;;  %v517_v12 = vmul.f32 %v4425_v8, %v4931_v46 }
 0x188   : > { %3969 = vmatmul.mubr.msk.f32.vlgmr.msra.gmra.mxu0 %vm415_vm0, %v538_v9  ;;  %v528_v13 = vmul.f32 %v524_v52, %v516_v10 }
 0x189   : > { %v4427_v36 = vpop.eup %4426  ;;  %3981 = vmatpush3.msra.mxu0 %v4990_v60  ;;  %3971 = vmatprep.mubr.msk.f32.mxu0 %vm415_vm0, %v539_v11  ;;  %v529_v29 = vmul.f32 %v524_v52, %v517_v12 }
 0x18a   : > { %v4429_v15 = vpop.eup %4428  ;;  %3982 = vmatprep.subr.mxu0 %v4996_v5  ;;  %v540_v18 = vadd.f32 %v536_v59, %v528_v13  ;;  %v518_v37 = vmul.f32 %v4427_v36, %v4933_v47  ;;  %v720_v13 = vsub.s32 7, %v4973_v32 }
 0x18b   : > { %3983 = vmatpush3.msra.mxu0 %v4996_v5  ;;  %v541_v46 = vadd.f32 %v536_v59, %v529_v29  ;;  %v519_v24 = vmul.f32 %v4429_v15, %v4941_v56 }
 0x18c   : > { %3984 = vmatprep.subr.mxu0 %v5006_v19  ;;  %3972 = vmatmul.mubr.msk.f32.gmra.mxu0 %vm415_vm0, %v540_v18  ;;  %v530_v26 = vmul.f32 %v524_v52, %v518_v37  ;;  %v5103_v36 = vrot.slane %v4981_v42, %v720_v13 }
 0x18d   : > { %v4431_v27 = vpop.eup %4430  ;;  %3985 = vmatpush3.msra.mxu0 %v5006_v19  ;;  %3974 = vmatprep.mubr.msk.f32.mxu0 %vm415_vm0, %v541_v46  ;;  %v531_v47 = vmul.f32 %v524_v52, %v519_v24 }
 0x18e   : > { %v4433_v31 = vpop.eup %4432  ;;  %v542_v56 = vadd.f32 %v536_v59, %v530_v26  ;;  %v520_v33 = vmul.f32 %v4431_v27, %v4943_v57 }
 0x18f   : > { %v543_v34 = vadd.f32 %v536_v59, %v531_v47  ;;  %v704_v35 = vmul.f32 %v4433_v31, %v4952_v0 }
 0x190   : > { %3975 = vmatmul.mubr.msk.f32.gmra.mxu0 %vm415_vm0, %v542_v56  ;;  %v532_v39 = vmul.f32 %v524_v52, %v520_v33  ;;  %v392_v56 = vld [vmem:[%s353_s11 + $0x1] sm:$0x1]  ;;  %v391_v33 = vld [vmem:[%s353_s11] sm:$0x1] }
 0x191   : > { %3977 = vmatprep.mubr.msk.f32.mxu0 %vm415_vm0, %v543_v34  ;;  %v710_v40 = vmul.f32 %v5018_v30, %v704_v35  ;;  %vm394_vm2 = vcmp.gt.f32.partialorder %v392_v56, 0.5  ;;  %vm393_vm3 = vcmp.gt.f32.partialorder %v391_v33, 0.5  ;;  %v4684_v34 = vmov 0  }
 0x192   : > { %v544_v43 = vadd.f32 %v536_v59, %v532_v39  ;;  %v396_v35 = vsel %vm394_vm2, 1, %v4684_v34  ;;  %v395_v39 = vsel %vm393_vm3, 1, %v4684_v34 }
 0x193   : > { %v716_v44 = vadd.f32 %v5025_v38, %v710_v40  ;;  %v404_v40 = vrot.slane %v396_v35, %v4976_v41 }
 0x194   : > { %3978 = vmatmul.mubr.msk.f32.gmra.mxu0 %vm415_vm0, %v544_v43  ;;  %v400_v43 = vrot.slane %v395_v39, %v4976_v41 }
 0x195   : > { %3988 = vmatprep.mubr.msk.f32.mxu0 %vm415_vm0, %v716_v44  ;;  %vm5143_vm4 = vcmp.eq.s32.totalorder %v404_v40, 1  ;;  %v5988_v44 = vmov 0 }
 0x196   : > { %v5989_v44 = vsel %vm5143_vm4, 4294967295, %v5988_v44  ;;  %vm5147_vm5 = vcmp.eq.s32.totalorder %v400_v43, 1 }
 0x197   : > { %5990 = vst [vmem:[#allocation17_spill] sm:$0xff] %v5989_v44 }
 0x1b4   : > { %v697_v57 = vpop.xlane.xlu1 %696 }
 0x1b5   : > { %v699_v0 = vmul.f32 0.03125, %v697_v57 }
 0x1b7   : > { %v701_v48 = vadd.f32 1e-05, %v699_v0  ;;  %v5991_v0 = vmov 0 }
 0x1b8   : > { %v5033_v49 = vpop.permute.xlu1 %726  ;;  %v5992_v0 = vsel %vm5147_vm5, 4294967295, %v5991_v0 }
 0x1b9   : > { %5984 = vst [vmem:[#allocation13_spill] sm:$0xff] %v5033_v49  ;;  %4434 = vrsqrt.f32 %v701_v48  ;;  %3986 = vmatprep.subr.mxu0 %v5033_v49  ;;  %5993 = vst [vmem:[#allocation18_spill] sm:$0xff] %v5992_v0 }
 0x1ba   : > { %3987 = vmatpush3.msra.mxu0 %v5033_v49 }
 0x1bb   : > { %3991 = vmatprep.subr.mxu0 %v5955_v54 }
 0x1c6   : > { %v4435_v50 = vpop.eup %4434 }
 0x1c7   : > { %v705_v51 = vmul.f32 %v4435_v50, %v4966_v7  ;;  %v547_v7 = vsub.s32 6, %v4973_v32 }
 0x1c9   : > { %v711_v52 = vmul.f32 %v5018_v30, %v705_v51  ;;  %v548_v55 = vrot.slane %v4981_v42, %v547_v7 }
 0x1cb   : > { %v717_v53 = vadd.f32 %v5025_v38, %v711_v52 }
 0x1cd   : > { %3989 = vmatmul.mubr.msk.f32.vlgmr.msra.gmra.mxu0 %vm415_vm0, %v717_v53 }
 0x1ce   : > { %3999 = vmatprep.mubr.msk.f32.mxu0 %vm4682_vm1, %v5955_v54 }
 0x248   : > { %v3970_v58 = vpop.f32.mrf.mxu0 }
 0x249   : > { %v5049_v59 = vadd.f32 %v3970_v58, %v548_v55 }
 0x24a   : > { %v639_v61 = vpop.f32.mrf.mxu0 }
 0x24b   : > { %1043 = vrot.lane.b32.xlu0 %v5049_v59, %s4683_s14  ;;  %v5083_v11 = vadd.f32 %v639_v61, %v548_v55 }
 0x24c   : > { %v3973_v62 = vpop.f32.mrf.mxu0 }
 0x24d   : > { %v5053_v63 = vadd.f32 %v3973_v62, %v548_v55 }
 0x24e   : > { %v649_v1 = vpop.f32.mrf.mxu0 }
 0x24f   : > { %1047 = vrot.lane.b32.xlu0 %v5053_v63, %s4683_s14  ;;  %3992 = vmatpush3.xpose.msk.msra.mxu0 %vm415_vm0, %v5053_v63  ;;  %v5060_v3 = vadd.f32 %v649_v1, %v548_v55 }
 0x250   : > { %v3976_v2 = vpop.f32.mrf.mxu0  ;;  %3993 = vmatprep.subr.mxu0 %v5955_v54 }
 0x251   : > { %v5062_v28 = vadd.f32 %v3976_v2, %v548_v55 }
 0x252   : > { %v659_v4 = vpop.f32.mrf.mxu0 }
 0x253   : > { %1128 = vrot.lane.b32.xlu1 %v5062_v28, %s4683_s14  ;;  %1045 = vrot.lane.b32.xlu0 %v5060_v3, %s4683_s14  ;;  %v5096_v12 = vadd.f32 %v659_v4, %v548_v55 }
 0x254   : > { %3994 = vmatpush3.xpose.msk.msra.mxu0 %vm415_vm0, %v5060_v3  ;;  %v3979_v6 = vpop.f32.mrf.mxu0 }
 0x255   : > { %v5070_v8 = vadd.f32 %v3979_v6, %v548_v55  ;;  %3995 = vmatprep.subr.mxu0 %v5955_v54 }
 0x256   : > { %v669_v9 = vpop.f32.mrf.mxu0 }
 0x257   : > { %1132 = vrot.lane.b32.xlu1 %v5070_v8, %s4683_s14  ;;  %4003 = vmatpush3.xpose.msk.msra.mxu1 %vm415_vm0, %v5070_v8  ;;  %v5080_v10 = vadd.f32 %v669_v9, %v548_v55 }
 0x258   : > { %3996 = vmatpush3.xpose.msk.msra.mxu0 %vm415_vm0, %v5049_v59  ;;  %4004 = vmatprep.subr.mxu1 %v5955_v54 }
 0x259   : > { %3997 = vmatprep.subr.mxu0 %v5955_v54 }
 0x25b   : > { %1130 = vrot.lane.b32.xlu1 %v5080_v10, %s4683_s14  ;;  %4005 = vmatpush3.xpose.msk.msra.mxu1 %vm415_vm0, %v5080_v10 }
 0x25c   : > { %3998 = vmatpush3.xpose.msk.msra.mxu0 %vm415_vm0, %v5083_v11  ;;  %4006 = vmatprep.subr.mxu1 %v5955_v54 }
 0x25d   : > { %4013 = vmatprep.subr.mxu0 %v5955_v54 }
 0x25f   : > { %4007 = vmatpush3.xpose.msk.msra.mxu1 %vm415_vm0, %v5062_v28 }
 0x260   : > { %4008 = vmatprep.subr.mxu1 %v5955_v54 }
 0x263   : > { %4009 = vmatpush3.xpose.msk.msra.mxu1 %vm415_vm0, %v5096_v12 }
 0x264   : > { %4024 = vmatprep.subr.mxu1 %v5955_v54 }
 0x28d   : > { %v3990_v29 = vpop.f32.mrf.mxu0 }
 0x28e   : > { %v816_v15 = vadd.f32 %v3990_v29, %v5103_v36 }
 0x28f   : > { %v810_v18 = vpop.f32.mrf.mxu0 }
 0x290   : > { %v811_v37 = vadd.f32 %v810_v18, %v5103_v36  ;;  %4011 = vmatmul.mubr.msk.f32.vlgmr.msra.gmra.mxu1 %vm415_vm0, %v816_v15 }
 0x291   : > { %4032 = vmatprep.mubr.msk.f32.mxu1 %vm4682_vm1, %v5955_v54 }
 0x292   : > { %4000 = vmatmul.mubr.msk.f32.vlgmr.msra.gmra.mxu0 %vm415_vm0, %v811_v37 }
 0x293   : > { %4021 = vmatprep.mubr.msk.f32.mxu0 %vm4682_vm1, %v5955_v54 }
 0x2bd   : > { %v5113_v46 = vpop.permute.xlu0 %1043 }
 0x2be   : > { %5985 = vst [vmem:[#allocation14_spill] sm:$0xff] %v5113_v46 }
 0x2c1   : > { %v5115_v24 = vpop.permute.xlu0 %1047 }
 0x2c2   : > { %5986 = vst [vmem:[#allocation15_spill] sm:$0xff] %v5115_v24  ;;  %4014 = vmatpush3.msra.mxu0 %v5115_v24 }
 0x2c3   : > { %4015 = vmatprep.subr.mxu0 %v5955_v54 }
 0x2c5   : > { %v5119_v26 = vpop.permute.xlu1 %1128  ;;  %v5121_v27 = vpop.permute.xlu0 %1045 }
 0x2c6   : > { %5987 = vst [vmem:[#allocation16_spill] sm:$0xff] %v5121_v27  ;;  %4016 = vmatpush3.msra.mxu0 %v5121_v27 }
 0x2c7   : > { %4017 = vmatprep.subr.mxu0 %v5955_v54 }
 0x2c8   : > { %4018 = vmatpush3.msra.mxu0 %v5113_v46 }
 0x2c9   : > { %v5126_v47 = vpop.permute.xlu1 %1132  ;;  %4019 = vmatprep.subr.mxu0 %v5955_v54 }
 0x2ca   : > { %4025 = vmatpush3.msra.mxu1 %v5126_v47 }
 0x2cb   : > { %4026 = vmatprep.subr.mxu1 %v5955_v54 }
 0x2cd   : > { %v5131_v31 = vpop.permute.xlu1 %1130 }
 0x2ce   : > { %4027 = vmatpush3.msra.mxu1 %v5131_v31 }
 0x2cf   : > { %4028 = vmatprep.subr.mxu1 %v5955_v54 }
 0x2d0   : > { %4029 = vmatpush3.msra.mxu1 %v5119_v26 }
 0x2d1   : > { %4030 = vmatprep.subr.mxu1 %v5955_v54 }
 0x350   : > { %v985_v57 = vpop.f32.mrf.mxu1 }
 0x351   : > { %v990_v48 = vsel %vm5143_vm4, -1e+30, %v985_v57 }
 0x352   : > { %v998_v50 = vsel %vm415_vm0, %v990_v48, -inf  ;;  %v900_v51 = vpop.f32.mrf.mxu0  ;;  %v4012_v52 = vpop.f32.mrf.mxu1 }
 0x353   : > { %v999_v53 = vrot.slane %v998_v50, 4  ;;  %v989_v7 = vsel %vm5147_vm5, -1e+30, %v900_v51 }
 0x354   : > { %v991_v55 = vsel %vm415_vm0, %v989_v7, -inf  ;;  %v4001_v58 = vpop.f32.mrf.mxu0 }
 0x355   : > { %v1000_v61 = vmax.f32 %v998_v50, %v999_v53  ;;  %v992_v62 = vrot.slane %v991_v55, 4 }
 0x357   : > { %v1001_v1 = vrot.slane %v1000_v61, 2  ;;  %v993_v2 = vmax.f32 %v991_v55, %v992_v62 }
 0x359   : > { %v1002_v4 = vmax.f32 %v1000_v61, %v1001_v1  ;;  %v994_v6 = vrot.slane %v993_v2, 2 }
 0x35b   : > { %v1003_v9 = vrot.slane %v1002_v4, 1  ;;  %v995_v13 = vmax.f32 %v993_v2, %v994_v6 }
 0x35d   : > { %v1004_v29 = vmax.f32 %v1002_v4, %v1003_v9  ;;  %v996_v15 = vrot.slane %v995_v13, 1 }
 0x35f   : > { %v1006_v18 = vsub.f32 %v990_v48, %v1004_v29  ;;  %v997_v37 = vmax.f32 %v995_v13, %v996_v15 }
 0x361   : > { %v1009_v56 = vmul.f32 1.442695, %v1006_v18  ;;  %v1005_v33 = vsub.f32 %v989_v7, %v997_v37 }
 0x363   : > { %4436 = vpow2.f32 %v1009_v56  ;;  %v1007_v34 = vmul.f32 1.442695, %v1005_v33  ;;  %v5165_v33 = vld [vmem:[#allocation5 + $0x38] sm:$0xff] }
 0x365   : > { %4438 = vpow2.f32 %v1007_v34 }
 0x370   : > { %v4437_v35 = vpop.eup %4436 }
 0x371   : > { %v1018_v39 = vsel %vm415_vm0, %v4437_v35, 0.0 }
 0x372   : > { %v4439_v40 = vpop.eup %4438  ;;  %v1019_v43 = vrot.slane %v1018_v39, 4 }
 0x373   : > { %v1011_v57 = vsel %vm415_vm0, %v4439_v40, 0.0 }
 0x374   : > { %v1020_v50 = vadd.f32 %v1019_v43, %v1018_v39  ;;  %v1012_v51 = vrot.slane %v1011_v57, 4 }
 0x376   : > { %v1021_v52 = vrot.slane %v1020_v50, 2  ;;  %v1013_v53 = vadd.f32 %v1012_v51, %v1011_v57 }
 0x378   : > { %v1014_v55 = vrot.slane %v1013_v53, 2  ;;  %v1022_v58 = vadd.f32 %v1021_v52, %v1020_v50  ;;  %v5177_v50 = vld [vmem:[#allocation5 + $0x30] sm:$0xff]  ;;  %v5181_v52 = vld [vmem:[#allocation5 + $0x28] sm:$0xff] }
 0x37a   : > { %v1023_v48 = vrot.slane %v1022_v58, 1  ;;  %v1015_v61 = vadd.f32 %v1014_v55, %v1013_v53  ;;  %v5185_v53 = vld [vmem:[#allocation5 + $0x10] sm:$0xff]  ;;  %v5190_v55 = vld [vmem:[#allocation5 + $0x20] sm:$0xff] }
 0x37c   : > { %v1024_v62 = vadd.f32 %v1023_v48, %v1022_v58  ;;  %v1016_v7 = vrot.slane %v1015_v61, 1  ;;  %v5201_v58 = vld [vmem:[#allocation5 + $0x8] sm:$0xff]  ;;  %v5205_v48 = vld [vmem:[#allocation5] sm:$0xff] }
 0x37e   : > { %4440 = vrcp.f32 %v1024_v62  ;;  %v1017_v1 = vadd.f32 %v1016_v7, %v1015_v61  ;;  %v5212_v62 = vld [vmem:[%s5928_s3 + $0x8] sm:$0xf] }
 0x380   : > { %4442 = vrcp.f32 %v1017_v1 }
 0x38b   : > { %v4441_v2 = vpop.eup %4440 }
 0x38c   : > { %v1028_v4 = vmul.f32 %v4441_v2, %v4437_v35  ;;  %v5170_v35 = vld [vmem:[#allocation5 + $0x18] sm:$0xff] }
 0x38d   : > { %v4443_v6 = vpop.eup %4442 }
 0x38e   : > { %v1030_v9 = vadd.f32 1e-08, %v1028_v4  ;;  %v1026_v13 = vmul.f32 %v4443_v6, %v4439_v40  ;;  %v5219_v4 = vrot.slane %v5212_v62, %v535_v45 }
 0x390   : > { %v1034_v29 = vsel %vm415_vm0, %v1030_v9, 0.0  ;;  %v1029_v15 = vadd.f32 1e-08, %v1026_v13 }
 0x391   : > { %1035 = vadd.xlane.f32.xlu1 %v1034_v29 }
 0x392   : > { %v1031_v18 = vsel %vm415_vm0, %v1029_v15, 0.0 }
 0x393   : > { %1032 = vadd.xlane.f32.xlu0 %v1031_v18 }
 0x3a2   : > { %1126 = vrot.lane.b32.xlu1 %v5096_v12, %s4683_s14 }
 0x3a9   : > { %1041 = vrot.lane.b32.xlu0 %v5083_v11, %s4683_s14 }
 0x41a   : > { %v1036_v37 = vpop.xlane.xlu1 %1035 }
 0x41b   : > { %4444 = vrcp.f32 %v1036_v37 }
 0x41c   : > { %v1033_v56 = vpop.xlane.xlu0 %1032 }
 0x41d   : > { %4446 = vrcp.f32 %v1033_v56 }
 0x41e   : > { %v5167_v34 = vpop.permute.xlu1 %1126 }
 0x41f   : > { %4031 = vmatpush3.msra.mxu1 %v5167_v34 }
 0x420   : > { %v5172_v39 = vpop.permute.xlu0 %1041  ;;  %4046 = vmatprep.subr.mxu1 %v5165_v33 }
 0x421   : > { %5994 = vst [vmem:[#allocation19_spill] sm:$0xff] %v5172_v39  ;;  %4020 = vmatpush3.msra.mxu0 %v5172_v39 }
 0x422   : > { %4035 = vmatprep.subr.mxu0 %v5170_v35 }
 0x428   : > { %v4445_v40 = vpop.eup %4444 }
 0x429   : > { %v1040_v43 = vmul.f32 %v4445_v40, %v1030_v9 }
 0x42a   : > { %v4447_v57 = vpop.eup %4446 }
 0x42b   : > { %4033 = vmatmul.mubr.msk.f32.vlgmr.msra.gmra.mxu1 %vm415_vm0, %v1040_v43  ;;  %v1038_v51 = vmul.f32 %v4447_v57, %v1029_v15  ;;  %v5227_v15 = vrot.slane %v5212_v62, %v4976_v41 }
 0x42c   : > { %4047 = vmatpush3.msra.mxu1 %v5165_v33  ;;  %4054 = vmatprep.mubr.msk.f32.mxu1 %vm415_vm0, %v4877_v16 }
 0x42d   : > { %4022 = vmatmul.mubr.msk.f32.vlgmr.msra.gmra.mxu0 %vm415_vm0, %v1038_v51  ;;  %4048 = vmatprep.subr.mxu1 %v5177_v50  ;;  %5995 = vst [vmem:[#allocation20_spill] sm:$0xff] %v5227_v15 }
 0x42e   : > { %4049 = vmatpush3.msra.mxu1 %v5177_v50  ;;  %4036 = vmatpush3.msra.mxu0 %v5170_v35 }
 0x42f   : > { %4050 = vmatprep.subr.mxu1 %v5181_v52  ;;  %4037 = vmatprep.subr.mxu0 %v5185_v53 }
 0x430   : > { %4051 = vmatpush3.msra.mxu1 %v5181_v52  ;;  %4038 = vmatpush3.msra.mxu0 %v5185_v53 }
 0x431   : > { %4052 = vmatprep.subr.mxu1 %v5190_v55  ;;  %4039 = vmatprep.subr.mxu0 %v5201_v58 }
 0x432   : > { %4053 = vmatpush3.msra.mxu1 %v5190_v55  ;;  %4040 = vmatpush3.msra.mxu0 %v5201_v58 }
 0x433   : > { %4055 = vmatmul.mubr.msk.f32.vlgmr.msra.gmra.mxu1 %vm415_vm0, %v4879_v17  ;;  %4041 = vmatprep.subr.mxu0 %v5205_v48 }
 0x434   : > { %4042 = vmatpush3.msra.mxu0 %v5205_v48 }
 0x4eb   : > { %v1207_v61 = vpop.f32.mrf.mxu1 }
 0x4ed   : > { %v1122_v7 = vpop.f32.mrf.mxu0  ;;  %v4034_v1 = vpop.f32.mrf.mxu1 }
 0x4ee   : > { %4043 = vmatprep.mubr.msk.f32.mxu0 %vm415_vm0, %v1122_v7 }
 0x4ef   : > { %v4023_v2 = vpop.f32.mrf.mxu0  ;;  %4044 = vmatmul.mubr.msk.f32.vlgmr.msra.gmra.mxu0 %vm415_vm0, %v1207_v61 }
 0x4f3   : > { %v4056_v6 = vpop.f32.mrf.mxu1 }
 0x4f4   : > { %v1378_v9 = vadd.f32 %v4056_v6, %v5219_v4 }
 0x4f5   : > { %v1372_v13 = vpop.f32.mrf.mxu1 }
 0x4f6   : > { %v1373_v29 = vadd.f32 %v1372_v13, %v5219_v4  ;;  %1399 = vrot.lane.b32.xlu1 %v1378_v9, %s4680_s16 }
 0x4f8   : > { %1397 = vrot.lane.b32.xlu0 %v1373_v29, %s4680_s16 }
 0x568   : > { %v1400_v41 = vpop.permute.xlu1 %1399 }
 0x5af   : > { %v4045_v18 = vpop.f32.mrf.mxu0 }
 0x5b0   : > { %v1293_v37 = vadd.f32 %v4045_v18, %v5227_v15  ;;  %v1398_v18 = vpop.permute.xlu0 %1397 }
 0x5b1   : > { %v1287_v56 = vpop.f32.mrf.mxu0 }
 0x5b2   : > { %v1382_v45 = vadd.f32 %v1378_v9, %v1293_v37  ;;  %v1288_v40 = vadd.f32 %v1287_v56, %v5227_v15 }
 0x5b4   : > { %v3707_v43 = vmul.f32 -1.442695, %v1382_v45  ;;  %v1381_v57 = vadd.f32 %v1373_v29, %v1288_v40 }
 0x5b6   : > { %4448 = vpow2.f32 %v3707_v43  ;;  %v3706_v51 = vmul.f32 -1.442695, %v1381_v57 }
 0x5b8   : > { %4450 = vpow2.f32 %v3706_v51 }
 0x5c3   : > { %v4449_v61 = vpop.eup %4448 }
 0x5c4   : > { %v1390_v7 = vadd.f32 1.0, %v4449_v61 }
 0x5c5   : > { %v4451_v1 = vpop.eup %4450 }
 0x5c6   : > { %4452 = vrcp.f32 %v1390_v7  ;;  %v1389_v2 = vadd.f32 1.0, %v4451_v1 }
 0x5c8   : > { %4454 = vrcp.f32 %v1389_v2 }
 0x5d3   : > { %v4453_v6 = vpop.eup %4452 }
 0x5d4   : > { %v1404_v13 = vmul.f32 %v4453_v6, %v1400_v41 }
 0x5d5   : > { %v4455_v25 = vpop.eup %4454 }
 0x5d6   : > { %v1403_v14 = vmul.f32 %v4455_v25, %v1398_v18  ;;  %1409 = vrot.lane.b32.xlu1 %v1404_v13, %s4680_s16  ;;  %v1417_v51 = vsub.f32 1.0, %v4455_v25 }
 0x5d8   : > { %1407 = vrot.lane.b32.xlu0 %v1403_v14, %s4680_s16 }
 0x5da   : > { %1429 = vrot.lane.b32.xlu1 %v4877_v16, %s4685_s29 }
 0x5de   : > { %1431 = vrot.lane.b32.xlu1 %v4879_v17, %s4685_s29  ;;  %v1418_v17 = vsub.f32 1.0, %v4453_v6 }
 0x648   : > { %v1410_v9 = vpop.permute.xlu1 %1409 }
 0x649   : > { %v1414_v45 = vadd.f32 %v1410_v9, %v1293_v37 }
 0x64a   : > { %v1408_v29 = vpop.permute.xlu0 %1407 }
 0x64b   : > { %v1413_v56 = vadd.f32 %v1408_v29, %v1288_v40 }
 0x64c   : > { %v1430_v14 = vpop.permute.xlu1 %1429 }
 0x64d   : > { %4456 = vtanh.f32 %v1413_v56  ;;  %v1435_v7 = vmul.f32 %v4455_v25, %v1430_v14 }
 0x64e   : > { %4458 = vtanh.f32 %v1414_v45 }
 0x650   : > { %v1432_v1 = vpop.permute.xlu1 %1431 }
 0x651   : > { %v1436_v40 = vmul.f32 %v4453_v6, %v1432_v1 }
 0x65a   : > { %v4457_v43 = vpop.eup %4456 }
 0x65b   : > { %1421 = vrot.lane.b32.xlu0 %v4457_v43, %s4683_s14  ;;  %v4459_v57 = vpop.eup %4458 }
 0x65f   : > { %1423 = vrot.lane.b32.xlu0 %v4459_v57, %s4683_s14 }
 0x6cd   : > { %v1422_v61 = vpop.permute.xlu0 %1421 }
 0x6ce   : > { %v1427_v16 = vmul.f32 %v1422_v61, %v1417_v51 }
 0x6d0   : > { %v5239_v2 = vadd.f32 %v1435_v7, %v1427_v16 }
 0x6d1   : > { %v1424_v41 = vpop.permute.xlu0 %1423 }
 0x6d2   : > { %v1428_v37 = vmul.f32 %v1424_v41, %v1418_v17  ;;  %1441 = vrot.lane.b32.xlu0 %v5239_v2, %s4683_s14  ;;  %v1493_v41 = vsub.s32 5, %v4973_v32 }
 0x6d4   : > { %v5243_v13 = vadd.f32 %v1436_v40, %v1428_v37  ;;  %v1483_v40 = vsub.s32 4, %v4973_v32  ;;  %v1494_v37 = vrot.slane %v4981_v42, %v1493_v41 }
 0x6d6   : > { %1443 = vrot.lane.b32.xlu1 %v5243_v13, %s4683_s14 }
 0x744   : > { %v1442_v18 = vpop.permute.xlu0 %1441 }
 0x745   : > { %v1447_v9 = vsel %vm415_vm0, %v1442_v18, 0.0  ;;  %v1484_v18 = vrot.slane %v4981_v42, %v1483_v40  ;;  %v361_v42 = vld [vmem:[%s5929_s4 + $0x18] sm:$0xff] }
 0x746   : > { %1448 = vadd.xlane.f32.xlu0 %v1447_v9  ;;  %v365_v9 = vld [vmem:[%s5929_s4 + $0x38] sm:$0xff] }
 0x748   : > { %v1444_v25 = vpop.permute.xlu1 %1443 }
 0x749   : > { %v1450_v29 = vsel %vm415_vm0, %v1444_v25, 0.0  ;;  %v363_v25 = vld [vmem:[%s5929_s4 + $0x28] sm:$0xff] }
 0x74a   : > { %1451 = vadd.xlane.f32.xlu1 %v1450_v29 }
 0x7cf   : > { %v1449_v56 = vpop.xlane.xlu0 %1448 }
 0x7d0   : > { %v1453_v45 = vmul.f32 0.03125, %v1449_v56 }
 0x7d2   : > { %v1455_v6 = vsub.f32 %v5239_v2, %v1453_v45 }
 0x7d3   : > { %v1452_v43 = vpop.xlane.xlu1 %1451 }
 0x7d4   : > { %v1454_v57 = vmul.f32 0.03125, %v1452_v43  ;;  %v1457_v14 = vmul.f32 %v1455_v6, %v1455_v6 }
 0x7d6   : > { %v1456_v51 = vsub.f32 %v5243_v13, %v1454_v57  ;;  %1461 = vrot.lane.b32.xlu0 %v1457_v14, %s4683_s14 }
 0x7d8   : > { %v1458_v61 = vmul.f32 %v1456_v51, %v1456_v51 }
 0x7da   : > { %1463 = vrot.lane.b32.xlu1 %v1458_v61, %s4683_s14 }
 0x848   : > { %v1462_v7 = vpop.permute.xlu0 %1461 }
 0x849   : > { %v1467_v16 = vsel %vm415_vm0, %v1462_v7, 0.0 }
 0x84a   : > { %1468 = vadd.xlane.f32.xlu0 %v1467_v16 }
 0x84c   : > { %v1464_v1 = vpop.permute.xlu1 %1463 }
 0x84d   : > { %v1470_v17 = vsel %vm415_vm0, %v1464_v1, 0.0 }
 0x84e   : > { %1471 = vadd.xlane.f32.xlu1 %v1470_v17 }
 0x85f   : > { %1496 = vrot.lane.b32.xlu1 %v1494_v37, %s4685_s29 }
 0x860   : > { %1486 = vrot.lane.b32.xlu0 %v1484_v18, %s4685_s29 }
 0x863   : > { %1529 = vrot.lane.b32.xlu1 %v365_v9, %s4685_s29 }
 0x864   : > { %1527 = vrot.lane.b32.xlu0 %v4888_v20, %s4685_s29  ;;  %v359_v20 = vld [vmem:[%s5929_s4 + $0x8] sm:$0xff] }
 0x867   : > { %1525 = vrot.lane.b32.xlu1 %v363_v25, %s4685_s29 }
 0x868   : > { %1523 = vrot.lane.b32.xlu0 %v4894_v21, %s4685_s29 }
 0x86b   : > { %1521 = vrot.lane.b32.xlu1 %v361_v42, %s4685_s29 }
 0x86c   : > { %1519 = vrot.lane.b32.xlu0 %v4901_v22, %s4685_s29 }
 0x86f   : > { %1517 = vrot.lane.b32.xlu1 %v359_v20, %s4685_s29 }
 0x870   : > { %1515 = vrot.lane.b32.xlu0 %v4909_v23, %s4685_s29 }
 0x8d3   : > { %v1469_v29 = vpop.xlane.xlu0 %1468 }
 0x8d4   : > { %v1473_v21 = vmul.f32 0.03125, %v1469_v29 }
 0x8d6   : > { %v1475_v56 = vadd.f32 1e-05, %v1473_v21 }
 0x8d7   : > { %v1472_v45 = vpop.xlane.xlu1 %1471  ;;  %v5285_v43 = vpop.permute.xlu0 %1486 }
 0x8d8   : > { %5996 = vst [vmem:[#allocation21_spill] sm:$0xff] %v5285_v43  ;;  %4460 = vrsqrt.f32 %v1475_v56  ;;  %v1474_v57 = vmul.f32 0.03125, %v1472_v45  ;;  %v5309_v56 = vld [vmem:[%s5931_s6 + $0x78] sm:$0xff] }
 0x8d9   : > { %4068 = vmatprep.subr.mxu1 %v5309_v56 }
 0x8da   : > { %v1476_v14 = vadd.f32 1e-05, %v1474_v57  ;;  %4069 = vmatpush3.msra.mxu1 %v5309_v56 }
 0x8db   : > { %v5287_v61 = vpop.permute.xlu1 %1496  ;;  %v1528_v22 = vpop.permute.xlu0 %1527 }
 0x8dc   : > { %5997 = vst [vmem:[#allocation22_spill] sm:$0xff] %v5287_v61  ;;  %4462 = vrsqrt.f32 %v1476_v14  ;;  %v5326_v14 = vld [vmem:[%s5931_s6 + $0x68] sm:$0xff] }
 0x8df   : > { %v1530_v7 = vpop.permute.xlu1 %1529  ;;  %v1524_v16 = vpop.permute.xlu0 %1523 }
 0x8e0   : > { %v5290_v1 = vsel %vm415_vm0, %v1528_v22, %v1530_v7  ;;  %v5336_v7 = vld [vmem:[%s5931_s6 + $0x60] sm:$0xff] }
 0x8e1   : > { %4057 = vmatprep.subr.mxu0 %v5290_v1 }
 0x8e2   : > { %4058 = vmatpush3.msra.mxu0 %v5290_v1 }
 0x8e3   : > { %v1526_v23 = vpop.permute.xlu1 %1525  ;;  %v1520_v17 = vpop.permute.xlu0 %1519 }
 0x8e4   : > { %v5295_v41 = vsel %vm415_vm0, %v1524_v16, %v1526_v23  ;;  %v5345_v16 = vld [vmem:[%s5931_s6 + $0x58] sm:$0xff]  ;;  %v5352_v23 = vld [vmem:[%s5931_s6 + $0x50] sm:$0xff] }
 0x8e5   : > { %v4461_v40 = vpop.eup %4460  ;;  %4059 = vmatprep.subr.mxu0 %v5295_v41 }
 0x8e6   : > { %4060 = vmatpush3.msra.mxu0 %v5295_v41  ;;  %v1479_v37 = vmul.f32 %v4461_v40, %v1455_v6  ;;  %v5314_v6 = vld [vmem:[%s5931_s6 + $0x70] sm:$0xff]  ;;  %v5366_v40 = vld [vmem:[%s5931_s6 + $0x40] sm:$0xff] }
 0x8e7   : > { %v1522_v18 = vpop.permute.xlu1 %1521  ;;  %v1516_v20 = vpop.permute.xlu0 %1515  ;;  %4070 = vmatprep.subr.mxu1 %v5314_v6 }
 0x8e8   : > { %v5300_v9 = vsel %vm415_vm0, %v1520_v17, %v1522_v18  ;;  %v1489_v25 = vmul.f32 %v5285_v43, %v1479_v37  ;;  %4071 = vmatpush3.msra.mxu1 %v5314_v6  ;;  %v5359_v17 = vld [vmem:[%s5931_s6 + $0x48] sm:$0xff]  ;;  %v5373_v37 = vld [vmem:[%s5931_s6 + $0x38] sm:$0xff]  ;;  %v5380_v18 = vld [vmem:[%s5931_s6 + $0x30] sm:$0xff] }
 0x8e9   : > { %v4463_v42 = vpop.eup %4462  ;;  %4061 = vmatprep.subr.mxu0 %v5300_v9  ;;  %4072 = vmatprep.subr.mxu1 %v5326_v14 }
 0x8ea   : > { %v1499_v29 = vadd.f32 %v5287_v61, %v1489_v25  ;;  %4062 = vmatpush3.msra.mxu0 %v5300_v9  ;;  %v1480_v21 = vmul.f32 %v4463_v42, %v1456_v51  ;;  %4073 = vmatpush3.msra.mxu1 %v5326_v14  ;;  %v5387_v25 = vld [vmem:[%s5931_s6 + $0x28] sm:$0xff]  ;;  %v5394_v42 = vld [vmem:[%s5931_s6 + $0x20] sm:$0xff] }
 0x8eb   : > { %v1518_v45 = vpop.permute.xlu1 %1517  ;;  %4074 = vmatprep.subr.mxu1 %v5336_v7 }
 0x8ec   : > { %v5318_v57 = vsel %vm415_vm0, %v1516_v20, %v1518_v45  ;;  %1507 = vrot.lane.b32.xlu0 %v1499_v29, %s4683_s14  ;;  %v1490_v51 = vmul.f32 %v5285_v43, %v1480_v21  ;;  %4075 = vmatpush3.msra.mxu1 %v5336_v7  ;;  %v5401_v20 = vld [vmem:[%s5931_s6 + $0x18] sm:$0xff]  ;;  %v5420_v45 = vld [vmem:[%s5931_s6 + $0x10] sm:$0xff] }
 0x8ed   : > { %4063 = vmatprep.subr.mxu0 %v5318_v57  ;;  %4076 = vmatprep.subr.mxu1 %v5345_v16 }
 0x8ee   : > { %4064 = vmatpush3.msra.mxu0 %v5318_v57  ;;  %v1500_v22 = vadd.f32 %v5287_v61, %v1490_v51  ;;  %4077 = vmatpush3.msra.mxu1 %v5345_v16  ;;  %v5427_v51 = vld [vmem:[%s5931_s6 + $0x8] sm:$0xff] }
 0x8ef   : > { %4103 = vmatprep.subr.mxu0 %v4990_v60  ;;  %4078 = vmatprep.subr.mxu1 %v5352_v23 }
 0x8f0   : > { %1509 = vrot.lane.b32.xlu1 %v1500_v22, %s4683_s14  ;;  %4079 = vmatpush3.msra.mxu1 %v5352_v23  ;;  %v5434_v22 = vld [vmem:[%s5931_s6] sm:$0xff] }
 0x8f1   : > { %4080 = vmatprep.subr.mxu1 %v5359_v17 }
 0x8f2   : > { %4081 = vmatpush3.msra.mxu1 %v5359_v17 }
 0x8f3   : > { %4082 = vmatprep.subr.mxu1 %v5366_v40 }
 0x8f4   : > { %4083 = vmatpush3.msra.mxu1 %v5366_v40 }
 0x8f5   : > { %4084 = vmatprep.subr.mxu1 %v5373_v37 }
 0x8f6   : > { %4085 = vmatpush3.msra.mxu1 %v5373_v37 }
 0x8f7   : > { %4086 = vmatprep.subr.mxu1 %v5380_v18 }
 0x8f8   : > { %4087 = vmatpush3.msra.mxu1 %v5380_v18 }
 0x8f9   : > { %4088 = vmatprep.subr.mxu1 %v5387_v25 }
 0x8fa   : > { %4089 = vmatpush3.msra.mxu1 %v5387_v25 }
 0x8fb   : > { %4090 = vmatprep.subr.mxu1 %v5394_v42 }
 0x8fc   : > { %4091 = vmatpush3.msra.mxu1 %v5394_v42 }
 0x8fd   : > { %4092 = vmatprep.subr.mxu1 %v5401_v20 }
 0x8fe   : > { %4093 = vmatpush3.msra.mxu1 %v5401_v20 }
 0x8ff   : > { %4094 = vmatprep.subr.mxu1 %v5420_v45 }
 0x900   : > { %4095 = vmatpush3.msra.mxu1 %v5420_v45 }
 0x901   : > { %4096 = vmatprep.subr.mxu1 %v5427_v51 }
 0x902   : > { %4097 = vmatpush3.msra.mxu1 %v5427_v51 }
 0x903   : > { %4098 = vmatprep.subr.mxu1 %v5434_v22 }
 0x904   : > { %4099 = vmatpush3.msra.mxu1 %v5434_v22 }
 0x905   : > { %4136 = vmatprep.subr.mxu1 %v5955_v54 }
 0x95e   : > { %v1508_v29 = vpop.permute.xlu0 %1507 }
 0x95f   : > { %4065 = vmatprep.mubr.msk.f32.mxu0 %vm415_vm0, %v1508_v29  ;;  %v5998_v29 = vsub.s32 2, %v4973_v32 }
 0x962   : > { %v1510_v21 = vpop.permute.xlu1 %1509 }
 0x963   : > { %4066 = vmatmul.mubr.msk.f32.vlgmr.msra.gmra.mxu0 %vm415_vm0, %v1510_v21  ;;  %v5442_v21 = vrot.slane %v5212_v62, %v5998_v29 }
 0x964   : > { %4104 = vmatpush3.msra.mxu0 %v4990_v60 }
 0x965   : > { %4105 = vmatprep.subr.mxu0 %v4996_v5  ;;  %5999 = vst [vmem:[#allocation23_spill] sm:$0xff] %v5442_v21 }
 0x966   : > { %4106 = vmatpush3.msra.mxu0 %v4996_v5 }
 0x967   : > { %4107 = vmatprep.subr.mxu0 %v5006_v19 }
 0x968   : > { %4108 = vmatpush3.msra.mxu0 %v5006_v19 }
 0x969   : > { %4109 = vmatprep.subr.mxu0 %v5033_v49 }
 0x96a   : > { %4110 = vmatpush3.msra.mxu0 %v5033_v49 }
 0x96b   : > { %4114 = vmatprep.subr.mxu0 %v5955_v54 }
 0xa23   : > { %v4067_v49 = vpop.f32.mrf.mxu0 }
 0xa24   : > { %v1615_v19 = vadd.f32 %v4067_v49, %v5442_v21  ;;  %v6000_v49 = vsub.s32 3, %v4973_v32 }
 0xa25   : > { %v1609_v5 = vpop.f32.mrf.mxu0 }
 0xa26   : > { %v1610_v61 = vadd.f32 %v1609_v5, %v5442_v21  ;;  %v1619_v15 = vmax.f32 %v1615_v19, 0.0 }
 0xa28   : > { %v1618_v43 = vmax.f32 %v1610_v61, 0.0 }
 0xa2a   : > { %4100 = vmatprep.mubr.f32.mxu1 %v1618_v43 }
 0xa2b   : > { %4101 = vmatmul.mubr.f32.vlgmr.msra.gmra.mxu1 %v1619_v15  ;;  %v1708_v15 = vrot.slane %v5212_v62, %v6000_v49 }
 0xa2c   : > { %4137 = vmatpush3.msra.mxu1 %v5115_v24  ;;  %4144 = vmatprep.mubr.msk.f32.mxu1 %vm4682_vm1, %v5955_v54 }
 0xa2d   : > { %4138 = vmatprep.subr.mxu1 %v5955_v54 }
 0xa2e   : > { %4139 = vmatpush3.msra.mxu1 %v5121_v27 }
 0xa2f   : > { %4140 = vmatprep.subr.mxu1 %v5955_v54 }
 0xa30   : > { %4141 = vmatpush3.msra.mxu1 %v5113_v46 }
 0xa31   : > { %4142 = vmatprep.subr.mxu1 %v5955_v54 }
 0xa32   : > { %4143 = vmatpush3.msra.mxu1 %v5172_v39 }
 0xa33   : > { %4147 = vmatprep.subr.mxu1 %v5955_v54 }
 0xaeb   : > { %v4102_v5 = vpop.f32.mrf.mxu1 }
 0xaec   : > { %1699 = vrot.lane.b32.xlu1 %v4102_v5, %s4685_s29 }
 0xaed   : > { %v1686_v19 = vpop.f32.mrf.mxu1 }
 0xaee   : > { %1697 = vrot.lane.b32.xlu0 %v1686_v19, %s4685_s29 }
 0xaf2   : > { %1710 = vrot.lane.b32.xlu0 %v1708_v15, %s4685_s29 }
 0xb5e   : > { %v1700_v43 = vpop.permute.xlu1 %1699 }
 0xb5f   : > { %v1704_v29 = vadd.f32 %v1700_v43, %v5243_v13 }
 0xb60   : > { %v1698_v61 = vpop.permute.xlu0 %1697 }
 0xb61   : > { %v1703_v39 = vadd.f32 %v1698_v61, %v5239_v2 }
 0xb64   : > { %v5464_v46 = vpop.permute.xlu0 %1710 }
 0xb65   : > { %6001 = vst [vmem:[#allocation24_spill] sm:$0xff] %v5464_v46  ;;  %v5467_v54 = vadd.f32 %v5464_v46, %v1704_v29  ;;  %v5470_v5 = vadd.f32 %v5464_v46, %v1703_v39 }
 0xb67   : > { %6002 = vst [vmem:[#allocation25_spill] sm:$0xff] %v5467_v54  ;;  %6003 = vst [vmem:[#allocation26_spill] sm:$0xff] %v5470_v5  ;;  %1719 = vrot.lane.b32.xlu0 %v5467_v54, %s4683_s14  ;;  %1717 = vrot.lane.b32.xlu1 %v5470_v5, %s4683_s14 }
 0xbd9   : > { %v5476_v32 = vpop.permute.xlu0 %1719  ;;  %v5478_v62 = vpop.permute.xlu1 %1717 }
 0xbda   : > { %v1726_v2 = vsel %vm415_vm0, %v5476_v32, 0.0  ;;  %v1723_v13 = vsel %vm415_vm0, %v5478_v62, 0.0 }
 0xbdb   : > { %1727 = vadd.xlane.f32.xlu0 %v1726_v2  ;;  %1724 = vadd.xlane.f32.xlu1 %v1723_v13 }
 0xc64   : > { %v1728_v39 = vpop.xlane.xlu0 %1727  ;;  %v1725_v19 = vpop.xlane.xlu1 %1724 }
 0xc65   : > { %v1730_v49 = vmul.f32 0.03125, %v1728_v39  ;;  %v1729_v15 = vmul.f32 0.03125, %v1725_v19 }
 0xc67   : > { %v1732_v43 = vsub.f32 %v5467_v54, %v1730_v49  ;;  %v1731_v61 = vsub.f32 %v5470_v5, %v1729_v15 }
 0xc69   : > { %v1734_v29 = vmul.f32 %v1732_v43, %v1732_v43  ;;  %v1733_v46 = vmul.f32 %v1731_v61, %v1731_v61 }
 0xc6b   : > { %1739 = vrot.lane.b32.xlu1 %v1734_v29, %s4683_s14  ;;  %1737 = vrot.lane.b32.xlu0 %v1733_v46, %s4683_s14 }
 0xcdd   : > { %v1738_v27 = vpop.permute.xlu0 %1737  ;;  %v1740_v24 = vpop.permute.xlu1 %1739 }
 0xcde   : > { %v1743_v21 = vsel %vm415_vm0, %v1738_v27, 0.0  ;;  %v1746_v2 = vsel %vm415_vm0, %v1740_v24, 0.0 }
 0xcdf   : > { %1744 = vadd.xlane.f32.xlu1 %v1743_v21  ;;  %1747 = vadd.xlane.f32.xlu0 %v1746_v2 }
 0xcf0   : > { %1764 = vrot.lane.b32.xlu1 %v5025_v38, %s4685_s29 }
 0xcf5   : > { %1758 = vrot.lane.b32.xlu0 %v5018_v30, %s4685_s29 }
 0xd68   : > { %v1748_v13 = vpop.xlane.xlu0 %1747  ;;  %v1745_v39 = vpop.xlane.xlu1 %1744 }
 0xd69   : > { %v1750_v19 = vmul.f32 0.03125, %v1748_v13  ;;  %v1749_v49 = vmul.f32 0.03125, %v1745_v39 }
 0xd6b   : > { %v1752_v15 = vadd.f32 1e-05, %v1750_v19  ;;  %v1751_v46 = vadd.f32 1e-05, %v1749_v49 }
 0xd6c   : > { %v5494_v27 = vpop.permute.xlu0 %1758  ;;  %v5496_v5 = vpop.permute.xlu1 %1764 }
 0xd6d   : > { %4464 = vrsqrt.f32 %v1752_v15 }
 0xd6e   : > { %4466 = vrsqrt.f32 %v1751_v46 }
 0xd7a   : > { %v4465_v29 = vpop.eup %4464 }
 0xd7b   : > { %v4467_v24 = vpop.eup %4466  ;;  %v1756_v21 = vmul.f32 %v4465_v29, %v1732_v43  ;;  %v6004_v43 = vmov 0.0  }
 0xd7c   : > { %v1755_v2 = vmul.f32 %v4467_v24, %v1731_v61 }
 0xd7d   : > { %v1762_v38 = vmul.f32 %v5494_v27, %v1756_v21 }
 0xd7e   : > { %v1761_v30 = vmul.f32 %v5494_v27, %v1755_v2 }
 0xd7f   : > { %v1768_v54 = vadd.f32 %v5496_v5, %v1762_v38 }
 0xd80   : > { %v1767_v13 = vadd.f32 %v5496_v5, %v1761_v30 }
 0xd81   : > { %1773 = vrot.lane.b32.xlu0 %v1768_v54, %s4683_s14 }
 0xd82   : > { %1771 = vrot.lane.b32.xlu1 %v1767_v13, %s4683_s14 }
 0xdf3   : > { %v1774_v39 = vpop.permute.xlu0 %1773 }
 0xdf4   : > { %v1772_v19 = vpop.permute.xlu1 %1771 }
 0xdf5   : > { %4111 = vmatprep.mubr.msk.f32.mxu0 %vm415_vm0, %v1772_v19 }
 0xdf6   : > { %4112 = vmatmul.mubr.msk.f32.vlgmr.msra.gmra.mxu0 %vm415_vm0, %v1774_v39 }
 0xdf7   : > { %4115 = vmatpush3.xpose.msk.msra.mxu0 %vm415_vm0, %v5053_v63  ;;  %4122 = vmatprep.mubr.msk.f32.mxu0 %vm4682_vm1, %v6004_v43 }
 0xdf8   : > { %4116 = vmatprep.subr.mxu0 %v6004_v43 }
 0xdfb   : > { %4117 = vmatpush3.xpose.msk.msra.mxu0 %vm415_vm0, %v5060_v3 }
 0xdfc   : > { %4118 = vmatprep.subr.mxu0 %v6004_v43 }
 0xdff   : > { %4119 = vmatpush3.xpose.msk.msra.mxu0 %vm415_vm0, %v5049_v59 }
 0xe00   : > { %4120 = vmatprep.subr.mxu0 %v6004_v43 }
 0xe03   : > { %4121 = vmatpush3.xpose.msk.msra.mxu0 %vm415_vm0, %v5083_v11 }
 0xe04   : > { %4125 = vmatprep.subr.mxu0 %v6004_v43 }
 0xeb6   : > { %v4113_v54 = vpop.f32.mrf.mxu0 }
 0xeb7   : > { %v1851_v15 = vadd.f32 %v4113_v54, %v5103_v36 }
 0xeb8   : > { %v1845_v61 = vpop.f32.mrf.mxu0 }
 0xeb9   : > { %v1846_v49 = vadd.f32 %v1845_v61, %v5103_v36 }
 0xebb   : > { %4123 = vmatmul.mubr.msk.f32.vlgmr.msra.gmra.mxu0 %vm415_vm0, %v1846_v49 }
 0xebc   : > { %4126 = vmatpush3.xpose.msk.msra.mxu0 %vm415_vm0, %v5070_v8  ;;  %4133 = vmatprep.mubr.msk.f32.mxu0 %vm4682_vm1, %v6004_v43 }
 0xebd   : > { %4127 = vmatprep.subr.mxu0 %v6004_v43 }
 0xec0   : > { %4128 = vmatpush3.xpose.msk.msra.mxu0 %vm415_vm0, %v5080_v10 }
 0xec1   : > { %4129 = vmatprep.subr.mxu0 %v6004_v43 }
 0xec4   : > { %4130 = vmatpush3.xpose.msk.msra.mxu0 %vm415_vm0, %v5062_v28 }
 0xec5   : > { %4131 = vmatprep.subr.mxu0 %v6004_v43 }
 0xec8   : > { %4132 = vmatpush3.xpose.msk.msra.mxu0 %vm415_vm0, %v5096_v12 }
 0xec9   : > { %4158 = vmatprep.subr.mxu0 %v5170_v35 }
 0xecb   : > { %4134 = vmatmul.mubr.msk.f32.vlgmr.msra.gmra.mxu0 %vm415_vm0, %v1851_v15 }
 0xecc   : > { %4159 = vmatpush3.msra.mxu0 %v5170_v35 }
 0xecd   : > { %4160 = vmatprep.subr.mxu0 %v5185_v53 }
 0xece   : > { %4161 = vmatpush3.msra.mxu0 %v5185_v53 }
 0xecf   : > { %4162 = vmatprep.subr.mxu0 %v5201_v58 }
 0xed0   : > { %4163 = vmatpush3.msra.mxu0 %v5201_v58 }
 0xed1   : > { %4164 = vmatprep.subr.mxu0 %v5205_v48 }
 0xed2   : > { %4165 = vmatpush3.msra.mxu0 %v5205_v48 }
 0xed3   : > { %4180 = vmatprep.subr.mxu0 %v5290_v1 }
 0xf7b   : > { %v1923_v46 = vpop.f32.mrf.mxu0 }
 0xf7c   : > { %v2000_v29 = vsel %vm5147_vm5, -1e+30, %v1923_v46 }
 0xf7d   : > { %v2002_v35 = vsel %vm415_vm0, %v2000_v29, -inf  ;;  %v4124_v24 = vpop.f32.mrf.mxu0 }
 0xf7e   : > { %v2003_v21 = vrot.slane %v2002_v35, 4 }
 0xf80   : > { %v2004_v2 = vmax.f32 %v2002_v35, %v2003_v21 }
 0xf82   : > { %v2005_v53 = vrot.slane %v2004_v2, 2 }
 0xf84   : > { %v2006_v38 = vmax.f32 %v2004_v2, %v2005_v53 }
 0xf86   : > { %v2007_v30 = vrot.slane %v2006_v38, 1 }
 0xf88   : > { %v2008_v13 = vmax.f32 %v2006_v38, %v2007_v30 }
 0xf8a   : > { %v2016_v58 = vsub.f32 %v2000_v29, %v2008_v13 }
 0xf8b   : > { %v1996_v39 = vpop.f32.mrf.mxu0 }
 0xf8c   : > { %v2018_v19 = vmul.f32 1.442695, %v2016_v58  ;;  %v2001_v48 = vsel %vm5143_vm4, -1e+30, %v1996_v39 }
 0xf8d   : > { %v2009_v54 = vsel %vm415_vm0, %v2001_v48, -inf  ;;  %v4135_v61 = vpop.f32.mrf.mxu0 }
 0xf8e   : > { %4468 = vpow2.f32 %v2018_v19  ;;  %v2010_v49 = vrot.slane %v2009_v54, 4 }
 0xf90   : > { %v2011_v15 = vmax.f32 %v2009_v54, %v2010_v49 }
 0xf92   : > { %v2012_v46 = vrot.slane %v2011_v15, 2 }
 0xf94   : > { %v2013_v24 = vmax.f32 %v2011_v15, %v2012_v46 }
 0xf96   : > { %v2014_v0 = vrot.slane %v2013_v24, 1 }
 0xf98   : > { %v2015_v35 = vmax.f32 %v2013_v24, %v2014_v0 }
 0xf9a   : > { %v2017_v21 = vsub.f32 %v2001_v48, %v2015_v35 }
 0xf9b   : > { %v4469_v2 = vpop.eup %4468 }
 0xf9c   : > { %v2022_v53 = vsel %vm415_vm0, %v4469_v2, 0.0  ;;  %v2020_v29 = vmul.f32 1.442695, %v2017_v21 }
 0xf9d   : > { %v2023_v38 = vrot.slane %v2022_v53, 4 }
 0xf9e   : > { %4470 = vpow2.f32 %v2020_v29 }
 0xf9f   : > { %v2024_v30 = vadd.f32 %v2023_v38, %v2022_v53 }
 0xfa1   : > { %v2025_v13 = vrot.slane %v2024_v30, 2 }
 0xfa3   : > { %v2026_v58 = vadd.f32 %v2025_v13, %v2024_v30 }
 0xfa5   : > { %v2027_v39 = vrot.slane %v2026_v58, 1 }
 0xfa7   : > { %v2028_v44 = vadd.f32 %v2027_v39, %v2026_v58 }
 0xfa9   : > { %4472 = vrcp.f32 %v2028_v44 }
 0xfab   : > { %v4471_v19 = vpop.eup %4470 }
 0xfac   : > { %v2029_v54 = vsel %vm415_vm0, %v4471_v19, 0.0 }
 0xfad   : > { %v2030_v61 = vrot.slane %v2029_v54, 4 }
 0xfaf   : > { %v2031_v49 = vadd.f32 %v2030_v61, %v2029_v54 }
 0xfb1   : > { %v2032_v15 = vrot.slane %v2031_v49, 2 }
 0xfb3   : > { %v2033_v0 = vadd.f32 %v2032_v15, %v2031_v49 }
 0xfb5   : > { %v2034_v48 = vrot.slane %v2033_v0, 1 }
 0xfb6   : > { %v4473_v46 = vpop.eup %4472 }
 0xfb7   : > { %v2037_v24 = vmul.f32 %v4473_v46, %v4469_v2  ;;  %v2035_v35 = vadd.f32 %v2034_v48, %v2033_v0 }
 0xfb9   : > { %v2040_v21 = vadd.f32 1e-08, %v2037_v24  ;;  %4474 = vrcp.f32 %v2035_v35 }
 0xfbb   : > { %v2042_v53 = vsel %vm415_vm0, %v2040_v21, 0.0 }
 0xfbc   : > { %2043 = vadd.xlane.f32.xlu1 %v2042_v53 }
 0xfc6   : > { %v4475_v29 = vpop.eup %4474 }
 0xfc7   : > { %v2039_v38 = vmul.f32 %v4475_v29, %v4471_v19 }
 0xfc9   : > { %v2041_v30 = vadd.f32 1e-08, %v2039_v38 }
 0xfcb   : > { %v2045_v44 = vsel %vm415_vm0, %v2041_v30, 0.0 }
 0xfcc   : > { %2046 = vadd.xlane.f32.xlu0 %v2045_v44  ;;  %v6006_v44 = vld [vmem:[#allocation25_spill] sm:$0xff] }
0x1045   : > { %v2044_v13 = vpop.xlane.xlu1 %2043 }
0x1046   : > { %4476 = vrcp.f32 %v2044_v13 }
0x1053   : > { %v4477_v58 = vpop.eup %4476 }
0x1054   : > { %v2049_v39 = vmul.f32 %v4477_v58, %v2040_v21 }
0x1055   : > { %v2047_v54 = vpop.xlane.xlu0 %2046 }
0x1056   : > { %4478 = vrcp.f32 %v2047_v54  ;;  %4145 = vmatmul.mubr.msk.f32.vlgmr.msra.gmra.mxu1 %vm415_vm0, %v2049_v39 }
0x1057   : > { %4148 = vmatpush3.msra.mxu1 %v5126_v47  ;;  %4155 = vmatprep.mubr.msk.f32.mxu1 %vm4682_vm1, %v6004_v43 }
0x1058   : > { %4149 = vmatprep.subr.mxu1 %v6004_v43 }
0x1059   : > { %4150 = vmatpush3.msra.mxu1 %v5131_v31 }
0x105a   : > { %4151 = vmatprep.subr.mxu1 %v6004_v43 }
0x105b   : > { %4152 = vmatpush3.msra.mxu1 %v5119_v26 }
0x105c   : > { %4153 = vmatprep.subr.mxu1 %v6004_v43 }
0x105d   : > { %4154 = vmatpush3.msra.mxu1 %v5167_v34 }
0x105e   : > { %4169 = vmatprep.subr.mxu1 %v5165_v33 }
0x1063   : > { %v4479_v2 = vpop.eup %4478 }
0x1064   : > { %v2051_v19 = vmul.f32 %v4479_v2, %v2041_v30 }
0x1066   : > { %4156 = vmatmul.mubr.msk.f32.vlgmr.msra.gmra.mxu1 %vm415_vm0, %v2051_v19  ;;  %v6007_v19 = vld [vmem:[#allocation26_spill] sm:$0xff] }
0x1067   : > { %4170 = vmatpush3.msra.mxu1 %v5165_v33  ;;  %4177 = vmatprep.mubr.msk.f32.mxu1 %vm415_vm0, %v5478_v62 }
0x1068   : > { %4171 = vmatprep.subr.mxu1 %v5177_v50 }
0x1069   : > { %4172 = vmatpush3.msra.mxu1 %v5177_v50 }
0x106a   : > { %4173 = vmatprep.subr.mxu1 %v5181_v52 }
0x106b   : > { %4174 = vmatpush3.msra.mxu1 %v5181_v52 }
0x106c   : > { %4175 = vmatprep.subr.mxu1 %v5190_v55 }
0x106d   : > { %4176 = vmatpush3.msra.mxu1 %v5190_v55 }
0x106e   : > { %4178 = vmatmul.mubr.msk.f32.vlgmr.msra.gmra.mxu1 %vm415_vm0, %v5476_v32  ;;  %4191 = vmatprep.subr.mxu1 %v5309_v56 }
0x106f   : > { %4192 = vmatpush3.msra.mxu1 %v5309_v56 }
0x1070   : > { %4193 = vmatprep.subr.mxu1 %v5314_v6 }
0x1071   : > { %4194 = vmatpush3.msra.mxu1 %v5314_v6 }
0x1072   : > { %4195 = vmatprep.subr.mxu1 %v5326_v14 }
0x1073   : > { %4196 = vmatpush3.msra.mxu1 %v5326_v14 }
0x1074   : > { %4197 = vmatprep.subr.mxu1 %v5336_v7 }
0x1075   : > { %4198 = vmatpush3.msra.mxu1 %v5336_v7 }
0x1076   : > { %4199 = vmatprep.subr.mxu1 %v5345_v16 }
0x1077   : > { %4200 = vmatpush3.msra.mxu1 %v5345_v16 }
0x1078   : > { %4201 = vmatprep.subr.mxu1 %v5352_v23 }
0x1079   : > { %4202 = vmatpush3.msra.mxu1 %v5352_v23  ;;  %v6005_v23 = vld [vmem:[#allocation20_spill] sm:$0xff] }
0x107a   : > { %4203 = vmatprep.subr.mxu1 %v5359_v17 }
0x107b   : > { %4204 = vmatpush3.msra.mxu1 %v5359_v17 }
0x107c   : > { %4205 = vmatprep.subr.mxu1 %v5366_v40 }
0x107d   : > { %4206 = vmatpush3.msra.mxu1 %v5366_v40 }
0x107e   : > { %4207 = vmatprep.subr.mxu1 %v5373_v37 }
0x107f   : > { %4208 = vmatpush3.msra.mxu1 %v5373_v37 }
0x1080   : > { %4209 = vmatprep.subr.mxu1 %v5380_v18 }
0x1081   : > { %4210 = vmatpush3.msra.mxu1 %v5380_v18 }
0x1082   : > { %4211 = vmatprep.subr.mxu1 %v5387_v25 }
0x1083   : > { %4212 = vmatpush3.msra.mxu1 %v5387_v25 }
0x1084   : > { %4213 = vmatprep.subr.mxu1 %v5394_v42 }
0x1085   : > { %4214 = vmatpush3.msra.mxu1 %v5394_v42 }
0x1086   : > { %4215 = vmatprep.subr.mxu1 %v5401_v20 }
0x1087   : > { %4216 = vmatpush3.msra.mxu1 %v5401_v20 }
0x1088   : > { %4217 = vmatprep.subr.mxu1 %v5420_v45 }
0x1089   : > { %4218 = vmatpush3.msra.mxu1 %v5420_v45 }
0x108a   : > { %4219 = vmatprep.subr.mxu1 %v5427_v51 }
0x108b   : > { %4220 = vmatpush3.msra.mxu1 %v5427_v51 }
0x108c   : > { %4221 = vmatprep.subr.mxu1 %v5434_v22 }
0x108d   : > { %4222 = vmatpush3.msra.mxu1 %v5434_v22 }
0x108e   : > { %4259 = vmatprep.subr.mxu1 %v6004_v43 }
0x1116   : > { %v2121_v33 = vpop.f32.mrf.mxu1 }
0x1117   : > { %4166 = vmatprep.mubr.msk.f32.mxu0 %vm415_vm0, %v2121_v33 }
0x1118   : > { %v4146_v50 = vpop.f32.mrf.mxu1 }
0x1126   : > { %v2194_v52 = vpop.f32.mrf.mxu1 }
0x1127   : > { %4167 = vmatmul.mubr.msk.f32.vlgmr.msra.gmra.mxu0 %vm415_vm0, %v2194_v52 }
0x1128   : > { %4181 = vmatpush3.msra.mxu0 %v5290_v1  ;;  %v4157_v55 = vpop.f32.mrf.mxu1 }
0x1129   : > { %4182 = vmatprep.subr.mxu0 %v5295_v41 }
0x112a   : > { %4183 = vmatpush3.msra.mxu0 %v5295_v41 }
0x112b   : > { %4184 = vmatprep.subr.mxu0 %v5300_v9 }
0x112c   : > { %4185 = vmatpush3.msra.mxu0 %v5300_v9 }
0x112d   : > { %4186 = vmatprep.subr.mxu0 %v5318_v57 }
0x112e   : > { %v4179_v56 = vpop.f32.mrf.mxu1  ;;  %4187 = vmatpush3.msra.mxu0 %v5318_v57 }
0x112f   : > { %v2355_v6 = vadd.f32 %v4179_v56, %v5219_v4  ;;  %4226 = vmatprep.subr.mxu0 %v4990_v60 }
0x1130   : > { %v2349_v14 = vpop.f32.mrf.mxu1 }
0x1131   : > { %v2350_v7 = vadd.f32 %v2349_v14, %v5219_v4  ;;  %2376 = vrot.lane.b32.xlu1 %v2355_v6, %s4680_s16 }
0x1133   : > { %2374 = vrot.lane.b32.xlu0 %v2350_v7, %s4680_s16 }
0x11a3   : > { %v2377_v61 = vpop.permute.xlu1 %2376 }
0x11a5   : > { %v2375_v0 = vpop.permute.xlu0 %2374 }
0x11e7   : > { %v4168_v16 = vpop.f32.mrf.mxu0 }
0x11e8   : > { %v2276_v17 = vadd.f32 %v4168_v16, %v6005_v23 }
0x11e9   : > { %v2270_v40 = vpop.f32.mrf.mxu0 }
0x11ea   : > { %v2359_v37 = vadd.f32 %v2355_v6, %v2276_v17  ;;  %v2271_v18 = vadd.f32 %v2270_v40, %v6005_v23 }
0x11ec   : > { %v3729_v25 = vmul.f32 -1.442695, %v2359_v37  ;;  %v2358_v42 = vadd.f32 %v2350_v7, %v2271_v18 }
0x11ee   : > { %4480 = vpow2.f32 %v3729_v25  ;;  %v3728_v20 = vmul.f32 -1.442695, %v2358_v42 }
0x11f0   : > { %4482 = vpow2.f32 %v3728_v20 }
0x11fb   : > { %v4481_v45 = vpop.eup %4480 }
0x11fc   : > { %v2367_v51 = vadd.f32 1.0, %v4481_v45 }
0x11fd   : > { %v4483_v22 = vpop.eup %4482 }
0x11fe   : > { %4484 = vrcp.f32 %v2367_v51  ;;  %v2366_v32 = vadd.f32 1.0, %v4483_v22 }
0x1200   : > { %4486 = vrcp.f32 %v2366_v32 }
0x120b   : > { %v4485_v62 = vpop.eup %4484 }
0x120c   : > { %v2381_v49 = vmul.f32 %v4485_v62, %v2377_v61  ;;  %v2395_v38 = vsub.f32 1.0, %v4485_v62  ;;  %v2407_v13 = vmul.f32 %v4485_v62, %v6006_v44 }
0x120d   : > { %v4487_v15 = vpop.eup %4486 }
0x120e   : > { %2386 = vrot.lane.b32.xlu0 %v2381_v49, %s4680_s16  ;;  %v2380_v48 = vmul.f32 %v4487_v15, %v2375_v0  ;;  %v2394_v39 = vsub.f32 1.0, %v4487_v15  ;;  %v2406_v33 = vmul.f32 %v4487_v15, %v6007_v19  ;;  %v6012_v19 = vld [vmem:[#allocation13_spill] sm:$0xff] }
0x1210   : > { %2384 = vrot.lane.b32.xlu1 %v2380_v48, %s4680_s16 }
0x1280   : > { %v2387_v46 = vpop.permute.xlu0 %2386 }
0x1281   : > { %v2391_v24 = vadd.f32 %v2387_v46, %v2276_v17 }
0x1282   : > { %v2385_v35 = vpop.permute.xlu1 %2384 }
0x1283   : > { %4488 = vtanh.f32 %v2391_v24  ;;  %v2390_v21 = vadd.f32 %v2385_v35, %v2271_v18  ;;  %v6008_v35 = vld [vmem:[#allocation21_spill] sm:$0xff] }
0x1285   : > { %4490 = vtanh.f32 %v2390_v21 }
0x1290   : > { %v4489_v53 = vpop.eup %4488 }
0x1291   : > { %2400 = vrot.lane.b32.xlu0 %v4489_v53, %s4683_s14 }
0x1292   : > { %v4491_v29 = vpop.eup %4490 }
0x1293   : > { %2398 = vrot.lane.b32.xlu1 %v4491_v29, %s4683_s14  ;;  %v6009_v29 = vld [vmem:[#allocation22_spill] sm:$0xff] }
0x1303   : > { %v2401_v30 = vpop.permute.xlu0 %2400 }
0x1304   : > { %v2405_v58 = vmul.f32 %v2401_v30, %v2395_v38 }
0x1305   : > { %v2399_v54 = vpop.permute.xlu1 %2398 }
0x1306   : > { %v5633_v2 = vadd.f32 %v2407_v13, %v2405_v58  ;;  %v2404_v50 = vmul.f32 %v2399_v54, %v2394_v39  ;;  %v6010_v39 = vld [vmem:[#allocation11_spill] sm:$0xff]  ;;  %v6011_v54 = vld [vmem:[#allocation12_spill] sm:$0xff] }
0x1308   : > { %v5636_v52 = vadd.f32 %v2406_v33, %v2404_v50  ;;  %2414 = vrot.lane.b32.xlu0 %v5633_v2, %s4683_s14  ;;  %v6013_v50 = vld [vmem:[#allocation23_spill] sm:$0xff] }
0x130a   : > { %2412 = vrot.lane.b32.xlu1 %v5636_v52, %s4683_s14 }
0x137a   : > { %v2415_v55 = vpop.permute.xlu0 %2414 }
0x137b   : > { %v2421_v56 = vsel %vm415_vm0, %v2415_v55, 0.0 }
0x137c   : > { %2422 = vadd.xlane.f32.xlu0 %v2421_v56  ;;  %v2413_v6 = vpop.permute.xlu1 %2412 }
0x137d   : > { %v2418_v14 = vsel %vm415_vm0, %v2413_v6, 0.0 }
0x137e   : > { %2419 = vadd.xlane.f32.xlu1 %v2418_v14 }
0x1405   : > { %v2423_v7 = vpop.xlane.xlu0 %2422 }
0x1406   : > { %v2425_v16 = vmul.f32 0.03125, %v2423_v7  ;;  %v6014_v7 = vld [vmem:[#allocation15_spill] sm:$0xff] }
0x1407   : > { %v2420_v17 = vpop.xlane.xlu1 %2419 }
0x1408   : > { %v2427_v40 = vsub.f32 %v5633_v2, %v2425_v16  ;;  %v2424_v37 = vmul.f32 0.03125, %v2420_v17  ;;  %v6015_v16 = vld [vmem:[#allocation16_spill] sm:$0xff]  ;;  %v6016_v17 = vld [vmem:[#allocation14_spill] sm:$0xff] }
0x140a   : > { %v2426_v18 = vsub.f32 %v5636_v52, %v2424_v37  ;;  %v2429_v25 = vmul.f32 %v2427_v40, %v2427_v40 }
0x140c   : > { %2434 = vrot.lane.b32.xlu1 %v2429_v25, %s4683_s14  ;;  %v2428_v42 = vmul.f32 %v2426_v18, %v2426_v18 }
0x140e   : > { %2432 = vrot.lane.b32.xlu0 %v2428_v42, %s4683_s14 }
0x147e   : > { %v2435_v20 = vpop.permute.xlu1 %2434 }
0x147f   : > { %v2441_v45 = vsel %vm415_vm0, %v2435_v20, 0.0 }
0x1480   : > { %v2433_v51 = vpop.permute.xlu0 %2432  ;;  %2442 = vadd.xlane.f32.xlu0 %v2441_v45  ;;  %v6018_v45 = vld [vmem:[#allocation24_spill] sm:$0xff] }
0x1481   : > { %v2438_v22 = vsel %vm415_vm0, %v2433_v51, 0.0 }
0x1482   : > { %2439 = vadd.xlane.f32.xlu1 %v2438_v22 }
0x1509   : > { %v2443_v32 = vpop.xlane.xlu0 %2442 }
0x150a   : > { %v2445_v62 = vmul.f32 0.03125, %v2443_v32 }
0x150b   : > { %v2440_v61 = vpop.xlane.xlu1 %2439 }
0x150c   : > { %v2447_v49 = vadd.f32 1e-05, %v2445_v62  ;;  %v2444_v15 = vmul.f32 0.03125, %v2440_v61 }
0x150e   : > { %4492 = vrsqrt.f32 %v2447_v49  ;;  %v2446_v0 = vadd.f32 1e-05, %v2444_v15 }
0x1510   : > { %4494 = vrsqrt.f32 %v2446_v0 }
0x151b   : > { %v4493_v48 = vpop.eup %4492 }
0x151c   : > { %v2451_v46 = vmul.f32 %v4493_v48, %v2427_v40  ;;  %v6017_v40 = vld [vmem:[#allocation19_spill] sm:$0xff] }
0x151d   : > { %v4495_v24 = vpop.eup %4494 }
0x151e   : > { %v2453_v21 = vmul.f32 %v2451_v46, %v6008_v35  ;;  %v2450_v53 = vmul.f32 %v4495_v24, %v2426_v18 }
0x1520   : > { %v2455_v38 = vadd.f32 %v2453_v21, %v6009_v29  ;;  %v2452_v30 = vmul.f32 %v2450_v53, %v6008_v35 }
0x1522   : > { %2460 = vrot.lane.b32.xlu1 %v2455_v38, %s4683_s14  ;;  %v2454_v44 = vadd.f32 %v2452_v30, %v6009_v29 }
0x1524   : > { %2458 = vrot.lane.b32.xlu0 %v2454_v44, %s4683_s14 }
0x1594   : > { %v2461_v58 = vpop.permute.xlu1 %2460 }
0x1596   : > { %v2459_v13 = vpop.permute.xlu0 %2458 }
0x1597   : > { %4188 = vmatprep.mubr.msk.f32.mxu0 %vm415_vm0, %v2459_v13 }
0x1598   : > { %4189 = vmatmul.mubr.msk.f32.vlgmr.msra.gmra.mxu0 %vm415_vm0, %v2461_v58 }
0x1599   : > { %4227 = vmatpush3.msra.mxu0 %v4990_v60 }
0x159a   : > { %4228 = vmatprep.subr.mxu0 %v6010_v39 }
0x159b   : > { %4229 = vmatpush3.msra.mxu0 %v6010_v39 }
0x159c   : > { %4230 = vmatprep.subr.mxu0 %v6011_v54 }
0x159d   : > { %4231 = vmatpush3.msra.mxu0 %v6011_v54 }
0x159e   : > { %4232 = vmatprep.subr.mxu0 %v6012_v19 }
0x159f   : > { %4233 = vmatpush3.msra.mxu0 %v6012_v19 }
0x15a0   : > { %4237 = vmatprep.subr.mxu0 %v6004_v43 }
0x1658   : > { %v4190_v33 = vpop.f32.mrf.mxu0 }
0x1659   : > { %v2538_v55 = vadd.f32 %v4190_v33, %v6013_v50 }
0x165a   : > { %v2532_v56 = vpop.f32.mrf.mxu0 }
0x165b   : > { %v2533_v60 = vadd.f32 %v2532_v56, %v6013_v50  ;;  %v2542_v14 = vmax.f32 %v2538_v55, 0.0 }
0x165d   : > { %v2541_v6 = vmax.f32 %v2533_v60, 0.0 }
0x165f   : > { %4223 = vmatprep.mubr.f32.mxu1 %v2541_v6 }
0x1660   : > { %4224 = vmatmul.mubr.f32.vlgmr.msra.gmra.mxu1 %v2542_v14 }
0x1661   : > { %4260 = vmatpush3.msra.mxu1 %v6014_v7  ;;  %4267 = vmatprep.mubr.msk.f32.mxu1 %vm4682_vm1, %v6004_v43 }
0x1662   : > { %4261 = vmatprep.subr.mxu1 %v6004_v43 }
0x1663   : > { %4262 = vmatpush3.msra.mxu1 %v6015_v16 }
0x1664   : > { %4263 = vmatprep.subr.mxu1 %v6004_v43 }
0x1665   : > { %4264 = vmatpush3.msra.mxu1 %v6016_v17 }
0x1666   : > { %4265 = vmatprep.subr.mxu1 %v6004_v43 }
0x1667   : > { %4266 = vmatpush3.msra.mxu1 %v6017_v40 }
0x1668   : > { %4270 = vmatprep.subr.mxu1 %v6004_v43 }
0x1720   : > { %v4225_v37 = vpop.f32.mrf.mxu1 }
0x1721   : > { %2622 = vrot.lane.b32.xlu0 %v4225_v37, %s4685_s29 }
0x1722   : > { %v2609_v18 = vpop.f32.mrf.mxu1 }
0x1723   : > { %2620 = vrot.lane.b32.xlu1 %v2609_v18, %s4685_s29 }
0x1793   : > { %v2623_v25 = vpop.permute.xlu0 %2622 }
0x1794   : > { %v2627_v42 = vadd.f32 %v2623_v25, %v5633_v2 }
0x1795   : > { %v2621_v20 = vpop.permute.xlu1 %2620 }
0x1796   : > { %v5682_v51 = vadd.f32 %v2627_v42, %v6018_v45  ;;  %v2626_v22 = vadd.f32 %v2621_v20, %v5636_v52 }
0x1798   : > { %v5686_v32 = vadd.f32 %v2626_v22, %v6018_v45  ;;  %2634 = vrot.lane.b32.xlu0 %v5682_v51, %s4683_s14 }
0x179a   : > { %2632 = vrot.lane.b32.xlu1 %v5686_v32, %s4683_s14 }
0x180a   : > { %v5692_v62 = vpop.permute.xlu0 %2634 }
0x180b   : > { %v2641_v2 = vsel %vm415_vm0, %v5692_v62, 0.0 }
0x180c   : > { %2642 = vadd.xlane.f32.xlu0 %v2641_v2  ;;  %v5696_v61 = vpop.permute.xlu1 %2632 }
0x180d   : > { %v2638_v52 = vsel %vm415_vm0, %v5696_v61, 0.0 }
0x180e   : > { %2639 = vadd.xlane.f32.xlu1 %v2638_v52 }
0x1895   : > { %v2643_v49 = vpop.xlane.xlu0 %2642 }
0x1896   : > { %v2645_v15 = vmul.f32 0.03125, %v2643_v49 }
0x1897   : > { %v2640_v0 = vpop.xlane.xlu1 %2639 }
0x1898   : > { %v2647_v48 = vsub.f32 %v5682_v51, %v2645_v15  ;;  %v2644_v46 = vmul.f32 0.03125, %v2640_v0 }
0x189a   : > { %v2649_v24 = vmul.f32 %v2647_v48, %v2647_v48  ;;  %v2646_v21 = vsub.f32 %v5686_v32, %v2644_v46 }
0x189c   : > { %v2648_v53 = vmul.f32 %v2646_v21, %v2646_v21  ;;  %2654 = vrot.lane.b32.xlu1 %v2649_v24, %s4683_s14  ;;  %v4542_v24 = vld [vmem:[%s5931_s6 + $0x48] sm:$0xff] }
0x189e   : > { %2652 = vrot.lane.b32.xlu0 %v2648_v53, %s4683_s14 }
0x190e   : > { %v2655_v38 = vpop.permute.xlu1 %2654 }
0x190f   : > { %v2661_v30 = vsel %vm415_vm0, %v2655_v38, 0.0 }
0x1910   : > { %v2653_v44 = vpop.permute.xlu0 %2652  ;;  %2662 = vadd.xlane.f32.xlu0 %v2661_v30 }
0x1911   : > { %v2658_v13 = vsel %vm415_vm0, %v2653_v44, 0.0 }
0x1912   : > { %2659 = vadd.xlane.f32.xlu1 %v2658_v13 }
0x1999   : > { %v2663_v58 = vpop.xlane.xlu0 %2662 }
0x199a   : > { %v2665_v39 = vmul.f32 0.03125, %v2663_v58 }
0x199b   : > { %v2660_v54 = vpop.xlane.xlu1 %2659 }
0x199c   : > { %v2667_v19 = vadd.f32 1e-05, %v2665_v39  ;;  %v2664_v33 = vmul.f32 0.03125, %v2660_v54 }
0x199e   : > { %4496 = vrsqrt.f32 %v2667_v19  ;;  %v2666_v55 = vadd.f32 1e-05, %v2664_v33 }
0x19a0   : > { %4498 = vrsqrt.f32 %v2666_v55 }
0x19ab   : > { %v4497_v56 = vpop.eup %4496 }
0x19ac   : > { %v2671_v60 = vmul.f32 %v4497_v56, %v2647_v48 }
0x19ad   : > { %v4499_v6 = vpop.eup %4498 }
0x19ae   : > { %v2673_v14 = vmul.f32 %v2671_v60, %v5494_v27  ;;  %v2670_v7 = vmul.f32 %v4499_v6, %v2646_v21 }
0x19b0   : > { %v2675_v16 = vadd.f32 %v2673_v14, %v5496_v5  ;;  %v2672_v17 = vmul.f32 %v2670_v7, %v5494_v27 }
0x19b2   : > { %2680 = vrot.lane.b32.xlu1 %v2675_v16, %s4683_s14  ;;  %v2674_v40 = vadd.f32 %v2672_v17, %v5496_v5 }
0x19b4   : > { %2678 = vrot.lane.b32.xlu0 %v2674_v40, %s4683_s14 }
0x1a24   : > { %v2681_v18 = vpop.permute.xlu1 %2680 }
0x1a26   : > { %v2679_v37 = vpop.permute.xlu0 %2678 }
0x1a27   : > { %4234 = vmatprep.mubr.msk.f32.mxu0 %vm415_vm0, %v2679_v37 }
0x1a28   : > { %4235 = vmatmul.mubr.msk.f32.vlgmr.msra.gmra.mxu0 %vm415_vm0, %v2681_v18 }
0x1a29   : > { %4238 = vmatpush3.xpose.msk.msra.mxu0 %vm415_vm0, %v5053_v63  ;;  %4245 = vmatprep.mubr.msk.f32.mxu0 %vm4682_vm1, %v6004_v43 }
0x1a2a   : > { %4239 = vmatprep.subr.mxu0 %v6004_v43 }
0x1a2d   : > { %4240 = vmatpush3.xpose.msk.msra.mxu0 %vm415_vm0, %v5060_v3  ;;  %v4528_v3 = vld [vmem:[#allocation5 + $0x18] sm:$0xff] }
0x1a2e   : > { %4241 = vmatprep.subr.mxu0 %v6004_v43 }
0x1a31   : > { %4242 = vmatpush3.xpose.msk.msra.mxu0 %vm415_vm0, %v5049_v59 }
0x1a32   : > { %4243 = vmatprep.subr.mxu0 %v6004_v43 }
0x1a35   : > { %4244 = vmatpush3.xpose.msk.msra.mxu0 %vm415_vm0, %v5083_v11  ;;  %v4531_v11 = vld [vmem:[#allocation5] sm:$0xff] }
0x1a36   : > { %4248 = vmatprep.subr.mxu0 %v6004_v43 }
0x1ae8   : > { %v4236_v63 = vpop.f32.mrf.mxu0 }
0x1ae9   : > { %v2758_v59 = vadd.f32 %v4236_v63, %v5103_v36 }
0x1aea   : > { %v2752_v5 = vpop.f32.mrf.mxu0 }
0x1aeb   : > { %v2753_v27 = vadd.f32 %v2752_v5, %v5103_v36 }
0x1aed   : > { %4246 = vmatmul.mubr.msk.f32.vlgmr.msra.gmra.mxu0 %vm415_vm0, %v2753_v27 }
0x1aee   : > { %4249 = vmatpush3.xpose.msk.msra.mxu0 %vm415_vm0, %v5070_v8  ;;  %4256 = vmatprep.mubr.msk.f32.mxu0 %vm4682_vm1, %v6004_v43  ;;  %v4529_v8 = vld [vmem:[#allocation5 + $0x10] sm:$0xff] }
0x1aef   : > { %4250 = vmatprep.subr.mxu0 %v6004_v43 }
0x1af2   : > { %4251 = vmatpush3.xpose.msk.msra.mxu0 %vm415_vm0, %v5080_v10  ;;  %v4530_v10 = vld [vmem:[#allocation5 + $0x8] sm:$0xff] }
0x1af3   : > { %4252 = vmatprep.subr.mxu0 %v6004_v43 }
0x1af6   : > { %4253 = vmatpush3.xpose.msk.msra.mxu0 %vm415_vm0, %v5062_v28 }
0x1af7   : > { %4254 = vmatprep.subr.mxu0 %v6004_v43 }
0x1afa   : > { %4255 = vmatpush3.xpose.msk.msra.mxu0 %vm415_vm0, %v5096_v12 }
0x1afb   : > { %4281 = vmatprep.subr.mxu0 %v4528_v3 }
0x1afd   : > { %4257 = vmatmul.mubr.msk.f32.vlgmr.msra.gmra.mxu0 %vm415_vm0, %v2758_v59 }
0x1afe   : > { %4282 = vmatpush3.msra.mxu0 %v4528_v3 }
0x1aff   : > { %4283 = vmatprep.subr.mxu0 %v4529_v8 }
0x1b00   : > { %4284 = vmatpush3.msra.mxu0 %v4529_v8 }
0x1b01   : > { %4285 = vmatprep.subr.mxu0 %v4530_v10 }
0x1b02   : > { %4286 = vmatpush3.msra.mxu0 %v4530_v10 }
0x1b03   : > { %4287 = vmatprep.subr.mxu0 %v4531_v11 }
0x1b04   : > { %4288 = vmatpush3.msra.mxu0 %v4531_v11 }
0x1b05   : > { %4303 = vmatprep.subr.mxu0 %v5290_v1 }
0x1bad   : > { %v2830_v28 = vpop.f32.mrf.mxu0 }
0x1bae   : > { %v2907_v36 = vsel %vm5147_vm5, -1e+30, %v2830_v28 }
0x1baf   : > { %v2909_v25 = vsel %vm415_vm0, %v2907_v36, -inf  ;;  %v4247_v42 = vpop.f32.mrf.mxu0 }
0x1bb0   : > { %v2910_v20 = vrot.slane %v2909_v25, 4 }
0x1bb2   : > { %v2911_v22 = vmax.f32 %v2909_v25, %v2910_v20 }
0x1bb4   : > { %v2912_v2 = vrot.slane %v2911_v22, 2 }
0x1bb6   : > { %v2913_v52 = vmax.f32 %v2911_v22, %v2912_v2 }
0x1bb8   : > { %v2914_v49 = vrot.slane %v2913_v52, 1 }
0x1bba   : > { %v2915_v15 = vmax.f32 %v2913_v52, %v2914_v49  ;;  %v4532_v49 = vld [vmem:[#allocation5 + $0x38] sm:$0xff] }
0x1bbc   : > { %v2923_v0 = vsub.f32 %v2907_v36, %v2915_v15 }
0x1bbd   : > { %v2903_v48 = vpop.f32.mrf.mxu0 }
0x1bbe   : > { %v2925_v46 = vmul.f32 1.442695, %v2923_v0  ;;  %v2908_v21 = vsel %vm5143_vm4, -1e+30, %v2903_v48  ;;  %v4540_v48 = vld [vmem:[%s5931_s6 + $0x58] sm:$0xff] }
0x1bbf   : > { %v2916_v53 = vsel %vm415_vm0, %v2908_v21, -inf  ;;  %v4258_v38 = vpop.f32.mrf.mxu0 }
0x1bc0   : > { %4500 = vpow2.f32 %v2925_v46  ;;  %v2917_v30 = vrot.slane %v2916_v53, 4  ;;  %v4541_v46 = vld [vmem:[%s5931_s6 + $0x50] sm:$0xff] }
0x1bc1   : > { %v4545_v38 = vld [vmem:[%s5931_s6 + $0x30] sm:$0xff] }
0x1bc2   : > { %v2918_v44 = vmax.f32 %v2916_v53, %v2917_v30  ;;  %v4544_v53 = vld [vmem:[%s5931_s6 + $0x38] sm:$0xff]  ;;  %v4546_v30 = vld [vmem:[%s5931_s6 + $0x28] sm:$0xff] }
0x1bc4   : > { %v2919_v13 = vrot.slane %v2918_v44, 2 }
0x1bc6   : > { %v2920_v58 = vmax.f32 %v2918_v44, %v2919_v13  ;;  %v4547_v44 = vld [vmem:[%s5931_s6 + $0x20] sm:$0xff]  ;;  %v4548_v13 = vld [vmem:[%s5931_s6 + $0x18] sm:$0xff] }
0x1bc8   : > { %v2921_v39 = vrot.slane %v2920_v58, 1 }
0x1bca   : > { %v2922_v54 = vmax.f32 %v2920_v58, %v2921_v39  ;;  %v4549_v58 = vld [vmem:[%s5931_s6 + $0x10] sm:$0xff]  ;;  %v4550_v39 = vld [vmem:[%s5931_s6 + $0x8] sm:$0xff] }
0x1bcc   : > { %v2924_v19 = vsub.f32 %v2908_v21, %v2922_v54  ;;  %v4543_v21 = vld [vmem:[%s5931_s6 + $0x40] sm:$0xff] }
0x1bcd   : > { %v4501_v33 = vpop.eup %4500  ;;  %v4551_v54 = vld [vmem:[%s5931_s6] sm:$0xff] }
0x1bce   : > { %v2929_v55 = vsel %vm415_vm0, %v4501_v33, 0.0  ;;  %v2927_v56 = vmul.f32 1.442695, %v2924_v19 }
0x1bcf   : > { %v2930_v60 = vrot.slane %v2929_v55, 4 }
0x1bd0   : > { %4502 = vpow2.f32 %v2927_v56 }
0x1bd1   : > { %v2931_v6 = vadd.f32 %v2930_v60, %v2929_v55 }
0x1bd3   : > { %v2932_v14 = vrot.slane %v2931_v6, 2 }
0x1bd5   : > { %v2933_v7 = vadd.f32 %v2932_v14, %v2931_v6 }
0x1bd7   : > { %v2934_v16 = vrot.slane %v2933_v7, 1 }
0x1bd9   : > { %v2935_v17 = vadd.f32 %v2934_v16, %v2933_v7 }
0x1bdb   : > { %4504 = vrcp.f32 %v2935_v17 }
0x1bdd   : > { %v4503_v40 = vpop.eup %4502 }
0x1bde   : > { %v2936_v37 = vsel %vm415_vm0, %v4503_v40, 0.0 }
0x1bdf   : > { %v2937_v18 = vrot.slane %v2936_v37, 4 }
0x1be1   : > { %v2938_v63 = vadd.f32 %v2937_v18, %v2936_v37 }
0x1be3   : > { %v2939_v5 = vrot.slane %v2938_v63, 2 }
0x1be5   : > { %v2940_v27 = vadd.f32 %v2939_v5, %v2938_v63 }
0x1be7   : > { %v2941_v59 = vrot.slane %v2940_v27, 1 }
0x1be8   : > { %v4505_v3 = vpop.eup %4504 }
0x1be9   : > { %v2944_v8 = vmul.f32 %v4505_v3, %v4501_v33  ;;  %v2942_v10 = vadd.f32 %v2941_v59, %v2940_v27 }
0x1beb   : > { %v2947_v11 = vadd.f32 1e-08, %v2944_v8  ;;  %4506 = vrcp.f32 %v2942_v10 }
0x1bed   : > { %v2949_v28 = vsel %vm415_vm0, %v2947_v11, 0.0 }
0x1bee   : > { %2950 = vadd.xlane.f32.xlu1 %v2949_v28 }
0x1bf8   : > { %v4507_v12 = vpop.eup %4506 }
0x1bf9   : > { %v2946_v36 = vmul.f32 %v4507_v12, %v4503_v40 }
0x1bfb   : > { %v2948_v25 = vadd.f32 1e-08, %v2946_v36 }
0x1bfd   : > { %v2952_v42 = vsel %vm415_vm0, %v2948_v25, 0.0 }
0x1bfe   : > { %2953 = vadd.xlane.f32.xlu0 %v2952_v42 }
0x1c77   : > { %v2951_v20 = vpop.xlane.xlu1 %2950 }
0x1c78   : > { %4508 = vrcp.f32 %v2951_v20 }
0x1c85   : > { %v4509_v22 = vpop.eup %4508 }
0x1c86   : > { %v2956_v2 = vmul.f32 %v4509_v22, %v2947_v11 }
0x1c87   : > { %v2954_v52 = vpop.xlane.xlu0 %2953 }
0x1c88   : > { %4510 = vrcp.f32 %v2954_v52  ;;  %4268 = vmatmul.mubr.msk.f32.vlgmr.msra.gmra.mxu1 %vm415_vm0, %v2956_v2 }
0x1c89   : > { %4271 = vmatpush3.msra.mxu1 %v5126_v47  ;;  %4278 = vmatprep.mubr.msk.f32.mxu1 %vm4682_vm1, %v6004_v43  ;;  %v4533_v47 = vld [vmem:[#allocation5 + $0x30] sm:$0xff] }
0x1c8a   : > { %4272 = vmatprep.subr.mxu1 %v6004_v43 }
0x1c8b   : > { %4273 = vmatpush3.msra.mxu1 %v5131_v31  ;;  %v4534_v31 = vld [vmem:[#allocation5 + $0x28] sm:$0xff] }
0x1c8c   : > { %4274 = vmatprep.subr.mxu1 %v6004_v43 }
0x1c8d   : > { %4275 = vmatpush3.msra.mxu1 %v5119_v26  ;;  %v4535_v26 = vld [vmem:[#allocation5 + $0x20] sm:$0xff] }
0x1c8e   : > { %4276 = vmatprep.subr.mxu1 %v6004_v43  ;;  %v4537_v43 = vld [vmem:[%s5931_s6 + $0x70] sm:$0xff] }
0x1c8f   : > { %4277 = vmatpush3.msra.mxu1 %v5167_v34  ;;  %v4536_v34 = vld [vmem:[%s5931_s6 + $0x78] sm:$0xff] }
0x1c90   : > { %4292 = vmatprep.subr.mxu1 %v4532_v49 }
0x1c95   : > { %v4511_v15 = vpop.eup %4510 }
0x1c96   : > { %v2958_v0 = vmul.f32 %v4511_v15, %v2948_v25 }
0x1c98   : > { %4279 = vmatmul.mubr.msk.f32.vlgmr.msra.gmra.mxu1 %vm415_vm0, %v2958_v0 }
0x1c99   : > { %4293 = vmatpush3.msra.mxu1 %v4532_v49  ;;  %4300 = vmatprep.mubr.msk.f32.mxu1 %vm415_vm0, %v5696_v61  ;;  %v4538_v61 = vld [vmem:[%s5931_s6 + $0x68] sm:$0xff] }
0x1c9a   : > { %4294 = vmatprep.subr.mxu1 %v4533_v47 }
0x1c9b   : > { %4295 = vmatpush3.msra.mxu1 %v4533_v47 }
0x1c9c   : > { %4296 = vmatprep.subr.mxu1 %v4534_v31 }
0x1c9d   : > { %4297 = vmatpush3.msra.mxu1 %v4534_v31 }
0x1c9e   : > { %4298 = vmatprep.subr.mxu1 %v4535_v26 }
0x1c9f   : > { %4299 = vmatpush3.msra.mxu1 %v4535_v26 }
0x1ca0   : > { %4301 = vmatmul.mubr.msk.f32.vlgmr.msra.gmra.mxu1 %vm415_vm0, %v5692_v62  ;;  %4314 = vmatprep.subr.mxu1 %v4536_v34  ;;  %v4539_v62 = vld [vmem:[%s5931_s6 + $0x60] sm:$0xff] }
0x1ca1   : > { %4315 = vmatpush3.msra.mxu1 %v4536_v34 }
0x1ca2   : > { %4316 = vmatprep.subr.mxu1 %v4537_v43 }
0x1ca3   : > { %4317 = vmatpush3.msra.mxu1 %v4537_v43 }
0x1ca4   : > { %4318 = vmatprep.subr.mxu1 %v4538_v61 }
0x1ca5   : > { %4319 = vmatpush3.msra.mxu1 %v4538_v61 }
0x1ca6   : > { %4320 = vmatprep.subr.mxu1 %v4539_v62 }
0x1ca7   : > { %4321 = vmatpush3.msra.mxu1 %v4539_v62 }
0x1ca8   : > { %4322 = vmatprep.subr.mxu1 %v4540_v48 }
0x1ca9   : > { %4323 = vmatpush3.msra.mxu1 %v4540_v48 }
0x1caa   : > { %4324 = vmatprep.subr.mxu1 %v4541_v46 }
0x1cab   : > { %4325 = vmatpush3.msra.mxu1 %v4541_v46 }
0x1cac   : > { %4326 = vmatprep.subr.mxu1 %v4542_v24 }
0x1cad   : > { %4327 = vmatpush3.msra.mxu1 %v4542_v24 }
0x1cae   : > { %4328 = vmatprep.subr.mxu1 %v4543_v21 }
0x1caf   : > { %4329 = vmatpush3.msra.mxu1 %v4543_v21 }
0x1cb0   : > { %4330 = vmatprep.subr.mxu1 %v4544_v53 }
0x1cb1   : > { %4331 = vmatpush3.msra.mxu1 %v4544_v53 }
0x1cb2   : > { %4332 = vmatprep.subr.mxu1 %v4545_v38 }
0x1cb3   : > { %4333 = vmatpush3.msra.mxu1 %v4545_v38 }
0x1cb4   : > { %4334 = vmatprep.subr.mxu1 %v4546_v30 }
0x1cb5   : > { %4335 = vmatpush3.msra.mxu1 %v4546_v30 }
0x1cb6   : > { %4336 = vmatprep.subr.mxu1 %v4547_v44 }
0x1cb7   : > { %4337 = vmatpush3.msra.mxu1 %v4547_v44 }
0x1cb8   : > { %4338 = vmatprep.subr.mxu1 %v4548_v13 }
0x1cb9   : > { %4339 = vmatpush3.msra.mxu1 %v4548_v13 }
0x1cba   : > { %4340 = vmatprep.subr.mxu1 %v4549_v58 }
0x1cbb   : > { %4341 = vmatpush3.msra.mxu1 %v4549_v58 }
0x1cbc   : > { %4342 = vmatprep.subr.mxu1 %v4550_v39 }
0x1cbd   : > { %4343 = vmatpush3.msra.mxu1 %v4550_v39 }
0x1cbe   : > { %4344 = vmatprep.subr.mxu1 %v4551_v54 }
0x1cbf   : > { %4345 = vmatpush3.msra.mxu1 %v4551_v54 }
0x1d48   : > { %v3028_v19 = vpop.f32.mrf.mxu1 }
0x1d49   : > { %4289 = vmatprep.mubr.msk.f32.mxu0 %vm415_vm0, %v3028_v19 }
0x1d4a   : > { %v4269_v33 = vpop.f32.mrf.mxu1 }
0x1d58   : > { %v3101_v55 = vpop.f32.mrf.mxu1 }
0x1d59   : > { %4290 = vmatmul.mubr.msk.f32.vlgmr.msra.gmra.mxu0 %vm415_vm0, %v3101_v55 }
0x1d5a   : > { %4304 = vmatpush3.msra.mxu0 %v5290_v1  ;;  %v4280_v56 = vpop.f32.mrf.mxu1 }
0x1d5b   : > { %4305 = vmatprep.subr.mxu0 %v5295_v41 }
0x1d5c   : > { %4306 = vmatpush3.msra.mxu0 %v5295_v41 }
0x1d5d   : > { %4307 = vmatprep.subr.mxu0 %v5300_v9 }
0x1d5e   : > { %4308 = vmatpush3.msra.mxu0 %v5300_v9 }
0x1d5f   : > { %4309 = vmatprep.subr.mxu0 %v5318_v57 }
0x1d60   : > { %v4302_v60 = vpop.f32.mrf.mxu1  ;;  %4310 = vmatpush3.msra.mxu0 %v5318_v57 }
0x1d61   : > { %v3262_v6 = vadd.f32 %v4302_v60, %v5219_v4 }
0x1d62   : > { %v3256_v14 = vpop.f32.mrf.mxu1 }
0x1d63   : > { %v3257_v7 = vadd.f32 %v3256_v14, %v5219_v4  ;;  %3283 = vrot.lane.b32.xlu1 %v3262_v6, %s4680_s16 }
0x1d65   : > { %3281 = vrot.lane.b32.xlu0 %v3257_v7, %s4680_s16 }
0x1dd5   : > { %v3284_v59 = vpop.permute.xlu1 %3283 }
0x1dd7   : > { %v3282_v10 = vpop.permute.xlu0 %3281 }
0x1e19   : > { %v4291_v1 = vpop.f32.mrf.mxu0 }
0x1e1a   : > { %v3183_v41 = vadd.f32 %v4291_v1, %v6005_v23 }
0x1e1b   : > { %v3177_v16 = vpop.f32.mrf.mxu0 }
0x1e1c   : > { %v3266_v17 = vadd.f32 %v3262_v6, %v3183_v41  ;;  %v3178_v9 = vadd.f32 %v3177_v16, %v6005_v23 }
0x1e1e   : > { %v3751_v40 = vmul.f32 -1.442695, %v3266_v17  ;;  %v3265_v37 = vadd.f32 %v3257_v7, %v3178_v9 }
0x1e20   : > { %4512 = vpow2.f32 %v3751_v40  ;;  %v3750_v57 = vmul.f32 -1.442695, %v3265_v37 }
0x1e22   : > { %4514 = vpow2.f32 %v3750_v57 }
0x1e2d   : > { %v4513_v18 = vpop.eup %4512 }
0x1e2e   : > { %v3274_v63 = vadd.f32 1.0, %v4513_v18 }
0x1e2f   : > { %v4515_v5 = vpop.eup %4514 }
0x1e30   : > { %4516 = vrcp.f32 %v3274_v63  ;;  %v3273_v4 = vadd.f32 1.0, %v4515_v5 }
0x1e32   : > { %4518 = vrcp.f32 %v3273_v4 }
0x1e3d   : > { %v4517_v27 = vpop.eup %4516 }
0x1e3e   : > { %v3288_v3 = vmul.f32 %v4517_v27, %v3284_v59  ;;  %v3302_v20 = vsub.f32 1.0, %v4517_v27  ;;  %v3314_v2 = vmul.f32 %v4517_v27, %v5682_v51 }
0x1e3f   : > { %v4519_v8 = vpop.eup %4518 }
0x1e40   : > { %3293 = vrot.lane.b32.xlu0 %v3288_v3, %s4680_s16  ;;  %v3287_v11 = vmul.f32 %v4519_v8, %v3282_v10  ;;  %v3301_v49 = vsub.f32 1.0, %v4519_v8  ;;  %v3313_v47 = vmul.f32 %v4519_v8, %v5686_v32 }
0x1e42   : > { %3291 = vrot.lane.b32.xlu1 %v3287_v11, %s4680_s16  ;;  %s3676_s16 = sshll.u32 %s4850_s18, 4 }
0x1e43   : > { %s342_s15 = scalar_lea.vmem [#allocation7], %s3676_s16 }
0x1e44   : > { %s3561_s20 = sshll.u32 %s342_s15, 4  ;;  %s5876_s20 = int_to_ptr.vmem [resolvable:$true] %s3561_s20 }
0x1e45   : > { %s4606_s17 = scalar_lea.vmem %s5876_s20, 256 }
0x1e46   : > { %p4607_p10 = scmp.ne.s32.totalorder %s5876_s20, %s4606_s17 }
0x1e48   : > { %p4608_p9 = pnand %p4607_p10, %p6021_p7 }
0x1e4a   : > { %p4609_p11 = pneg %p4608_p9 }
0x1eb2   : > { %v3294_v23 = vpop.permute.xlu0 %3293 }
0x1eb3   : > { %v3298_v28 = vadd.f32 %v3294_v23, %v3183_v41 }
0x1eb4   : > { %v3292_v12 = vpop.permute.xlu1 %3291 }
0x1eb5   : > { %4520 = vtanh.f32 %v3298_v28  ;;  %v3297_v36 = vadd.f32 %v3292_v12, %v3178_v9 }
0x1eb7   : > { %4522 = vtanh.f32 %v3297_v36 }
0x1ec2   : > { %v4521_v25 = vpop.eup %4520 }
0x1ec3   : > { %3307 = vrot.lane.b32.xlu0 %v4521_v25, %s4683_s14 }
0x1ec4   : > { %v4523_v42 = vpop.eup %4522 }
0x1ec5   : > { %3305 = vrot.lane.b32.xlu1 %v4523_v42, %s4683_s14 }
0x1f35   : > { %v3308_v22 = vpop.permute.xlu0 %3307 }
0x1f36   : > { %v3312_v52 = vmul.f32 %v3308_v22, %v3302_v20 }
0x1f37   : > { %v3306_v15 = vpop.permute.xlu1 %3305 }
0x1f38   : > { %v5839_v0 = vadd.f32 %v3314_v2, %v3312_v52  ;;  %v3311_v31 = vmul.f32 %v3306_v15, %v3301_v49 }
0x1f3a   : > { %v5842_v26 = vadd.f32 %v3313_v47, %v3311_v31  ;;  %3321 = vrot.lane.b32.xlu0 %v5839_v0, %s4683_s14 }
0x1f3c   : > { %3319 = vrot.lane.b32.xlu1 %v5842_v26, %s4683_s14 }
0x1fac   : > { %v3322_v34 = vpop.permute.xlu0 %3321 }
0x1fad   : > { %v3328_v43 = vsel %vm415_vm0, %v3322_v34, 0.0 }
0x1fae   : > { %3329 = vadd.xlane.f32.xlu0 %v3328_v43  ;;  %v3320_v51 = vpop.permute.xlu1 %3319 }
0x1faf   : > { %v3325_v61 = vsel %vm415_vm0, %v3320_v51, 0.0 }
0x1fb0   : > { %3326 = vadd.xlane.f32.xlu1 %v3325_v61 }
0x2037   : > { %v3330_v62 = vpop.xlane.xlu0 %3329 }
0x2038   : > { %v3332_v48 = vmul.f32 0.03125, %v3330_v62 }
0x2039   : > { %v3327_v32 = vpop.xlane.xlu1 %3326 }
0x203a   : > { %v3334_v46 = vsub.f32 %v5839_v0, %v3332_v48  ;;  %v3331_v24 = vmul.f32 0.03125, %v3327_v32 }
0x203c   : > { %v3336_v21 = vmul.f32 %v3334_v46, %v3334_v46  ;;  %v3333_v53 = vsub.f32 %v5842_v26, %v3331_v24 }
0x203e   : > { %v3335_v38 = vmul.f32 %v3333_v53, %v3333_v53  ;;  %3341 = vrot.lane.b32.xlu1 %v3336_v21, %s4683_s14 }
0x2040   : > { %3339 = vrot.lane.b32.xlu0 %v3335_v38, %s4683_s14 }
0x20b0   : > { %v3342_v30 = vpop.permute.xlu1 %3341 }
0x20b1   : > { %v3348_v44 = vsel %vm415_vm0, %v3342_v30, 0.0 }
0x20b2   : > { %v3340_v13 = vpop.permute.xlu0 %3339  ;;  %3349 = vadd.xlane.f32.xlu0 %v3348_v44 }
0x20b3   : > { %v3345_v58 = vsel %vm415_vm0, %v3340_v13, 0.0 }
0x20b4   : > { %3346 = vadd.xlane.f32.xlu1 %v3345_v58 }
0x213b   : > { %v3350_v39 = vpop.xlane.xlu0 %3349 }
0x213c   : > { %v3352_v54 = vmul.f32 0.03125, %v3350_v39 }
0x213d   : > { %v3347_v19 = vpop.xlane.xlu1 %3346 }
0x213e   : > { %v3354_v33 = vadd.f32 1e-05, %v3352_v54  ;;  %v3351_v55 = vmul.f32 0.03125, %v3347_v19 }
0x2140   : > { %4524 = vrsqrt.f32 %v3354_v33  ;;  %v3353_v56 = vadd.f32 1e-05, %v3351_v55 }
0x2142   : > { %4526 = vrsqrt.f32 %v3353_v56 }
0x214d   : > { %v4525_v60 = vpop.eup %4524 }
0x214e   : > { %v3358_v6 = vmul.f32 %v4525_v60, %v3334_v46 }
0x214f   : > { %v4527_v14 = vpop.eup %4526 }
0x2150   : > { %v3360_v7 = vmul.f32 %v3358_v6, %v6008_v35  ;;  %v3357_v1 = vmul.f32 %v4527_v14, %v3333_v53 }
0x2152   : > { %v3362_v41 = vadd.f32 %v3360_v7, %v6009_v29  ;;  %v3359_v16 = vmul.f32 %v3357_v1, %v6008_v35 }
0x2154   : > { %3367 = vrot.lane.b32.xlu1 %v3362_v41, %s4683_s14  ;;  %v3361_v17 = vadd.f32 %v3359_v16, %v6009_v29 }
0x2156   : > { %3365 = vrot.lane.b32.xlu0 %v3361_v17, %s4683_s14 }
0x21c6   : > { %v3368_v40 = vpop.permute.xlu1 %3367 }
0x21c8   : > { %v3366_v9 = vpop.permute.xlu0 %3365 }
0x21c9   : > { %4311 = vmatprep.mubr.msk.f32.mxu0 %vm415_vm0, %v3366_v9 }
0x21ca   : > { %4312 = vmatmul.mubr.msk.f32.vlgmr.msra.gmra.mxu0 %vm415_vm0, %v3368_v40 }
0x228a   : > { %v4313_v37 = vpop.f32.mrf.mxu0 }
0x228b   : > { %v3445_v57 = vadd.f32 %v4313_v37, %v6013_v50 }
0x228c   : > { %v3439_v18 = vpop.f32.mrf.mxu0 }
0x228d   : > { %v3440_v63 = vadd.f32 %v3439_v18, %v6013_v50  ;;  %v3449_v35 = vmax.f32 %v3445_v57, 0.0 }
0x228f   : > { %v3448_v5 = vmax.f32 %v3440_v63, 0.0 }
0x2291   : > { %4346 = vmatprep.mubr.f32.mxu1 %v3448_v5 }
0x2292   : > { %4347 = vmatmul.mubr.f32.vlgmr.msra.gmra.mxu1 %v3449_v35 }
0x2352   : > { %v4348_v29 = vpop.f32.mrf.mxu1 }
0x2353   : > { %3529 = vrot.lane.b32.xlu0 %v4348_v29, %s4685_s29 }
0x2354   : > { %v3516_v4 = vpop.f32.mrf.mxu1 }
0x2355   : > { %3527 = vrot.lane.b32.xlu1 %v3516_v4, %s4685_s29  ;;  %s3761_s29 = sshll.u32 %s4750_s28, 8  ;;  %s4686_s28 = smov [#allocation7]  }
0x2356   : > { %s5881_s23 = scalar_lea.hbm %s5932_s7, %s3761_s29  ;;  %s4610_s12 = sshll.u32 %s4686_s28, 4  ;;  %s4611_s12 = int_to_ptr.vmem [resolvable:$false] %s4610_s12 }
0x2357   : > { %s4612_s5 = scalar_lea.vmem %s4611_s12, 512  ;;  %p4613_p12 = scmp.lt.s32.totalorder %s5876_s20, %s4611_s12 }
0x2358   : > { %p4614_p13 = scmp.lt.s32.totalorder %s4612_s5, %s4606_s17 }
0x235a   : > { %p4615_p0 = por %p4614_p13, %p4613_p12 }
0x235c   : > { %p4616_p5 = pnand %p4615_p0, %p4609_p11 }
0x23c5   : > { %v3530_v27 = vpop.permute.xlu0 %3529 }
0x23c6   : > { %v3534_v59 = vadd.f32 %v3530_v27, %v5839_v0 }
0x23c7   : > { %v3528_v3 = vpop.permute.xlu1 %3527 }
0x23c8   : > { %v3536_v8 = vadd.f32 %v3534_v59, %v6018_v45  ;;  %v3533_v50 = vadd.f32 %v3528_v3, %v5842_v26 }
0x23ca   : > { %v3535_v10 = vadd.f32 %v3533_v50, %v6018_v45  ;;  %3541 = vrot.lane.b32.xlu0 %v3536_v8, %s4683_s14 }
0x23cc   : > { %3539 = vrot.lane.b32.xlu1 %v3535_v10, %s4683_s14  ;;  %s3548_s14 = scalar_lea.sflag [#allocation4], %s4850_s18 }
0x243c   : > { %v3542_v11 = vpop.permute.xlu0 %3541 }
0x243d   : > { %3546 = vst.msk [vmem:[%s342_s15 + $0x8] sm:$0xff] %vm415_vm0, %v3542_v11 }
0x243e   : > { %v3540_v45 = vpop.permute.xlu1 %3539 }
0x243f   : > { %3545 = vst.msk [vmem:[%s342_s15] sm:$0xff] %vm415_vm0, %v3540_v45 }
0x2440   : > { %4619 = shalt.err (!%p4616_p5)
}
0x2441   : > { %s4620_s10 = scalar_lea.hbm %s5881_s23, 256  ;;  %s4624_s16 = scalar_lea.hbm %s5932_s7, 1024 }
0x2442   : > { %p4621_p2 = scmp.ne.s32.totalorder %s5881_s23, %s4620_s10  ;;  %p4625_p6 = scmp.lt.s32.totalorder %s5881_s23, %s5932_s7 }
0x2443   : > { %p4626_p8 = scmp.lt.s32.totalorder %s4624_s16, %s4620_s10 }
0x2444   : > { %p4622_p1 = pnand %p4621_p2, %p6021_p7 }
0x2445   : > { %p4627_p3 = por %p4626_p8, %p4625_p6 }
0x2446   : > { %p4623_p4 = pneg %p4622_p1 }
0x2448   : > { %p4628_p10 = pnand %p4627_p3, %p4623_p4 }
0x244a   : > { %4631 = shalt.err (!%p4628_p10)
}
0x244b   : > { %s4687_s11 = smov 128   ;;  %s4688_s9 = smov 8  }
0x244c   : > { %4355 = dma.vmem_to_hbm [thread:$0]  (%p6021_p7), %s5876_s20, 256, %s5881_s23, %s3548_s14, %s4687_s11, %s4687_s11, %s4688_s9  }
0x244d PF: > { %p4372_p9 = scmp.ge.s32.totalorder %s4674_s27, 2  ;;  %s3576_s17 = sand.u32 1, %s4662_s24  }
0x244e   : > { %p6022_p11 = scmp.ne.s32.totalorder %s5969_s8, 0  ;;  %s3577_s28 = scalar_lea.sflag [#allocation4], %s3576_s17 }
0x2450   : > { %p4366_p12 = pnand %p4372_p9, %p6022_p11 }
0x2452   : > { %p4367_p13 = pneg %p4366_p12 }
0x2454   : > { %4657 = dma.done.wait (%p4367_p13), %s3577_s28, 256  }
0x2455   : > { %4659 = vsyncadd (%p4367_p13), %s3577_s28, 4294967040  ;;  %p21_p0 = scmp.ge.s32.totalorder %s4782_s13, 6   ;;  %s6023_s24 = smov %s4666_s25 }
0x2456   : > { %s6024_s25 = smov %s4670_s26  ;;  %s6025_s26 = smov %s4802_s21 }
0x2457   : > { %s6026_s27 = smov %s4782_s13  ;;  %23 = sbr.rel (!%p21_p0) target bundleno = 8 (0x8), region = 104 }
0x245c   :  { %3582 = vsyncpa [#allocation3], 1 }
0x245d   :  { %3584 = vsyncpa [#allocation3 + $0x1], 1 }
0x245e   :  { %3585 = vsyncpa [#allocation6], 1 }
0x245f   :  { %3586 = vsyncpa [#allocation4], 1 }
0x2460   :  { %3588 = vsyncpa [#allocation4 + $0x1], 1 }

</bundles_post_ra>
